<compile_context>
chip_gen: v7x
topology: tpu7x:2x2x1
jax: 0.10.0
libtpu: 0.0.40
codegen_flags: <defaults>
</compile_context>

<pallas_src>
import jax
import jax.numpy as jnp
from jax.experimental import pallas as pl
from jax.experimental.pallas import tpu as pltpu

# ----------------------------- small configuration -----------------------------
BATCH = 2
IMG_C, IMG_H, IMG_W = 32, 8, 8            # image_feature_size = (32, 8, 8)
MODULE_CHANNELS = 64
CLASS_PROJ_CHANNELS = 128
CLASSIFIER_LINEAR = 128

# Synthetic vocabulary (program namespace restricted to the tokens whose behaviour is
# fully defined by the reference forward(): skip tokens + 'scene').
PROGRAM_VOCAB = {"@@PADDING@@": 0, "@@UNKNOWN@@": 1, "@start@": 2, "@end@": 3,
                 "unique": 4, "scene": 5}
SKIP_TOKENS = ("@@PADDING@@", "@start@", "@end@", "@@UNKNOWN@@", "unique")
ANSWER_VOCAB_SIZE = 17                    # len(answers namespace)
NUM_ANSWERS = ANSWER_VOCAB_SIZE - 1       # matches __num_answers in __init__
ANSWER_UNKNOWN_INDEX = 1                  # index of '@@UNKNOWN@@' in answers namespace

# Nine 3x3 tap shifts in (ky, kx) row-major order (dy = ky-1, dx = kx-1), matching the
# (9, Cin, Cout) weight packing in pack_params.
_TAP_OFFSETS = tuple((dy, dx) for dy in (-1, 0, 1) for dx in (-1, 0, 1))


# --------------------------------- fused kernel ---------------------------------
def _nmn_fused_kernel(x_ref, vrow_ref, vn_ref, masks_ref,
                      w1_ref, b1_ref, w2_ref, b2_ref,
                      wp_ref, bp_ref, sel_ref,
                      w1fc_ref, b1fc_ref, w2fc_ref, b2fc_ref,
                      pred_ref, loss_ref):
    f32, bf16 = jnp.float32, jnp.bfloat16
    H, W = IMG_H, IMG_W
    NHW = x_ref.shape[0]
    N = vn_ref.shape[0]

    # ---- 3x3 'same' conv as 9 roll+mask taps accumulated into one f32 accumulator ----
    # Roll on the row axis is XLU work (free slot); the precomputed (NHW,1) boundary mask
    # also zeroes any cross-image contamination from the roll wrap-around.
    def conv3x3_relu(slab, w_ref_, b_ref_):
        cout = w_ref_.shape[2]
        acc = jnp.zeros((NHW, cout), f32)
        for t, (dy, dx) in enumerate(_TAP_OFFSETS):
            shift = dy * W + dx
            if shift == 0:
                tap = slab                                      # centre tap: mask is all-ones
            else:
                tap = pltpu.roll(slab, (-shift) % NHW, 0) * masks_ref[t]
            acc = acc + jnp.dot(tap.astype(bf16), w_ref_[t],
                                preferred_element_type=f32)
        return jnp.maximum(acc + b_ref_[...], 0.0)

    # ---- stem: Conv3x3+ReLU, Conv3x3+ReLU ----
    h = conv3x3_relu(x_ref[...], w1_ref, b1_ref)                # (NHW, M)
    h = conv3x3_relu(h, w2_ref, b2_ref)                         # (NHW, M)

    # ---- module-network output: valid programs pass features through, invalid -> zeros ----
    h = h * vrow_ref[...]                                       # (NHW, M) * (NHW, 1)

    # ---- classifier: 1x1 conv + ReLU (plain matmul, lane-dense 128-wide output) ----
    y = jnp.dot(h.astype(bf16), wp_ref[...], preferred_element_type=f32) + bp_ref[...]
    y = jnp.maximum(y, 0.0)                                     # (NHW, P)

    # ---- 2x2 / stride-2 maxpool: rolls + max, then one anchor-row selection matmul ----
    m = y
    for k in (1, W, W + 1):
        m = jnp.maximum(m, pltpu.roll(y, (NHW - k) % NHW, 0))   # row r holds max of its window
    # sel_ref: (NQ, NHW) bf16 one-hot anchor selector, rows ordered q = s*N + n (s-major).
    pooled = jnp.dot(sel_ref[...], m.astype(bf16), preferred_element_type=f32)   # (NQ, P)

    # ---- fc1 (+ReLU): single matmul; CHW flatten folded into flattened w1fc layout ----
    S = pooled.shape[0] // N
    flat = jnp.concatenate([pooled[s * N:(s + 1) * N, :] for s in range(S)],
                           axis=1)                              # (N, S*P), col = s*P + p
    h3 = jnp.dot(flat.astype(bf16), w1fc_ref[...], preferred_element_type=f32) + b1fc_ref[...]
    h3 = jnp.maximum(h3, 0.0)                                   # (N, J)

    # ---- fc2 + log-softmax / argmax / loss head ----
    logits = (jnp.dot(h3.astype(bf16), w2fc_ref[...], preferred_element_type=f32)
              + b2fc_ref[...])                                  # (N, A)
    mx = jnp.max(logits, axis=-1, keepdims=True)
    lse = mx + jnp.log(jnp.sum(jnp.exp(logits - mx), axis=-1, keepdims=True))
    logprobs = logits - lse
    max_lp = jnp.max(logprobs, axis=-1, keepdims=True)          # (N, 1)
    A = logits.shape[-1]
    aidx = jax.lax.broadcasted_iota(jnp.int32, logits.shape, 1)
    pred = jnp.min(jnp.where(logprobs >= max_lp, aidx, A), axis=-1, keepdims=True)
    valid = vn_ref[...] > 0                                     # (N, 1)
    pred_ref[...] = jnp.where(valid, pred, ANSWER_UNKNOWN_INDEX).astype(jnp.int32)
    loss_ref[...] = jnp.where(valid, -max_lp, jnp.float32(3.33))


# --------------------------------- parameters ---------------------------------
def init_params(key):
    ks = jax.random.split(key, 5)

    def conv_w(k, cout, cin, kh, kw):
        fan_in = cin * kh * kw
        return jax.random.normal(k, (cout, cin, kh, kw), jnp.float32) / (fan_in ** 0.5)

    def lin_w(k, o, i):
        return jax.random.normal(k, (o, i), jnp.float32) / (i ** 0.5)

    return {
        "stem_w1": conv_w(ks[0], MODULE_CHANNELS, IMG_C, 3, 3),
        "stem_b1": jnp.zeros((MODULE_CHANNELS,), jnp.float32),
        "stem_w2": conv_w(ks[1], MODULE_CHANNELS, MODULE_CHANNELS, 3, 3),
        "stem_b2": jnp.zeros((MODULE_CHANNELS,), jnp.float32),
        "proj_w": conv_w(ks[2], CLASS_PROJ_CHANNELS, MODULE_CHANNELS, 1, 1),
        "proj_b": jnp.zeros((CLASS_PROJ_CHANNELS,), jnp.float32),
        "fc1_w": lin_w(ks[3], CLASSIFIER_LINEAR,
                       CLASS_PROJ_CHANNELS * IMG_H * IMG_W // 4),
        "fc1_b": jnp.zeros((CLASSIFIER_LINEAR,), jnp.float32),
        "fc2_w": lin_w(ks[4], NUM_ANSWERS, CLASSIFIER_LINEAR),
        "fc2_b": jnp.zeros((NUM_ANSWERS,), jnp.float32),
    }


def pack_params(p, batch=BATCH):
    """One-time conversion of PyTorch-layout weights (plus the static selection / boundary
    masks) into the fused kernel's layout.  All MXU operands are pre-cast to bf16."""
    bf16 = jnp.bfloat16
    H, W = IMG_H, IMG_W
    HW = H * W
    H2, W2 = H // 2, W // 2
    S = H2 * W2
    NHW = batch * HW
    NQ = batch * S

    def conv_taps(w):                     # (Cout, Cin, 3, 3) -> (9, Cin, Cout), tap-major
        cout, cin = w.shape[0], w.shape[1]
        return jnp.transpose(w, (2, 3, 1, 0)).reshape(9, cin, cout).astype(bf16)

    # Per-tap boundary masks for 'same' padding, shape (9, NHW, 1); also kill roll wrap-around.
    yy = (jnp.arange(NHW) % HW) // W
    xx = jnp.arange(NHW) % W
    masks = []
    for dy, dx in _TAP_OFFSETS:
        ok = (yy + dy >= 0) & (yy + dy < H) & (xx + dx >= 0) & (xx + dx < W)
        masks.append(ok.astype(jnp.float32))
    masks = jnp.stack(masks, 0).reshape(9, NHW, 1)

    # Maxpool anchor-row selector, shape (NQ, NHW), rows q = s*batch + n (s-major).
    q = jnp.arange(NQ)
    n_idx, s_idx = q % batch, q // batch
    anchor = n_idx * HW + (s_idx // W2) * (2 * W) + (s_idx % W2) * 2
    sel = (jnp.arange(NHW)[None, :] == anchor[:, None]).astype(bf16)

    # fc1: torch in-feature f = c*(H2*W2) + s (CHW flatten).  Kernel flat column is s*P + c,
    # so re-lay out as (s, c, out) and flatten to (S*P, J).
    fc1 = p["fc1_w"].reshape(CLASSIFIER_LINEAR, CLASS_PROJ_CHANNELS, S)
    fc1 = jnp.transpose(fc1, (2, 1, 0)).reshape(S * CLASS_PROJ_CHANNELS,
                                                CLASSIFIER_LINEAR).astype(bf16)

    return {
        "masks": masks, "sel": sel,
        "w1": conv_taps(p["stem_w1"]), "b1": p["stem_b1"].reshape(1, -1),
        "w2": conv_taps(p["stem_w2"]), "b2": p["stem_b2"].reshape(1, -1),
        "wp": jnp.transpose(p["proj_w"][:, :, 0, 0]).astype(bf16),
        "bp": p["proj_b"].reshape(1, -1),
        "w1fc": fc1, "b1fc": p["fc1_b"].reshape(1, -1),
        "w2fc": jnp.transpose(p["fc2_w"]).astype(bf16),
        "b2fc": p["fc2_b"].reshape(1, -1),
    }


# ---------------------------------- forward ----------------------------------
@jax.jit
def nmn_forward(features_nchw, programs, params):
    """answers=None path of NeuralModuleNetwork.forward: predictions + per-example loss."""
    N = features_nchw.shape[0]
    # NCHW -> lane-dense (N*H*W, C) rows for the kernel.
    x = jnp.transpose(features_nchw, (0, 2, 3, 1)).reshape(N * IMG_H * IMG_W, IMG_C)
    x = x.astype(jnp.float32)

    # Vectorized program interpretation (replaces the reference's per-example host loop).
    # With the token set defined here a program is valid iff every token is a skip token:
    # 'scene' leaves a 1-channel attention output (-> ValueError branch in the reference),
    # and every other module token has no implementation, so both map to the zero-features /
    # invalid path exactly as before.
    # TODO(synk): AttentionModule/QueryModule/RelateModule/SameModule/ComparisonModule/
    #             And/Or from the reference are not defined in the provided snippet; any
    #             program containing such tokens is treated as invalid here.
    skip_ids = jnp.asarray([PROGRAM_VOCAB[t] for t in SKIP_TOKENS], jnp.int32)
    is_skip = jnp.any(programs[:, :, None] == skip_ids[None, None, :], axis=-1)
    valid = jnp.all(is_skip, axis=1)                                   # (N,)
    vrow = jnp.repeat(valid.astype(jnp.float32), IMG_H * IMG_W).reshape(-1, 1)
    vn = valid.astype(jnp.int32).reshape(N, 1)

    # Single grid-less pallas_call: all operands + intermediates fit easily in VMEM.
    # TODO(synk): for real batch sizes add a batch grid (dimension_semantics=("parallel",))
    #             so v7x can shard rows across its 2 TensorCores; irrelevant at N=2.
    pred, loss = pl.pallas_call(
        _nmn_fused_kernel,
        out_shape=(jax.ShapeDtypeStruct((N, 1), jnp.int32),
                   jax.ShapeDtypeStruct((N, 1), jnp.float32)),
    )(x, vrow, vn, params["masks"],
      params["w1"], params["b1"], params["w2"], params["b2"],
      params["wp"], params["bp"], params["sel"],
      params["w1fc"], params["b1fc"], params["w2fc"], params["b2fc"])
    # TODO(synk): the optional `answers` / CrossEntropyLoss / metrics path of the reference
    #             module is not implemented (inference path only, as in the prior version).
    return {"predictions": pred[:, 0], "loss": loss[:, 0]}


if __name__ == "__main__":
    key = jax.random.PRNGKey(0)
    features = jax.random.normal(key, (BATCH, IMG_C, IMG_H, IMG_W), jnp.float32)
    programs = jnp.array(
        [[PROGRAM_VOCAB["@start@"], PROGRAM_VOCAB["unique"], PROGRAM_VOCAB["@end@"], 0, 0, 0],
         [PROGRAM_VOCAB["@start@"], PROGRAM_VOCAB["scene"], PROGRAM_VOCAB["@end@"], 0, 0, 0]],
        dtype=jnp.int32)   # example 0: valid; example 1: ends as 'attention' -> invalid path

    params = pack_params(init_params(jax.random.PRNGKey(42)))
    out = nmn_forward(features, programs, params)
    jax.block_until_ready((out["predictions"], out["loss"]))
    print("KERNEL_OK")
</pallas_src>

<mosaic_0001>
module attributes {stable_mosaic.version = 11 : i64} {
  func.func @_nmn_fused_kernel(%arg0: memref<128x32xf32, #tpu.memory_space<vmem>>, %arg1: memref<128x1xf32, #tpu.memory_space<vmem>>, %arg2: memref<2x1xi32, #tpu.memory_space<vmem>>, %arg3: memref<9x128x1xf32, #tpu.memory_space<vmem>>, %arg4: memref<9x32x64xbf16, #tpu.memory_space<vmem>>, %arg5: memref<1x64xf32, #tpu.memory_space<vmem>>, %arg6: memref<9x64x64xbf16, #tpu.memory_space<vmem>>, %arg7: memref<1x64xf32, #tpu.memory_space<vmem>>, %arg8: memref<64x128xbf16, #tpu.memory_space<vmem>>, %arg9: memref<1x128xf32, #tpu.memory_space<vmem>>, %arg10: memref<32x128xbf16, #tpu.memory_space<vmem>>, %arg11: memref<2048x128xbf16, #tpu.memory_space<vmem>>, %arg12: memref<1x128xf32, #tpu.memory_space<vmem>>, %arg13: memref<128x16xbf16, #tpu.memory_space<vmem>>, %arg14: memref<1x16xf32, #tpu.memory_space<vmem>>, %arg15: memref<2x1xi32, #tpu.memory_space<vmem>>, %arg16: memref<2x1xf32, #tpu.memory_space<vmem>>) attributes {dimension_semantics = [], scalar_prefetch = 0 : i64, scratch_operands = 0 : i64, tpu.core_type = #tpu.core_type<tc>} {
    %c0 = arith.constant 0 : index
    %c0_0 = arith.constant 0 : index
    %0 = vector.load %arg0[%c0, %c0_0] : memref<128x32xf32, #tpu.memory_space<vmem>>, vector<128x32xf32>
    %cst = arith.constant 0.000000e+00 : f32
    %1 = vector.broadcast %cst : f32 to vector<128x64xf32>
    %c9_i32 = arith.constant 9 : i32
    %2 = tpu.dynamic_rotate %0 by %c9_i32 dim 0 : vector<128x32xf32>, i32 -> vector<128x32xf32>
    %c0_1 = arith.constant 0 : index
    %c0_2 = arith.constant 0 : index
    %c0_3 = arith.constant 0 : index
    %3 = vector.load %arg3[%c0_1, %c0_2, %c0_3] : memref<9x128x1xf32, #tpu.memory_space<vmem>>, vector<1x128x1xf32>
    %4 = vector.shape_cast %3 : vector<1x128x1xf32> to vector<128x1xf32>
    %5 = vector.broadcast %4 : vector<128x1xf32> to vector<128x32xf32>
    %6 = arith.mulf %2, %5 : vector<128x32xf32>
    %7 = arith.truncf %6 : vector<128x32xf32> to vector<128x32xbf16>
    %c0_4 = arith.constant 0 : index
    %c0_5 = arith.constant 0 : index
    %c0_6 = arith.constant 0 : index
    %8 = vector.load %arg4[%c0_4, %c0_5, %c0_6] : memref<9x32x64xbf16, #tpu.memory_space<vmem>>, vector<1x32x64xbf16>
    %9 = vector.shape_cast %8 : vector<1x32x64xbf16> to vector<32x64xbf16>
    %cst_7 = arith.constant dense<0.000000e+00> : vector<128x64xf32>
    %10 = tpu.matmul %7, %9, %cst_7 {dimension_numbers = #tpu.dot_dimension_numbers<[1], [0], [0], [1], [0, 0, 1, 1], [], []>} : vector<128x32xbf16>, vector<32x64xbf16>, vector<128x64xf32> -> vector<128x64xf32>
    %11 = arith.addf %1, %10 : vector<128x64xf32>
    %c8_i32 = arith.constant 8 : i32
    %12 = tpu.dynamic_rotate %0 by %c8_i32 dim 0 : vector<128x32xf32>, i32 -> vector<128x32xf32>
    %c1 = arith.constant 1 : index
    %c0_8 = arith.constant 0 : index
    %c0_9 = arith.constant 0 : index
    %13 = vector.load %arg3[%c1, %c0_8, %c0_9] : memref<9x128x1xf32, #tpu.memory_space<vmem>>, vector<1x128x1xf32>
    %14 = vector.shape_cast %13 : vector<1x128x1xf32> to vector<128x1xf32>
    %15 = vector.broadcast %14 : vector<128x1xf32> to vector<128x32xf32>
    %16 = arith.mulf %12, %15 : vector<128x32xf32>
    %17 = arith.truncf %16 : vector<128x32xf32> to vector<128x32xbf16>
    %c1_10 = arith.constant 1 : index
    %c0_11 = arith.constant 0 : index
    %c0_12 = arith.constant 0 : index
    %18 = vector.load %arg4[%c1_10, %c0_11, %c0_12] : memref<9x32x64xbf16, #tpu.memory_space<vmem>>, vector<1x32x64xbf16>
    %19 = vector.shape_cast %18 : vector<1x32x64xbf16> to vector<32x64xbf16>
    %cst_13 = arith.constant dense<0.000000e+00> : vector<128x64xf32>
    %20 = tpu.matmul %17, %19, %cst_13 {dimension_numbers = #tpu.dot_dimension_numbers<[1], [0], [0], [1], [0, 0, 1, 1], [], []>} : vector<128x32xbf16>, vector<32x64xbf16>, vector<128x64xf32> -> vector<128x64xf32>
    %21 = arith.addf %11, %20 : vector<128x64xf32>
    %c7_i32 = arith.constant 7 : i32
    %22 = tpu.dynamic_rotate %0 by %c7_i32 dim 0 : vector<128x32xf32>, i32 -> vector<128x32xf32>
    %c2 = arith.constant 2 : index
    %c0_14 = arith.constant 0 : index
    %c0_15 = arith.constant 0 : index
    %23 = vector.load %arg3[%c2, %c0_14, %c0_15] : memref<9x128x1xf32, #tpu.memory_space<vmem>>, vector<1x128x1xf32>
    %24 = vector.shape_cast %23 : vector<1x128x1xf32> to vector<128x1xf32>
    %25 = vector.broadcast %24 : vector<128x1xf32> to vector<128x32xf32>
    %26 = arith.mulf %22, %25 : vector<128x32xf32>
    %27 = arith.truncf %26 : vector<128x32xf32> to vector<128x32xbf16>
    %c2_16 = arith.constant 2 : index
    %c0_17 = arith.constant 0 : index
    %c0_18 = arith.constant 0 : index
    %28 = vector.load %arg4[%c2_16, %c0_17, %c0_18] : memref<9x32x64xbf16, #tpu.memory_space<vmem>>, vector<1x32x64xbf16>
    %29 = vector.shape_cast %28 : vector<1x32x64xbf16> to vector<32x64xbf16>
    %cst_19 = arith.constant dense<0.000000e+00> : vector<128x64xf32>
    %30 = tpu.matmul %27, %29, %cst_19 {dimension_numbers = #tpu.dot_dimension_numbers<[1], [0], [0], [1], [0, 0, 1, 1], [], []>} : vector<128x32xbf16>, vector<32x64xbf16>, vector<128x64xf32> -> vector<128x64xf32>
    %31 = arith.addf %21, %30 : vector<128x64xf32>
    %c1_i32 = arith.constant 1 : i32
    %32 = tpu.dynamic_rotate %0 by %c1_i32 dim 0 : vector<128x32xf32>, i32 -> vector<128x32xf32>
    %c3 = arith.constant 3 : index
    %c0_20 = arith.constant 0 : index
    %c0_21 = arith.constant 0 : index
    %33 = vector.load %arg3[%c3, %c0_20, %c0_21] : memref<9x128x1xf32, #tpu.memory_space<vmem>>, vector<1x128x1xf32>
    %34 = vector.shape_cast %33 : vector<1x128x1xf32> to vector<128x1xf32>
    %35 = vector.broadcast %34 : vector<128x1xf32> to vector<128x32xf32>
    %36 = arith.mulf %32, %35 : vector<128x32xf32>
    %37 = arith.truncf %36 : vector<128x32xf32> to vector<128x32xbf16>
    %c3_22 = arith.constant 3 : index
    %c0_23 = arith.constant 0 : index
    %c0_24 = arith.constant 0 : index
    %38 = vector.load %arg4[%c3_22, %c0_23, %c0_24] : memref<9x32x64xbf16, #tpu.memory_space<vmem>>, vector<1x32x64xbf16>
    %39 = vector.shape_cast %38 : vector<1x32x64xbf16> to vector<32x64xbf16>
    %cst_25 = arith.constant dense<0.000000e+00> : vector<128x64xf32>
    %40 = tpu.matmul %37, %39, %cst_25 {dimension_numbers = #tpu.dot_dimension_numbers<[1], [0], [0], [1], [0, 0, 1, 1], [], []>} : vector<128x32xbf16>, vector<32x64xbf16>, vector<128x64xf32> -> vector<128x64xf32>
    %41 = arith.addf %31, %40 : vector<128x64xf32>
    %42 = arith.truncf %0 : vector<128x32xf32> to vector<128x32xbf16>
    %c4 = arith.constant 4 : index
    %c0_26 = arith.constant 0 : index
    %c0_27 = arith.constant 0 : index
    %43 = vector.load %arg4[%c4, %c0_26, %c0_27] : memref<9x32x64xbf16, #tpu.memory_space<vmem>>, vector<1x32x64xbf16>
    %44 = vector.shape_cast %43 : vector<1x32x64xbf16> to vector<32x64xbf16>
    %cst_28 = arith.constant dense<0.000000e+00> : vector<128x64xf32>
    %45 = tpu.matmul %42, %44, %cst_28 {dimension_numbers = #tpu.dot_dimension_numbers<[1], [0], [0], [1], [0, 0, 1, 1], [], []>} : vector<128x32xbf16>, vector<32x64xbf16>, vector<128x64xf32> -> vector<128x64xf32>
    %46 = arith.addf %41, %45 : vector<128x64xf32>
    %c127_i32 = arith.constant 127 : i32
    %47 = tpu.dynamic_rotate %0 by %c127_i32 dim 0 : vector<128x32xf32>, i32 -> vector<128x32xf32>
    %c5 = arith.constant 5 : index
    %c0_29 = arith.constant 0 : index
    %c0_30 = arith.constant 0 : index
    %48 = vector.load %arg3[%c5, %c0_29, %c0_30] : memref<9x128x1xf32, #tpu.memory_space<vmem>>, vector<1x128x1xf32>
    %49 = vector.shape_cast %48 : vector<1x128x1xf32> to vector<128x1xf32>
    %50 = vector.broadcast %49 : vector<128x1xf32> to vector<128x32xf32>
    %51 = arith.mulf %47, %50 : vector<128x32xf32>
    %52 = arith.truncf %51 : vector<128x32xf32> to vector<128x32xbf16>
    %c5_31 = arith.constant 5 : index
    %c0_32 = arith.constant 0 : index
    %c0_33 = arith.constant 0 : index
    %53 = vector.load %arg4[%c5_31, %c0_32, %c0_33] : memref<9x32x64xbf16, #tpu.memory_space<vmem>>, vector<1x32x64xbf16>
    %54 = vector.shape_cast %53 : vector<1x32x64xbf16> to vector<32x64xbf16>
    %cst_34 = arith.constant dense<0.000000e+00> : vector<128x64xf32>
    %55 = tpu.matmul %52, %54, %cst_34 {dimension_numbers = #tpu.dot_dimension_numbers<[1], [0], [0], [1], [0, 0, 1, 1], [], []>} : vector<128x32xbf16>, vector<32x64xbf16>, vector<128x64xf32> -> vector<128x64xf32>
    %56 = arith.addf %46, %55 : vector<128x64xf32>
    %c121_i32 = arith.constant 121 : i32
    %57 = tpu.dynamic_rotate %0 by %c121_i32 dim 0 : vector<128x32xf32>, i32 -> vector<128x32xf32>
    %c6 = arith.constant 6 : index
    %c0_35 = arith.constant 0 : index
    %c0_36 = arith.constant 0 : index
    %58 = vector.load %arg3[%c6, %c0_35, %c0_36] : memref<9x128x1xf32, #tpu.memory_space<vmem>>, vector<1x128x1xf32>
    %59 = vector.shape_cast %58 : vector<1x128x1xf32> to vector<128x1xf32>
    %60 = vector.broadcast %59 : vector<128x1xf32> to vector<128x32xf32>
    %61 = arith.mulf %57, %60 : vector<128x32xf32>
    %62 = arith.truncf %61 : vector<128x32xf32> to vector<128x32xbf16>
    %c6_37 = arith.constant 6 : index
    %c0_38 = arith.constant 0 : index
    %c0_39 = arith.constant 0 : index
    %63 = vector.load %arg4[%c6_37, %c0_38, %c0_39] : memref<9x32x64xbf16, #tpu.memory_space<vmem>>, vector<1x32x64xbf16>
    %64 = vector.shape_cast %63 : vector<1x32x64xbf16> to vector<32x64xbf16>
    %cst_40 = arith.constant dense<0.000000e+00> : vector<128x64xf32>
    %65 = tpu.matmul %62, %64, %cst_40 {dimension_numbers = #tpu.dot_dimension_numbers<[1], [0], [0], [1], [0, 0, 1, 1], [], []>} : vector<128x32xbf16>, vector<32x64xbf16>, vector<128x64xf32> -> vector<128x64xf32>
    %66 = arith.addf %56, %65 : vector<128x64xf32>
    %c120_i32 = arith.constant 120 : i32
    %67 = tpu.dynamic_rotate %0 by %c120_i32 dim 0 : vector<128x32xf32>, i32 -> vector<128x32xf32>
    %c7 = arith.constant 7 : index
    %c0_41 = arith.constant 0 : index
    %c0_42 = arith.constant 0 : index
    %68 = vector.load %arg3[%c7, %c0_41, %c0_42] : memref<9x128x1xf32, #tpu.memory_space<vmem>>, vector<1x128x1xf32>
    %69 = vector.shape_cast %68 : vector<1x128x1xf32> to vector<128x1xf32>
    %70 = vector.broadcast %69 : vector<128x1xf32> to vector<128x32xf32>
    %71 = arith.mulf %67, %70 : vector<128x32xf32>
    %72 = arith.truncf %71 : vector<128x32xf32> to vector<128x32xbf16>
    %c7_43 = arith.constant 7 : index
    %c0_44 = arith.constant 0 : index
    %c0_45 = arith.constant 0 : index
    %73 = vector.load %arg4[%c7_43, %c0_44, %c0_45] : memref<9x32x64xbf16, #tpu.memory_space<vmem>>, vector<1x32x64xbf16>
    %74 = vector.shape_cast %73 : vector<1x32x64xbf16> to vector<32x64xbf16>
    %cst_46 = arith.constant dense<0.000000e+00> : vector<128x64xf32>
    %75 = tpu.matmul %72, %74, %cst_46 {dimension_numbers = #tpu.dot_dimension_numbers<[1], [0], [0], [1], [0, 0, 1, 1], [], []>} : vector<128x32xbf16>, vector<32x64xbf16>, vector<128x64xf32> -> vector<128x64xf32>
    %76 = arith.addf %66, %75 : vector<128x64xf32>
    %c119_i32 = arith.constant 119 : i32
    %77 = tpu.dynamic_rotate %0 by %c119_i32 dim 0 : vector<128x32xf32>, i32 -> vector<128x32xf32>
    %c8 = arith.constant 8 : index
    %c0_47 = arith.constant 0 : index
    %c0_48 = arith.constant 0 : index
    %78 = vector.load %arg3[%c8, %c0_47, %c0_48] : memref<9x128x1xf32, #tpu.memory_space<vmem>>, vector<1x128x1xf32>
    %79 = vector.shape_cast %78 : vector<1x128x1xf32> to vector<128x1xf32>
    %80 = vector.broadcast %79 : vector<128x1xf32> to vector<128x32xf32>
    %81 = arith.mulf %77, %80 : vector<128x32xf32>
    %82 = arith.truncf %81 : vector<128x32xf32> to vector<128x32xbf16>
    %c8_49 = arith.constant 8 : index
    %c0_50 = arith.constant 0 : index
    %c0_51 = arith.constant 0 : index
    %83 = vector.load %arg4[%c8_49, %c0_50, %c0_51] : memref<9x32x64xbf16, #tpu.memory_space<vmem>>, vector<1x32x64xbf16>
    %84 = vector.shape_cast %83 : vector<1x32x64xbf16> to vector<32x64xbf16>
    %cst_52 = arith.constant dense<0.000000e+00> : vector<128x64xf32>
    %85 = tpu.matmul %82, %84, %cst_52 {dimension_numbers = #tpu.dot_dimension_numbers<[1], [0], [0], [1], [0, 0, 1, 1], [], []>} : vector<128x32xbf16>, vector<32x64xbf16>, vector<128x64xf32> -> vector<128x64xf32>
    %86 = arith.addf %76, %85 : vector<128x64xf32>
    %c0_53 = arith.constant 0 : index
    %c0_54 = arith.constant 0 : index
    %87 = vector.load %arg5[%c0_53, %c0_54] : memref<1x64xf32, #tpu.memory_space<vmem>>, vector<1x64xf32>
    %88 = vector.broadcast %87 : vector<1x64xf32> to vector<128x64xf32>
    %89 = arith.addf %86, %88 : vector<128x64xf32>
    %cst_55 = arith.constant 0.000000e+00 : f32
    %90 = vector.broadcast %cst_55 : f32 to vector<128x64xf32>
    %91 = arith.maximumf %89, %90 : vector<128x64xf32>
    %cst_56 = arith.constant 0.000000e+00 : f32
    %92 = vector.broadcast %cst_56 : f32 to vector<128x64xf32>
    %c9_i32_57 = arith.constant 9 : i32
    %93 = tpu.dynamic_rotate %91 by %c9_i32_57 dim 0 : vector<128x64xf32>, i32 -> vector<128x64xf32>
    %c0_58 = arith.constant 0 : index
    %c0_59 = arith.constant 0 : index
    %c0_60 = arith.constant 0 : index
    %94 = vector.load %arg3[%c0_58, %c0_59, %c0_60] : memref<9x128x1xf32, #tpu.memory_space<vmem>>, vector<1x128x1xf32>
    %95 = vector.shape_cast %94 : vector<1x128x1xf32> to vector<128x1xf32>
    %96 = vector.broadcast %95 : vector<128x1xf32> to vector<128x64xf32>
    %97 = arith.mulf %93, %96 : vector<128x64xf32>
    %98 = arith.truncf %97 : vector<128x64xf32> to vector<128x64xbf16>
    %c0_61 = arith.constant 0 : index
    %c0_62 = arith.constant 0 : index
    %c0_63 = arith.constant 0 : index
    %99 = vector.load %arg6[%c0_61, %c0_62, %c0_63] : memref<9x64x64xbf16, #tpu.memory_space<vmem>>, vector<1x64x64xbf16>
    %100 = vector.shape_cast %99 : vector<1x64x64xbf16> to vector<64x64xbf16>
    %cst_64 = arith.constant dense<0.000000e+00> : vector<128x64xf32>
    %101 = tpu.matmul %98, %100, %cst_64 {dimension_numbers = #tpu.dot_dimension_numbers<[1], [0], [0], [1], [0, 0, 1, 1], [], []>} : vector<128x64xbf16>, vector<64x64xbf16>, vector<128x64xf32> -> vector<128x64xf32>
    %102 = arith.addf %92, %101 : vector<128x64xf32>
    %c8_i32_65 = arith.constant 8 : i32
    %103 = tpu.dynamic_rotate %91 by %c8_i32_65 dim 0 : vector<128x64xf32>, i32 -> vector<128x64xf32>
    %c1_66 = arith.constant 1 : index
    %c0_67 = arith.constant 0 : index
    %c0_68 = arith.constant 0 : index
    %104 = vector.load %arg3[%c1_66, %c0_67, %c0_68] : memref<9x128x1xf32, #tpu.memory_space<vmem>>, vector<1x128x1xf32>
    %105 = vector.shape_cast %104 : vector<1x128x1xf32> to vector<128x1xf32>
    %106 = vector.broadcast %105 : vector<128x1xf32> to vector<128x64xf32>
    %107 = arith.mulf %103, %106 : vector<128x64xf32>
    %108 = arith.truncf %107 : vector<128x64xf32> to vector<128x64xbf16>
    %c1_69 = arith.constant 1 : index
    %c0_70 = arith.constant 0 : index
    %c0_71 = arith.constant 0 : index
    %109 = vector.load %arg6[%c1_69, %c0_70, %c0_71] : memref<9x64x64xbf16, #tpu.memory_space<vmem>>, vector<1x64x64xbf16>
    %110 = vector.shape_cast %109 : vector<1x64x64xbf16> to vector<64x64xbf16>
    %cst_72 = arith.constant dense<0.000000e+00> : vector<128x64xf32>
    %111 = tpu.matmul %108, %110, %cst_72 {dimension_numbers = #tpu.dot_dimension_numbers<[1], [0], [0], [1], [0, 0, 1, 1], [], []>} : vector<128x64xbf16>, vector<64x64xbf16>, vector<128x64xf32> -> vector<128x64xf32>
    %112 = arith.addf %102, %111 : vector<128x64xf32>
    %c7_i32_73 = arith.constant 7 : i32
    %113 = tpu.dynamic_rotate %91 by %c7_i32_73 dim 0 : vector<128x64xf32>, i32 -> vector<128x64xf32>
    %c2_74 = arith.constant 2 : index
    %c0_75 = arith.constant 0 : index
    %c0_76 = arith.constant 0 : index
    %114 = vector.load %arg3[%c2_74, %c0_75, %c0_76] : memref<9x128x1xf32, #tpu.memory_space<vmem>>, vector<1x128x1xf32>
    %115 = vector.shape_cast %114 : vector<1x128x1xf32> to vector<128x1xf32>
    %116 = vector.broadcast %115 : vector<128x1xf32> to vector<128x64xf32>
    %117 = arith.mulf %113, %116 : vector<128x64xf32>
    %118 = arith.truncf %117 : vector<128x64xf32> to vector<128x64xbf16>
    %c2_77 = arith.constant 2 : index
    %c0_78 = arith.constant 0 : index
    %c0_79 = arith.constant 0 : index
    %119 = vector.load %arg6[%c2_77, %c0_78, %c0_79] : memref<9x64x64xbf16, #tpu.memory_space<vmem>>, vector<1x64x64xbf16>
    %120 = vector.shape_cast %119 : vector<1x64x64xbf16> to vector<64x64xbf16>
    %cst_80 = arith.constant dense<0.000000e+00> : vector<128x64xf32>
    %121 = tpu.matmul %118, %120, %cst_80 {dimension_numbers = #tpu.dot_dimension_numbers<[1], [0], [0], [1], [0, 0, 1, 1], [], []>} : vector<128x64xbf16>, vector<64x64xbf16>, vector<128x64xf32> -> vector<128x64xf32>
    %122 = arith.addf %112, %121 : vector<128x64xf32>
    %c1_i32_81 = arith.constant 1 : i32
    %123 = tpu.dynamic_rotate %91 by %c1_i32_81 dim 0 : vector<128x64xf32>, i32 -> vector<128x64xf32>
    %c3_82 = arith.constant 3 : index
    %c0_83 = arith.constant 0 : index
    %c0_84 = arith.constant 0 : index
    %124 = vector.load %arg3[%c3_82, %c0_83, %c0_84] : memref<9x128x1xf32, #tpu.memory_space<vmem>>, vector<1x128x1xf32>
    %125 = vector.shape_cast %124 : vector<1x128x1xf32> to vector<128x1xf32>
    %126 = vector.broadcast %125 : vector<128x1xf32> to vector<128x64xf32>
    %127 = arith.mulf %123, %126 : vector<128x64xf32>
    %128 = arith.truncf %127 : vector<128x64xf32> to vector<128x64xbf16>
    %c3_85 = arith.constant 3 : index
    %c0_86 = arith.constant 0 : index
    %c0_87 = arith.constant 0 : index
    %129 = vector.load %arg6[%c3_85, %c0_86, %c0_87] : memref<9x64x64xbf16, #tpu.memory_space<vmem>>, vector<1x64x64xbf16>
    %130 = vector.shape_cast %129 : vector<1x64x64xbf16> to vector<64x64xbf16>
    %cst_88 = arith.constant dense<0.000000e+00> : vector<128x64xf32>
    %131 = tpu.matmul %128, %130, %cst_88 {dimension_numbers = #tpu.dot_dimension_numbers<[1], [0], [0], [1], [0, 0, 1, 1], [], []>} : vector<128x64xbf16>, vector<64x64xbf16>, vector<128x64xf32> -> vector<128x64xf32>
    %132 = arith.addf %122, %131 : vector<128x64xf32>
    %133 = arith.truncf %91 : vector<128x64xf32> to vector<128x64xbf16>
    %c4_89 = arith.constant 4 : index
    %c0_90 = arith.constant 0 : index
    %c0_91 = arith.constant 0 : index
    %134 = vector.load %arg6[%c4_89, %c0_90, %c0_91] : memref<9x64x64xbf16, #tpu.memory_space<vmem>>, vector<1x64x64xbf16>
    %135 = vector.shape_cast %134 : vector<1x64x64xbf16> to vector<64x64xbf16>
    %cst_92 = arith.constant dense<0.000000e+00> : vector<128x64xf32>
    %136 = tpu.matmul %133, %135, %cst_92 {dimension_numbers = #tpu.dot_dimension_numbers<[1], [0], [0], [1], [0, 0, 1, 1], [], []>} : vector<128x64xbf16>, vector<64x64xbf16>, vector<128x64xf32> -> vector<128x64xf32>
    %137 = arith.addf %132, %136 : vector<128x64xf32>
    %c127_i32_93 = arith.constant 127 : i32
    %138 = tpu.dynamic_rotate %91 by %c127_i32_93 dim 0 : vector<128x64xf32>, i32 -> vector<128x64xf32>
    %c5_94 = arith.constant 5 : index
    %c0_95 = arith.constant 0 : index
    %c0_96 = arith.constant 0 : index
    %139 = vector.load %arg3[%c5_94, %c0_95, %c0_96] : memref<9x128x1xf32, #tpu.memory_space<vmem>>, vector<1x128x1xf32>
    %140 = vector.shape_cast %139 : vector<1x128x1xf32> to vector<128x1xf32>
    %141 = vector.broadcast %140 : vector<128x1xf32> to vector<128x64xf32>
    %142 = arith.mulf %138, %141 : vector<128x64xf32>
    %143 = arith.truncf %142 : vector<128x64xf32> to vector<128x64xbf16>
    %c5_97 = arith.constant 5 : index
    %c0_98 = arith.constant 0 : index
    %c0_99 = arith.constant 0 : index
    %144 = vector.load %arg6[%c5_97, %c0_98, %c0_99] : memref<9x64x64xbf16, #tpu.memory_space<vmem>>, vector<1x64x64xbf16>
    %145 = vector.shape_cast %144 : vector<1x64x64xbf16> to vector<64x64xbf16>
    %cst_100 = arith.constant dense<0.000000e+00> : vector<128x64xf32>
    %146 = tpu.matmul %143, %145, %cst_100 {dimension_numbers = #tpu.dot_dimension_numbers<[1], [0], [0], [1], [0, 0, 1, 1], [], []>} : vector<128x64xbf16>, vector<64x64xbf16>, vector<128x64xf32> -> vector<128x64xf32>
    %147 = arith.addf %137, %146 : vector<128x64xf32>
    %c121_i32_101 = arith.constant 121 : i32
    %148 = tpu.dynamic_rotate %91 by %c121_i32_101 dim 0 : vector<128x64xf32>, i32 -> vector<128x64xf32>
    %c6_102 = arith.constant 6 : index
    %c0_103 = arith.constant 0 : index
    %c0_104 = arith.constant 0 : index
    %149 = vector.load %arg3[%c6_102, %c0_103, %c0_104] : memref<9x128x1xf32, #tpu.memory_space<vmem>>, vector<1x128x1xf32>
    %150 = vector.shape_cast %149 : vector<1x128x1xf32> to vector<128x1xf32>
    %151 = vector.broadcast %150 : vector<128x1xf32> to vector<128x64xf32>
    %152 = arith.mulf %148, %151 : vector<128x64xf32>
    %153 = arith.truncf %152 : vector<128x64xf32> to vector<128x64xbf16>
    %c6_105 = arith.constant 6 : index
    %c0_106 = arith.constant 0 : index
    %c0_107 = arith.constant 0 : index
    %154 = vector.load %arg6[%c6_105, %c0_106, %c0_107] : memref<9x64x64xbf16, #tpu.memory_space<vmem>>, vector<1x64x64xbf16>
    %155 = vector.shape_cast %154 : vector<1x64x64xbf16> to vector<64x64xbf16>
    %cst_108 = arith.constant dense<0.000000e+00> : vector<128x64xf32>
    %156 = tpu.matmul %153, %155, %cst_108 {dimension_numbers = #tpu.dot_dimension_numbers<[1], [0], [0], [1], [0, 0, 1, 1], [], []>} : vector<128x64xbf16>, vector<64x64xbf16>, vector<128x64xf32> -> vector<128x64xf32>
    %157 = arith.addf %147, %156 : vector<128x64xf32>
    %c120_i32_109 = arith.constant 120 : i32
    %158 = tpu.dynamic_rotate %91 by %c120_i32_109 dim 0 : vector<128x64xf32>, i32 -> vector<128x64xf32>
    %c7_110 = arith.constant 7 : index
    %c0_111 = arith.constant 0 : index
    %c0_112 = arith.constant 0 : index
    %159 = vector.load %arg3[%c7_110, %c0_111, %c0_112] : memref<9x128x1xf32, #tpu.memory_space<vmem>>, vector<1x128x1xf32>
    %160 = vector.shape_cast %159 : vector<1x128x1xf32> to vector<128x1xf32>
    %161 = vector.broadcast %160 : vector<128x1xf32> to vector<128x64xf32>
    %162 = arith.mulf %158, %161 : vector<128x64xf32>
    %163 = arith.truncf %162 : vector<128x64xf32> to vector<128x64xbf16>
    %c7_113 = arith.constant 7 : index
    %c0_114 = arith.constant 0 : index
    %c0_115 = arith.constant 0 : index
    %164 = vector.load %arg6[%c7_113, %c0_114, %c0_115] : memref<9x64x64xbf16, #tpu.memory_space<vmem>>, vector<1x64x64xbf16>
    %165 = vector.shape_cast %164 : vector<1x64x64xbf16> to vector<64x64xbf16>
    %cst_116 = arith.constant dense<0.000000e+00> : vector<128x64xf32>
    %166 = tpu.matmul %163, %165, %cst_116 {dimension_numbers = #tpu.dot_dimension_numbers<[1], [0], [0], [1], [0, 0, 1, 1], [], []>} : vector<128x64xbf16>, vector<64x64xbf16>, vector<128x64xf32> -> vector<128x64xf32>
    %167 = arith.addf %157, %166 : vector<128x64xf32>
    %c119_i32_117 = arith.constant 119 : i32
    %168 = tpu.dynamic_rotate %91 by %c119_i32_117 dim 0 : vector<128x64xf32>, i32 -> vector<128x64xf32>
    %c8_118 = arith.constant 8 : index
    %c0_119 = arith.constant 0 : index
    %c0_120 = arith.constant 0 : index
    %169 = vector.load %arg3[%c8_118, %c0_119, %c0_120] : memref<9x128x1xf32, #tpu.memory_space<vmem>>, vector<1x128x1xf32>
    %170 = vector.shape_cast %169 : vector<1x128x1xf32> to vector<128x1xf32>
    %171 = vector.broadcast %170 : vector<128x1xf32> to vector<128x64xf32>
    %172 = arith.mulf %168, %171 : vector<128x64xf32>
    %173 = arith.truncf %172 : vector<128x64xf32> to vector<128x64xbf16>
    %c8_121 = arith.constant 8 : index
    %c0_122 = arith.constant 0 : index
    %c0_123 = arith.constant 0 : index
    %174 = vector.load %arg6[%c8_121, %c0_122, %c0_123] : memref<9x64x64xbf16, #tpu.memory_space<vmem>>, vector<1x64x64xbf16>
    %175 = vector.shape_cast %174 : vector<1x64x64xbf16> to vector<64x64xbf16>
    %cst_124 = arith.constant dense<0.000000e+00> : vector<128x64xf32>
    %176 = tpu.matmul %173, %175, %cst_124 {dimension_numbers = #tpu.dot_dimension_numbers<[1], [0], [0], [1], [0, 0, 1, 1], [], []>} : vector<128x64xbf16>, vector<64x64xbf16>, vector<128x64xf32> -> vector<128x64xf32>
    %177 = arith.addf %167, %176 : vector<128x64xf32>
    %c0_125 = arith.constant 0 : index
    %c0_126 = arith.constant 0 : index
    %178 = vector.load %arg7[%c0_125, %c0_126] : memref<1x64xf32, #tpu.memory_space<vmem>>, vector<1x64xf32>
    %179 = vector.broadcast %178 : vector<1x64xf32> to vector<128x64xf32>
    %180 = arith.addf %177, %179 : vector<128x64xf32>
    %cst_127 = arith.constant 0.000000e+00 : f32
    %181 = vector.broadcast %cst_127 : f32 to vector<128x64xf32>
    %182 = arith.maximumf %180, %181 : vector<128x64xf32>
    %c0_128 = arith.constant 0 : index
    %c0_129 = arith.constant 0 : index
    %183 = vector.load %arg1[%c0_128, %c0_129] : memref<128x1xf32, #tpu.memory_space<vmem>>, vector<128x1xf32>
    %184 = vector.broadcast %183 : vector<128x1xf32> to vector<128x64xf32>
    %185 = arith.mulf %182, %184 : vector<128x64xf32>
    %186 = arith.truncf %185 : vector<128x64xf32> to vector<128x64xbf16>
    %c0_130 = arith.constant 0 : index
    %c0_131 = arith.constant 0 : index
    %187 = vector.load %arg8[%c0_130, %c0_131] : memref<64x128xbf16, #tpu.memory_space<vmem>>, vector<64x128xbf16>
    %cst_132 = arith.constant dense<0.000000e+00> : vector<128x128xf32>
    %188 = tpu.matmul %186, %187, %cst_132 {dimension_numbers = #tpu.dot_dimension_numbers<[1], [0], [0], [1], [0, 0, 1, 1], [], []>} : vector<128x64xbf16>, vector<64x128xbf16>, vector<128x128xf32> -> vector<128x128xf32>
    %c0_133 = arith.constant 0 : index
    %c0_134 = arith.constant 0 : index
    %189 = vector.load %arg9[%c0_133, %c0_134] : memref<1x128xf32, #tpu.memory_space<vmem>>, vector<1x128xf32>
    %190 = vector.broadcast %189 : vector<1x128xf32> to vector<128x128xf32>
    %191 = arith.addf %188, %190 : vector<128x128xf32>
    %cst_135 = arith.constant 0.000000e+00 : f32
    %192 = vector.broadcast %cst_135 : f32 to vector<128x128xf32>
    %193 = arith.maximumf %191, %192 : vector<128x128xf32>
    %c127_i32_136 = arith.constant 127 : i32
    %194 = tpu.dynamic_rotate %193 by %c127_i32_136 dim 0 : vector<128x128xf32>, i32 -> vector<128x128xf32>
    %195 = arith.maximumf %193, %194 : vector<128x128xf32>
    %c120_i32_137 = arith.constant 120 : i32
    %196 = tpu.dynamic_rotate %193 by %c120_i32_137 dim 0 : vector<128x128xf32>, i32 -> vector<128x128xf32>
    %197 = arith.maximumf %195, %196 : vector<128x128xf32>
    %c119_i32_138 = arith.constant 119 : i32
    %198 = tpu.dynamic_rotate %193 by %c119_i32_138 dim 0 : vector<128x128xf32>, i32 -> vector<128x128xf32>
    %199 = arith.maximumf %197, %198 : vector<128x128xf32>
    %c0_139 = arith.constant 0 : index
    %c0_140 = arith.constant 0 : index
    %200 = vector.load %arg10[%c0_139, %c0_140] : memref<32x128xbf16, #tpu.memory_space<vmem>>, vector<32x128xbf16>
    %201 = arith.truncf %199 : vector<128x128xf32> to vector<128x128xbf16>
    %cst_141 = arith.constant dense<0.000000e+00> : vector<32x128xf32>
    %202 = tpu.matmul %200, %201, %cst_141 {dimension_numbers = #tpu.dot_dimension_numbers<[1], [0], [0], [1], [0, 0, 1, 1], [], []>} : vector<32x128xbf16>, vector<128x128xbf16>, vector<32x128xf32> -> vector<32x128xf32>
    %203 = vector.extract_strided_slice %202 {offsets = [0, 0], sizes = [2, 128], strides = [1, 1]} : vector<32x128xf32> to vector<2x128xf32>
    %204 = vector.extract_strided_slice %202 {offsets = [2, 0], sizes = [2, 128], strides = [1, 1]} : vector<32x128xf32> to vector<2x128xf32>
    %205 = vector.extract_strided_slice %202 {offsets = [4, 0], sizes = [2, 128], strides = [1, 1]} : vector<32x128xf32> to vector<2x128xf32>
    %206 = vector.extract_strided_slice %202 {offsets = [6, 0], sizes = [2, 128], strides = [1, 1]} : vector<32x128xf32> to vector<2x128xf32>
    %207 = vector.extract_strided_slice %202 {offsets = [8, 0], sizes = [2, 128], strides = [1, 1]} : vector<32x128xf32> to vector<2x128xf32>
    %208 = vector.extract_strided_slice %202 {offsets = [10, 0], sizes = [2, 128], strides = [1, 1]} : vector<32x128xf32> to vector<2x128xf32>
    %209 = vector.extract_strided_slice %202 {offsets = [12, 0], sizes = [2, 128], strides = [1, 1]} : vector<32x128xf32> to vector<2x128xf32>
    %210 = vector.extract_strided_slice %202 {offsets = [14, 0], sizes = [2, 128], strides = [1, 1]} : vector<32x128xf32> to vector<2x128xf32>
    %211 = vector.extract_strided_slice %202 {offsets = [16, 0], sizes = [2, 128], strides = [1, 1]} : vector<32x128xf32> to vector<2x128xf32>
    %212 = vector.extract_strided_slice %202 {offsets = [18, 0], sizes = [2, 128], strides = [1, 1]} : vector<32x128xf32> to vector<2x128xf32>
    %213 = vector.extract_strided_slice %202 {offsets = [20, 0], sizes = [2, 128], strides = [1, 1]} : vector<32x128xf32> to vector<2x128xf32>
    %214 = vector.extract_strided_slice %202 {offsets = [22, 0], sizes = [2, 128], strides = [1, 1]} : vector<32x128xf32> to vector<2x128xf32>
    %215 = vector.extract_strided_slice %202 {offsets = [24, 0], sizes = [2, 128], strides = [1, 1]} : vector<32x128xf32> to vector<2x128xf32>
    %216 = vector.extract_strided_slice %202 {offsets = [26, 0], sizes = [2, 128], strides = [1, 1]} : vector<32x128xf32> to vector<2x128xf32>
    %217 = vector.extract_strided_slice %202 {offsets = [28, 0], sizes = [2, 128], strides = [1, 1]} : vector<32x128xf32> to vector<2x128xf32>
    %218 = vector.extract_strided_slice %202 {offsets = [30, 0], sizes = [2, 128], strides = [1, 1]} : vector<32x128xf32> to vector<2x128xf32>
    %219 = tpu.concatenate %203, %204, %205, %206, %207, %208, %209, %210, %211, %212, %213, %214, %215, %216, %217, %218 in 1 : vector<2x128xf32>, vector<2x128xf32>, vector<2x128xf32>, vector<2x128xf32>, vector<2x128xf32>, vector<2x128xf32>, vector<2x128xf32>, vector<2x128xf32>, vector<2x128xf32>, vector<2x128xf32>, vector<2x128xf32>, vector<2x128xf32>, vector<2x128xf32>, vector<2x128xf32>, vector<2x128xf32>, vector<2x128xf32> -> vector<2x2048xf32>
    %220 = arith.truncf %219 : vector<2x2048xf32> to vector<2x2048xbf16>
    %c0_142 = arith.constant 0 : index
    %c0_143 = arith.constant 0 : index
    %221 = vector.load %arg11[%c0_142, %c0_143] : memref<2048x128xbf16, #tpu.memory_space<vmem>>, vector<2048x128xbf16>
    %cst_144 = arith.constant dense<0.000000e+00> : vector<2x128xf32>
    %222 = tpu.matmul %220, %221, %cst_144 {dimension_numbers = #tpu.dot_dimension_numbers<[1], [0], [0], [1], [0, 0, 1, 1], [], []>} : vector<2x2048xbf16>, vector<2048x128xbf16>, vector<2x128xf32> -> vector<2x128xf32>
    %c0_145 = arith.constant 0 : index
    %c0_146 = arith.constant 0 : index
    %223 = vector.load %arg12[%c0_145, %c0_146] : memref<1x128xf32, #tpu.memory_space<vmem>>, vector<1x128xf32>
    %224 = vector.broadcast %223 : vector<1x128xf32> to vector<2x128xf32>
    %225 = arith.addf %222, %224 : vector<2x128xf32>
    %cst_147 = arith.constant 0.000000e+00 : f32
    %226 = vector.broadcast %cst_147 : f32 to vector<2x128xf32>
    %227 = arith.maximumf %225, %226 : vector<2x128xf32>
    %228 = arith.truncf %227 : vector<2x128xf32> to vector<2x128xbf16>
    %c0_148 = arith.constant 0 : index
    %c0_149 = arith.constant 0 : index
    %229 = vector.load %arg13[%c0_148, %c0_149] : memref<128x16xbf16, #tpu.memory_space<vmem>>, vector<128x16xbf16>
    %cst_150 = arith.constant dense<0.000000e+00> : vector<2x16xf32>
    %230 = tpu.matmul %228, %229, %cst_150 {dimension_numbers = #tpu.dot_dimension_numbers<[1], [0], [0], [1], [0, 0, 1, 1], [], []>} : vector<2x128xbf16>, vector<128x16xbf16>, vector<2x16xf32> -> vector<2x16xf32>
    %c0_151 = arith.constant 0 : index
    %c0_152 = arith.constant 0 : index
    %231 = vector.load %arg14[%c0_151, %c0_152] : memref<1x16xf32, #tpu.memory_space<vmem>>, vector<1x16xf32>
    %232 = vector.broadcast %231 : vector<1x16xf32> to vector<2x16xf32>
    %233 = arith.addf %230, %232 : vector<2x16xf32>
    %cst_153 = arith.constant dense<0xFF800000> : vector<2xf32>
    %234 = vector.multi_reduction <maximumf>, %233, %cst_153 [1] : vector<2x16xf32> to vector<2xf32>
    %235 = vector.shape_cast %234 : vector<2xf32> to vector<2x1xf32>
    %236 = vector.broadcast %235 : vector<2x1xf32> to vector<2x16xf32>
    %237 = arith.subf %233, %236 : vector<2x16xf32>
    %238 = math.exp %237 : vector<2x16xf32>
    %cst_154 = arith.constant dense<0.000000e+00> : vector<2xf32>
    %239 = vector.multi_reduction <add>, %238, %cst_154 [1] : vector<2x16xf32> to vector<2xf32>
    %240 = vector.shape_cast %239 : vector<2xf32> to vector<2x1xf32>
    %241 = math.log %240 : vector<2x1xf32>
    %242 = arith.addf %235, %241 : vector<2x1xf32>
    %243 = vector.broadcast %242 : vector<2x1xf32> to vector<2x16xf32>
    %244 = arith.subf %233, %243 : vector<2x16xf32>
    %cst_155 = arith.constant dense<0xFF800000> : vector<2xf32>
    %245 = vector.multi_reduction <maximumf>, %244, %cst_155 [1] : vector<2x16xf32> to vector<2xf32>
    %246 = vector.shape_cast %245 : vector<2xf32> to vector<2x1xf32>
    %247 = tpu.iota {dimensions = array<i32: 1>} : vector<2x16xi32>
    %248 = vector.broadcast %246 : vector<2x1xf32> to vector<2x16xf32>
    %249 = arith.cmpf oge, %244, %248 : vector<2x16xf32>
    %c16_i32 = arith.constant 16 : i32
    %250 = vector.broadcast %c16_i32 : i32 to vector<2x16xi32>
    %251 = arith.select %249, %247, %250 : vector<2x16xi1>, vector<2x16xi32>
    %cst_156 = arith.constant dense<2147483647> : vector<2xi32>
    %252 = vector.multi_reduction <minsi>, %251, %cst_156 [1] : vector<2x16xi32> to vector<2xi32>
    %253 = vector.shape_cast %252 : vector<2xi32> to vector<2x1xi32>
    %c0_157 = arith.constant 0 : index
    %c0_158 = arith.constant 0 : index
    %254 = vector.load %arg2[%c0_157, %c0_158] : memref<2x1xi32, #tpu.memory_space<vmem>>, vector<2x1xi32>
    %c0_i32 = arith.constant 0 : i32
    %255 = vector.broadcast %c0_i32 : i32 to vector<2x1xi32>
    %256 = arith.cmpi sgt, %254, %255 : vector<2x1xi32>
    %c1_i32_159 = arith.constant 1 : i32
    %257 = vector.broadcast %c1_i32_159 : i32 to vector<2x1xi32>
    %258 = arith.select %256, %253, %257 : vector<2x1xi1>, vector<2x1xi32>
    %c0_160 = arith.constant 0 : index
    %c0_161 = arith.constant 0 : index
    %259 = vector.load %arg15[%c0_160, %c0_161] : memref<2x1xi32, #tpu.memory_space<vmem>>, vector<2x1xi32>
    tpu.vector_store %arg15[%c0_160, %c0_161], %258 {strides = array<i32>} : memref<2x1xi32, #tpu.memory_space<vmem>>, vector<2x1xi32>,
    %cst_162 = arith.constant 0.000000e+00 : f32
    %260 = vector.broadcast %cst_162 : f32 to vector<2x1xf32>
    %261 = arith.subf %260, %246 : vector<2x1xf32>
    %cst_163 = arith.constant 3.330000e+00 : f32
    %262 = vector.broadcast %cst_163 : f32 to vector<2x1xf32>
    %263 = arith.select %256, %261, %262 : vector<2x1xi1>, vector<2x1xf32>
    %c0_164 = arith.constant 0 : index
    %c0_165 = arith.constant 0 : index
    %264 = vector.load %arg16[%c0_164, %c0_165] : memref<2x1xf32, #tpu.memory_space<vmem>>, vector<2x1xf32>
    tpu.vector_store %arg16[%c0_164, %c0_165], %263 {strides = array<i32>} : memref<2x1xf32, #tpu.memory_space<vmem>>, vector<2x1xf32>,
    return
  }
}

</mosaic_0001>

<bundles_post_ra>
// kernel: nmn_forward.1
= control target key start
LH: loop header
LB: loop body
LE: loop exit
PB: predicated region body
PF: predicated region fallthrough
CT: control target
= control target key end

     0   :  { %s11676_s0 = inlined_call_operand.hbm [shape: f32[128,32], index: 0, kind: input, shape index: {}]   ;;  %s11677_s1 = inlined_call_operand.vmem [shape: f32[128,1], index: 1, kind: input, shape index: {}]   ;;  %s11678_s2 = inlined_call_operand.vmem [shape: s32[2,1], index: 2, kind: input, shape index: {}]   ;;  %s11679_s3 = inlined_call_operand.vmem [shape: f32[9,128,1], index: 3, kind: input, shape index: {}]   ;;  %s11680_s4 = inlined_call_operand.hbm [shape: bf16[9,32,64], index: 4, kind: input, shape index: {}]   ;;  %s11681_s5 = inlined_call_operand.vmem [shape: f32[1,64], index: 5, kind: input, shape index: {}]   ;;  %s11682_s6 = inlined_call_operand.vmem [shape: bf16[9,64,64], index: 6, kind: input, shape index: {}]   ;;  %s11683_s7 = inlined_call_operand.vmem [shape: f32[1,64], index: 7, kind: input, shape index: {}]   ;;  %s11684_s8 = inlined_call_operand.vmem [shape: bf16[64,128], index: 8, kind: input, shape index: {}]   ;;  %s11685_s9 = inlined_call_operand.vmem [shape: f32[1,128], index: 9, kind: input, shape index: {}]   ;;  %s11686_s10 = inlined_call_operand.vmem [shape: bf16[32,128], index: 10, kind: input, shape index: {}]   ;;  %s11687_s11 = inlined_call_operand.vmem [shape: bf16[2048,128], index: 11, kind: input, shape index: {}]   ;;  %s11688_s12 = inlined_call_operand.vmem [shape: f32[1,128], index: 12, kind: input, shape index: {}]   ;;  %s11689_s13 = inlined_call_operand.vmem [shape: bf16[128,16], index: 13, kind: input, shape index: {}]   ;;  %s11690_s14 = inlined_call_operand.vmem [shape: f32[1,16], index: 14, kind: input, shape index: {}]   ;;  %s11691_s15 = inlined_call_operand.vmem [shape: s32[2,1], index: 15, kind: output, shape index: {0}]   ;;  %s11692_s16 = inlined_call_operand.vmem [shape: f32[2,1], index: 16, kind: output, shape index: {1}]  }
   0x1   :  { %11917 = sst [smem:[#allocation128_spill]] %s11676_s0 }
   0x2   :  { %11918 = sst [smem:[#allocation129_spill]] %s11691_s15 }
   0x3   :  { %22 = vsyncpa [#allocation3], 0 }
   0x4   :  { %23 = vsyncpa [#allocation5], 0  ;;  %s8274_s21 = smov [#allocation2]   ;;  %s11919_s25 = sld [smem:[#allocation128_spill]] }
   0x5   :  { %s29_s22 = sshll.u32 %s8274_s21, 4  ;;  %s30_s22 = int_to_ptr.vmem [resolvable:$true] %s29_s22 }
   0xa   :  { %s8226_s26 = scalar_lea.hbm %s11919_s25, 2048 }
   0xb   :  { %p8227_p0 = scmp.ne.s32.totalorder %s11919_s25, %s8226_s26  ;;  %p8230_p1 = scmp.lt.u32.totalorder %s8226_s26, %s11919_s25 }
   0xd   :  { %p8232_p2 = pnand %p8230_p1, %p8227_p0 }
   0xf   :  { %8235 = shalt.err (!%p8232_p2)
}
  0x10   :  { %s8236_s0 = scalar_lea.vmem %s30_s22, 2048  ;;  %p8241_p4 = scmp.lt.s32.totalorder %s30_s22, %s30_s22 }
  0x11   :  { %p8237_p3 = scmp.ne.s32.totalorder %s30_s22, %s8236_s0  ;;  %p8242_p5 = scmp.lt.s32.totalorder %s8236_s0, %s8236_s0 }
  0x13   :  { %p8243_p6 = por %p8242_p5, %p8241_p4 }
  0x15   :  { %p8244_p7 = pnand %p8243_p6, %p8237_p3 }
  0x17   :  { %8247 = shalt.err (!%p8244_p7)
}
  0x18   :  { %s8275_s17 = smov 128   ;;  %s8276_s18 = smov 8  }
  0x19   :  { %35 = dma.hbm_to_vmem [thread:$0]  %s11919_s25, 2048, %s30_s22, [#allocation3], %s8275_s17, %s8275_s17, %s8276_s18  }
  0x1a   :  { %s8277_s21 = smov [#allocation4]   ;;  %s8248_s27 = scalar_lea.hbm %s11680_s4, 2304 }
  0x1b   :  { %s47_s23 = sshll.u32 %s8277_s21, 4  ;;  %p8249_p8 = scmp.ne.s32.totalorder %s11680_s4, %s8248_s27  ;;  %s48_s23 = int_to_ptr.vmem [resolvable:$true] %s47_s23 }
  0x1c   :  { %p8252_p9 = scmp.lt.u32.totalorder %s8248_s27, %s11680_s4 }
  0x1e   :  { %p8254_p10 = pnand %p8252_p9, %p8249_p8 }
  0x20   :  { %8257 = shalt.err (!%p8254_p10)
}
  0x21   :  { %s8258_s15 = scalar_lea.vmem %s48_s23, 2304  ;;  %p8263_p12 = scmp.lt.s32.totalorder %s48_s23, %s48_s23 }
  0x22   :  { %p8259_p11 = scmp.ne.s32.totalorder %s48_s23, %s8258_s15  ;;  %p8264_p13 = scmp.lt.s32.totalorder %s8258_s15, %s8258_s15 }
  0x24   :  { %p8265_p0 = por %p8264_p13, %p8263_p12 }
  0x26   :  { %p8266_p1 = pnand %p8265_p0, %p8259_p11 }
  0x28   :  { %8269 = shalt.err (!%p8266_p1)
}
  0x29   :  { %s8278_s22 = smov 64   ;;  %s8279_s25 = smov 4  }
  0x2a   :  { %53 = dma.hbm_to_vmem [thread:$0]  %s11680_s4, 2304, %s48_s23, [#allocation5], %s8278_s22, %s8278_s22, %s8279_s25  }
  0x2b   :  { %8270 = dma.done.wait [#allocation3], 2048  }
  0x2c   :  { %8271 = vsyncadd [#allocation3], 4294965248 }
  0x2d   :  { %8272 = dma.done.wait [#allocation5], 2304  }
  0x2e   :  { %8273 = vsyncadd [#allocation5], 4294964992  ;;  %v8280_v0 = vmov 0   ;;  %v6347_v1 = vld [vmem:[%s11679_s3 + $0x90] sm:$0xff]  ;;  %v6345_v2 = vld [vmem:[%s11679_s3 + $0x80] sm:$0xff]  ;;  %vm394_vm0 = vcmask 261120  }
  0x2f   :  { %8009 = vset.pattern.permute.xlu1 %v8280_v0  ;;  %8008 = vset.pattern.permute.xlu0 %v8280_v0  ;;  %v6348_v3 = vld [vmem:[%s11679_s3 + $0x98] sm:$0xff]  ;;  %v6346_v4 = vld [vmem:[%s11679_s3 + $0x88] sm:$0xff]  ;;  %v6349_v6 = vld [vmem:[%s11679_s3 + $0xa0] sm:$0xff]  ;;  %vm2654_vm3 = vcmask 523264   ;;  %vm8282_vm4 = vmmov 0   ;;  %vm6291_vm5 = vcmask 123904  }
  0x30   :  { %285 = vperm.xlu1 %8009, %v6347_v1   ;;  %275 = vperm.xlu0 %8008, %v6345_v2   ;;  %v6350_v5 = vld [vmem:[%s11679_s3 + $0xa8] sm:$0xff]  ;;  %v6352_v7 = vld [vmem:[%s11679_s3 + $0xb8] sm:$0xff]  ;;  %v6351_v8 = vld [vmem:[%s11679_s3 + $0xb0] sm:$0xff]  ;;  %v11694_v2 = vlaneseq  ;;  %vm6330_vm7 = vcmask 1024  }
  0x31   :  { %v133_v9 = vld [vmem:[%s11679_s3 + $0x8] sm:$0xff]  ;;  %v132_v10 = vld [vmem:[%s11679_s3] sm:$0xff]  ;;  %v135_v11 = vld [vmem:[%s11679_s3 + $0x18] sm:$0xff] }
  0x32   :  { %v134_v12 = vld [vmem:[%s11679_s3 + $0x10] sm:$0xff]  ;;  %v137_v13 = vld [vmem:[%s11679_s3 + $0x28] sm:$0xff]  ;;  %v136_v14 = vld [vmem:[%s11679_s3 + $0x20] sm:$0xff] }
  0x33   :  { %v8010_v15 = vld [vmem:[#allocation4 + $0x10] sm:$0xff]   ;;  %v8011_v16 = vld [vmem:[#allocation4 + $0x18] sm:$0xff]   ;;  %v8440_v19 = vld [vmem:[#allocation4] sm:$0xff]  }
  0x34   :  { %290 = vperm.xlu1 %8009, %v6348_v3   ;;  %280 = vperm.xlu0 %8008, %v6346_v4   ;;  %v139_v17 = vld [vmem:[%s11679_s3 + $0x38] sm:$0xff]  ;;  %v138_v18 = vld [vmem:[%s11679_s3 + $0x30] sm:$0xff]  ;;  %v141_v20 = vld [vmem:[%s11679_s3 + $0x48] sm:$0xff] }
  0x35   :  { %7279 = vmatprep.subr.bf16.mxu0 %v8010_v15  ;;  %7739 = vmatprep.subr.bf16.mxu1 %v8010_v15  ;;  %v140_v21 = vld [vmem:[%s11679_s3 + $0x40] sm:$0xff]  ;;  %v143_v22 = vld [vmem:[%s11679_s3 + $0x58] sm:$0xff]  ;;  %v142_v23 = vld [vmem:[%s11679_s3 + $0x50] sm:$0xff] }
  0x36   :  { %7280 = vmatpush3.bf16.msra.mxu0 %v8010_v15  ;;  %7741 = vmatpush3.bf16.msra.mxu1 %v8010_v15  ;;  %v145_v24 = vld [vmem:[%s11679_s3 + $0x68] sm:$0xff]  ;;  %v144_v25 = vld [vmem:[%s11679_s3 + $0x60] sm:$0xff]  ;;  %v147_v26 = vld [vmem:[%s11679_s3 + $0x78] sm:$0xff] }
  0x37   :  { %7281 = vmatprep.subr.bf16.mxu0 %v8011_v16  ;;  %7740 = vmatprep.subr.bf16.mxu1 %v8011_v16  ;;  %v146_v27 = vld [vmem:[%s11679_s3 + $0x70] sm:$0xff]  ;;  %v6382_v28 = vld [vmem:[%s11679_s3 + $0x108] sm:$0xff]  ;;  %v6381_v29 = vld [vmem:[%s11679_s3 + $0x100] sm:$0xff] }
  0x38   :  { %300 = vperm.xlu1 %8009, %v6350_v5   ;;  %295 = vperm.xlu0 %8008, %v6349_v6   ;;  %v6384_v30 = vld [vmem:[%s11679_s3 + $0x118] sm:$0xff]  ;;  %v6383_v31 = vld [vmem:[%s11679_s3 + $0x110] sm:$0xff]  ;;  %v6386_v32 = vld [vmem:[%s11679_s3 + $0x128] sm:$0xff]  ;;  %v8590_v6 = vshrl.u32 %v11694_v2, 7 }
  0x39   :  { %v6385_v33 = vld [vmem:[%s11679_s3 + $0x120] sm:$0xff]  ;;  %v6388_v34 = vld [vmem:[%s11679_s3 + $0x138] sm:$0xff]  ;;  %v6387_v35 = vld [vmem:[%s11679_s3 + $0x130] sm:$0xff] }
  0x3a   :  { %7282 = vmatpush3.bf16.msra.mxu0 %v8011_v16  ;;  %7742 = vmatpush3.bf16.msra.mxu1 %v8011_v16  ;;  %v6390_v36 = vld [vmem:[%s11679_s3 + $0x148] sm:$0xff]  ;;  %v6389_v37 = vld [vmem:[%s11679_s3 + $0x140] sm:$0xff]  ;;  %v6392_v38 = vld [vmem:[%s11679_s3 + $0x158] sm:$0xff]  ;;  %11920 = vst [vmem:[#allocation8_spill] sm:$0xff] %v8590_v6  ;;  %vm115_vm1 = vcmp.lt.s32.totalorder %v8590_v6, 1  ;;  %vm665_vm2 = vcmp.lt.s32.totalorder %v8590_v6, 7 }
  0x3b   :  { %7299 = vmatprep.subr.bf16.mxu0 %v8440_v19  ;;  %v6391_v39 = vld [vmem:[%s11679_s3 + $0x150] sm:$0xff]  ;;  %v6394_v40 = vld [vmem:[%s11679_s3 + $0x168] sm:$0xff]  ;;  %v6393_v41 = vld [vmem:[%s11679_s3 + $0x160] sm:$0xff] }
  0x3c   :  { %310 = vperm.xlu1 %8009, %v6352_v7   ;;  %305 = vperm.xlu0 %8008, %v6351_v8   ;;  %v6396_v42 = vld [vmem:[%s11679_s3 + $0x178] sm:$0xff]  ;;  %v6395_v43 = vld [vmem:[%s11679_s3 + $0x170] sm:$0xff]  ;;  %v6408_v44 = vld [vmem:[%s11679_s3 + $0x188] sm:$0xff] }
  0x3d   :  { %v6407_v45 = vld [vmem:[%s11679_s3 + $0x180] sm:$0xff]  ;;  %v6410_v46 = vld [vmem:[%s11679_s3 + $0x198] sm:$0xff]  ;;  %v6409_v47 = vld [vmem:[%s11679_s3 + $0x190] sm:$0xff] }
  0x3e   :  { %v6412_v48 = vld [vmem:[%s11679_s3 + $0x1a8] sm:$0xff]  ;;  %v6411_v49 = vld [vmem:[%s11679_s3 + $0x1a0] sm:$0xff]  ;;  %v6414_v50 = vld [vmem:[%s11679_s3 + $0x1b8] sm:$0xff] }
  0x3f   :  { %v6413_v51 = vld [vmem:[%s11679_s3 + $0x1b0] sm:$0xff]  ;;  %v6416_v52 = vld [vmem:[%s11679_s3 + $0x1c8] sm:$0xff]  ;;  %v6415_v53 = vld [vmem:[%s11679_s3 + $0x1c0] sm:$0xff] }
  0x40   :  { %155 = vperm.xlu1 %8009, %v133_v9   ;;  %150 = vperm.xlu0 %8008, %v132_v10   ;;  %v6418_v54 = vld [vmem:[%s11679_s3 + $0x1d8] sm:$0xff]  ;;  %v6417_v55 = vld [vmem:[%s11679_s3 + $0x1d0] sm:$0xff]  ;;  %v6420_v56 = vld [vmem:[%s11679_s3 + $0x1e8] sm:$0xff] }
  0x41   :  { %v6419_v57 = vld [vmem:[%s11679_s3 + $0x1e0] sm:$0xff]  ;;  %v6422_v58 = vld [vmem:[%s11679_s3 + $0x1f8] sm:$0xff]  ;;  %v6421_v59 = vld [vmem:[%s11679_s3 + $0x1f0] sm:$0xff] }
  0x42   :  { %v6444_v60 = vld [vmem:[%s11679_s3 + $0x288] sm:$0xff]  ;;  %v6443_v61 = vld [vmem:[%s11679_s3 + $0x280] sm:$0xff]  ;;  %v6446_v62 = vld [vmem:[%s11679_s3 + $0x298] sm:$0xff] }
  0x43   :  { %v6445_v63 = vld [vmem:[%s11679_s3 + $0x290] sm:$0xff]  ;;  %v6448_v0 = vld [vmem:[%s11679_s3 + $0x2a8] sm:$0xff]  ;;  %v6447_v1 = vld [vmem:[%s11679_s3 + $0x2a0] sm:$0xff] }
  0x44   :  { %165 = vperm.xlu1 %8009, %v135_v11   ;;  %160 = vperm.xlu0 %8008, %v134_v12   ;;  %v6450_v3 = vld [vmem:[%s11679_s3 + $0x2b8] sm:$0xff]  ;;  %v6449_v4 = vld [vmem:[%s11679_s3 + $0x2b0] sm:$0xff]  ;;  %v8587_v5 = vld [vmem:[#allocation2 + $0x8] sm:$0xff] }
  0x45   :  { %v8592_v7 = vld [vmem:[#allocation2 + $0x10] sm:$0xff]  ;;  %v8594_v8 = vld [vmem:[#allocation2 + $0x20] sm:$0xff]  ;;  %v8596_v9 = vld [vmem:[#allocation2 + $0x18] sm:$0xff]  ;;  %v98_v11 = vrot.slane %v8587_v5, 7 }
  0x46   :  { %v8598_v10 = vld [vmem:[#allocation2] sm:$0xff]  ;;  %v6452_v12 = vld [vmem:[%s11679_s3 + $0x2c8] sm:$0xff]  ;;  %v99_v15 = vrot.slane %v8592_v7, 7  ;;  %v100_v16 = vrot.slane %v8596_v9, 7  ;;  %v6480_v2 = vld [vmem:[%s11679_s3 + $0x358] sm:$0xff] }
  0x48   :  { %175 = vperm.xlu1 %8009, %v137_v13   ;;  %170 = vperm.xlu0 %8008, %v136_v14   ;;  %v6451_v13 = vld [vmem:[%s11679_s3 + $0x2c0] sm:$0xff]  ;;  %v97_v14 = vrot.slane %v8598_v10, 7 }
  0x4c   :  { %185 = vperm.xlu1 %8009, %v139_v17   ;;  %180 = vperm.xlu0 %8008, %v138_v18   ;;  %v101_v17 = vrot.slane %v8594_v8, 7  ;;  %v8611_v18 = vld [vmem:[#allocation2 + $0x78] sm:$0xff] }
  0x50   :  { %195 = vperm.xlu1 %8009, %v141_v20   ;;  %190 = vperm.xlu0 %8008, %v140_v21   ;;  %v8613_v20 = vld [vmem:[#allocation2 + $0x30] sm:$0xff]  ;;  %v8615_v21 = vld [vmem:[#allocation2 + $0x28] sm:$0xff] }
  0x54   :  { %205 = vperm.xlu1 %8009, %v143_v22   ;;  %200 = vperm.xlu0 %8008, %v142_v23  }
  0x58   :  { %215 = vperm.xlu1 %8009, %v145_v24   ;;  %210 = vperm.xlu0 %8008, %v144_v25   ;;  %v6454_v24 = vld [vmem:[%s11679_s3 + $0x2d8] sm:$0xff]  ;;  %v6453_v25 = vld [vmem:[%s11679_s3 + $0x2d0] sm:$0xff] }
  0x5c   :  { %225 = vperm.xlu1 %8009, %v147_v26   ;;  %220 = vperm.xlu0 %8008, %v146_v27   ;;  %v112_v26 = vrot.slane %v8611_v18, 7  ;;  %v8628_v27 = vld [vmem:[#allocation2 + $0x70] sm:$0xff] }
  0x60   :  { %706 = vperm.xlu1 %8009, %v6382_v28   ;;  %701 = vperm.xlu0 %8008, %v6381_v29   ;;  %v102_v28 = vrot.slane %v8615_v21, 7  ;;  %v103_v29 = vrot.slane %v8613_v20, 7 }
  0x64   :  { %716 = vperm.xlu1 %8009, %v6384_v30   ;;  %711 = vperm.xlu0 %8008, %v6383_v31  }
  0x68   :  { %726 = vperm.xlu1 %8009, %v6386_v32   ;;  %721 = vperm.xlu0 %8008, %v6385_v33   ;;  %v6456_v33 = vld [vmem:[%s11679_s3 + $0x2e8] sm:$0xff] }
  0x6c   :  { %736 = vperm.xlu1 %8009, %v6388_v34   ;;  %731 = vperm.xlu0 %8008, %v6387_v35   ;;  %v6455_v34 = vld [vmem:[%s11679_s3 + $0x2e0] sm:$0xff] }
  0x70   :  { %746 = vperm.xlu1 %8009, %v6390_v36   ;;  %741 = vperm.xlu0 %8008, %v6389_v37  }
  0x74   :  { %756 = vperm.xlu1 %8009, %v6392_v38   ;;  %751 = vperm.xlu0 %8008, %v6391_v39   ;;  %v11696_v38 = vrot.slane %v8628_v27, 7  ;;  %v8652_v39 = vld [vmem:[#allocation2 + $0x38] sm:$0xff] }
  0x78   :  { %766 = vperm.xlu1 %8009, %v6394_v40   ;;  %761 = vperm.xlu0 %8008, %v6393_v41   ;;  %v8654_v40 = vld [vmem:[#allocation2 + $0x40] sm:$0xff]  ;;  %v8656_v41 = vld [vmem:[#allocation2 + $0x48] sm:$0xff] }
  0x7c   :  { %776 = vperm.xlu1 %8009, %v6396_v42   ;;  %771 = vperm.xlu0 %8008, %v6395_v43   ;;  %v8658_v42 = vld [vmem:[#allocation2 + $0x50] sm:$0xff] }
  0x80   :  { %981 = vperm.xlu1 %8009, %v6408_v44   ;;  %976 = vperm.xlu0 %8008, %v6407_v45  }
  0x84   :  { %991 = vperm.xlu1 %8009, %v6410_v46   ;;  %986 = vperm.xlu0 %8008, %v6409_v47   ;;  %v6458_v47 = vld [vmem:[%s11679_s3 + $0x2f8] sm:$0xff] }
  0x88   :  { %1001 = vperm.xlu1 %8009, %v6412_v48   ;;  %996 = vperm.xlu0 %8008, %v6411_v49   ;;  %v6457_v48 = vld [vmem:[%s11679_s3 + $0x2f0] sm:$0xff]  ;;  %v8013_v49 = vld [vmem:[#allocation4 + $0x8] sm:$0xff]  }
  0x8c   :  { %1011 = vperm.xlu1 %8009, %v6414_v50   ;;  %1006 = vperm.xlu0 %8008, %v6413_v51  }
  0x90   :  { %1021 = vperm.xlu1 %8009, %v6416_v52   ;;  %1016 = vperm.xlu0 %8008, %v6415_v53   ;;  %v104_v52 = vrot.slane %v8652_v39, 7  ;;  %v105_v53 = vrot.slane %v8654_v40, 7 }
  0x94   :  { %1031 = vperm.xlu1 %8009, %v6418_v54   ;;  %1026 = vperm.xlu0 %8008, %v6417_v55   ;;  %v8676_v54 = vld [vmem:[#allocation2 + $0x58] sm:$0xff]  ;;  %v8678_v55 = vld [vmem:[#allocation2 + $0x60] sm:$0xff] }
  0x98   :  { %1041 = vperm.xlu1 %8009, %v6420_v56   ;;  %1036 = vperm.xlu0 %8008, %v6419_v57   ;;  %v106_v57 = vrot.slane %v8656_v41, 7 }
  0x9c   :  { %1051 = vperm.xlu1 %8009, %v6422_v58   ;;  %1046 = vperm.xlu0 %8008, %v6421_v59   ;;  %v107_v58 = vrot.slane %v8658_v42, 7 }
  0xa0   :  { %1418 = vperm.xlu1 %8009, %v6444_v60   ;;  %1413 = vperm.xlu0 %8008, %v6443_v61   ;;  %v6470_v61 = vld [vmem:[%s11679_s3 + $0x308] sm:$0xff] }
  0xa4   :  { %1428 = vperm.xlu1 %8009, %v6446_v62   ;;  %1423 = vperm.xlu0 %8008, %v6445_v63   ;;  %v6469_v62 = vld [vmem:[%s11679_s3 + $0x300] sm:$0xff] }
  0xa8   :  { %1438 = vperm.xlu1 %8009, %v6448_v0   ;;  %1433 = vperm.xlu0 %8008, %v6447_v1   ;;  %v108_v1 = vrot.slane %v8676_v54, 7 }
  0xac   :  { %1448 = vperm.xlu1 %8009, %v6450_v3   ;;  %1443 = vperm.xlu0 %8008, %v6449_v4   ;;  %v11695_v3 = vrot.slane %v8678_v55, 7  ;;  %v8701_v4 = vld [vmem:[#allocation2 + $0x68] sm:$0xff] }
  0xaf   :  { %v8617_v22 = vpop.permute.xlu1 %285  ;;  %v8619_v23 = vpop.permute.xlu0 %275 }
  0xb0   :  { %11921 = vst [vmem:[#allocation9_spill] sm:$0xff] %v8617_v22  ;;  %11922 = vst [vmem:[#allocation10_spill] sm:$0xff] %v8619_v23  ;;  %1458 = vperm.xlu1 %8009, %v6452_v12   ;;  %1453 = vperm.xlu0 %8008, %v6451_v13   ;;  %v355_v30 = vmul.f32 %v8617_v22, %v8587_v5  ;;  %v353_v36 = vmul.f32 %v8619_v23, %v8611_v18 }
  0xb1   :  { %v8708_v12 = vsel %vm115_vm1, %v112_v26, %v97_v14  ;;  %v8714_v13 = vsel %vm115_vm1, %v11696_v38, %v112_v26  ;;  %v6472_v26 = vld [vmem:[%s11679_s3 + $0x318] sm:$0xff] }
  0xb3   :  { %v8635_v31 = vpop.permute.xlu1 %290  ;;  %v8637_v32 = vpop.permute.xlu0 %280 }
  0xb4   :  { %11923 = vst [vmem:[#allocation11_spill] sm:$0xff] %v8635_v31  ;;  %11924 = vst [vmem:[#allocation12_spill] sm:$0xff] %v8637_v32  ;;  %v356_v35 = vmul.f32 %v8635_v31, %v8592_v7  ;;  %1468 = vperm.xlu1 %8009, %v6454_v24   ;;  %1463 = vperm.xlu0 %8008, %v6453_v25   ;;  %v354_v37 = vmul.f32 %v8637_v32, %v8598_v10  ;;  %v4336_v32 = vld [vmem:[%s11677_s1 + $0x10] sm:$0xff]  ;;  %v9427_v31 = vld [vmem:[#allocation2 + $0x58] sm:$0xff] }
  0xb5   :  { %12023 = vst [vmem:[#allocation85_spill] sm:$0xff] %v9427_v31 }
  0xb6   :  { %v370_v43 = vpack.c.bf16 %v356_v35, %v355_v30  ;;  %v369_v44 = vpack.c.bf16 %v354_v37, %v353_v36  ;;  %v6471_v35 = vld [vmem:[%s11679_s3 + $0x310] sm:$0xff]  ;;  %v6478_v37 = vld [vmem:[%s11679_s3 + $0x348] sm:$0xff]  ;;  %v6484_v36 = vld [vmem:[%s11679_s3 + $0x378] sm:$0xff] }
  0xb7   :  { %v8660_v45 = vpop.permute.xlu1 %300  ;;  %v8662_v46 = vpop.permute.xlu0 %295 }
  0xb8   :  { %11925 = vst [vmem:[#allocation13_spill] sm:$0xff] %v8660_v45  ;;  %11926 = vst [vmem:[#allocation14_spill] sm:$0xff] %v8662_v46  ;;  %v358_v50 = vmul.f32 %v8660_v45, %v8594_v8  ;;  %v357_v51 = vmul.f32 %v8662_v46, %v8596_v9  ;;  %1478 = vperm.xlu1 %8009, %v6456_v33   ;;  %1473 = vperm.xlu0 %8008, %v6455_v34   ;;  %v8021_v45 = vld [vmem:[#allocation4 + $0x58] sm:$0xff]  }
  0xb9   :  { %7283 = vmatprep.mubr.msk.bf16.mxu0 %vm394_vm0, %v369_v44  ;;  %v8746_v44 = vsel %vm115_vm1, %v97_v14, %v98_v11  ;;  %v6473_v14 = vld [vmem:[%s11679_s3 + $0x320] sm:$0xff] }
  0xba   :  { %v371_v56 = vpack.c.bf16 %v358_v50, %v357_v51  ;;  %7284 = vmatmul.mubr.msk.bf16.vlgmr.msra.gmra.mrb[0].mxu0 %vm394_vm0, %v370_v43  ;;  %v8738_v43 = vsel %vm115_vm1, %v98_v11, %v99_v15  ;;  %v6474_v11 = vld [vmem:[%s11679_s3 + $0x328] sm:$0xff] }
  0xbb   :  { %7300 = vmatpush3.bf16.msra.mxu0 %v8440_v19  ;;  %v8685_v59 = vpop.permute.xlu1 %310  ;;  %v8687_v60 = vpop.permute.xlu0 %305  ;;  %v8014_v19 = vld [vmem:[#allocation4 + $0x20] sm:$0xff]  }
  0xbc   :  { %11927 = vst [vmem:[#allocation15_spill] sm:$0xff] %v8685_v59  ;;  %11928 = vst [vmem:[#allocation16_spill] sm:$0xff] %v8687_v60  ;;  %v360_v63 = vmul.f32 %v8685_v59, %v8613_v20  ;;  %v359_v0 = vmul.f32 %v8687_v60, %v8615_v21  ;;  %1488 = vperm.xlu1 %8009, %v6458_v47   ;;  %1483 = vperm.xlu0 %8008, %v6457_v48   ;;  %v6535_v60 = vld [vmem:[%s11679_s3 + $0x470] sm:$0xff] }
  0xbd   :  { %7287 = vmatprep.mubr.msk.bf16.mxu0 %vm394_vm0, %v371_v56  ;;  %7301 = vmatprep.subr.bf16.mxu0 %v8013_v49 }
  0xbe   :  { %v372_v24 = vpack.c.bf16 %v360_v63, %v359_v0  ;;  %v8780_v63 = vsel %vm115_vm1, %v99_v15, %v100_v16  ;;  %v6475_v15 = vld [vmem:[%s11679_s3 + $0x330] sm:$0xff] }
  0xbf   :  { %v8716_v25 = vpop.permute.xlu1 %155  ;;  %v8718_v30 = vpop.permute.xlu0 %150  ;;  %7302 = vmatpush3.bf16.msra.mxu0 %v8013_v49 }
  0xc0   :  { %11929 = vst [vmem:[#allocation17_spill] sm:$0xff] %v8716_v25  ;;  %11930 = vst [vmem:[#allocation18_spill] sm:$0xff] %v8718_v30  ;;  %v229_v33 = vmul.f32 %v8716_v25, %v8708_v12  ;;  %v228_v34 = vmul.f32 %v8718_v30, %v8714_v13  ;;  %1693 = vperm.xlu1 %8009, %v6470_v61   ;;  %1688 = vperm.xlu0 %8008, %v6469_v62  }
  0xc1   :  { %7319 = vmatprep.subr.bf16.mxu0 %v8014_v19  ;;  %v8772_v62 = vsel %vm115_vm1, %v100_v16, %v101_v17  ;;  %v8015_v16 = vld [vmem:[#allocation4 + $0x28] sm:$0xff]  }
  0xc2   :  { %v244_v47 = vpack.c.bf16 %v229_v33, %v228_v34  ;;  %7288 = vmatmul.mubr.msk.bf16.gmra.mrb[4].mxu0 %vm394_vm0, %v372_v24  ;;  %v6476_v34 = vld [vmem:[%s11679_s3 + $0x338] sm:$0xff] }
  0xc3   :  { %v8749_v48 = vpop.permute.xlu1 %165  ;;  %v8751_v49 = vpop.permute.xlu0 %160 }
  0xc4   :  { %11931 = vst [vmem:[#allocation19_spill] sm:$0xff] %v8749_v48  ;;  %11932 = vst [vmem:[#allocation20_spill] sm:$0xff] %v8751_v49  ;;  %v231_v50 = vmul.f32 %v8749_v48, %v8738_v43  ;;  %v230_v51 = vmul.f32 %v8751_v49, %v8746_v44  ;;  %1703 = vperm.xlu1 %8009, %v6472_v26   ;;  %1698 = vperm.xlu0 %8008, %v6471_v35   ;;  %v9402_v48 = vld [vmem:[#allocation2 + $0x48] sm:$0xff]  ;;  %v4337_v49 = vld [vmem:[%s11677_s1 + $0x18] sm:$0xff] }
  0xc5   :  { %7303 = vmatprep.mubr.msk.bf16.mxu0 %vm394_vm0, %v244_v47  ;;  %v6479_v47 = vld [vmem:[%s11679_s3 + $0x350] sm:$0xff]  ;;  %12019 = vst [vmem:[#allocation81_spill] sm:$0xff] %v9402_v48 }
  0xc6   :  { %v245_v0 = vpack.c.bf16 %v231_v50, %v230_v51  ;;  %v8804_v51 = vsel %vm115_vm1, %v102_v28, %v103_v29 }
  0xc7   :  { %v8782_v24 = vpop.permute.xlu1 %175  ;;  %v8784_v33 = vpop.permute.xlu0 %170 }
  0xc8   :  { %11933 = vst [vmem:[#allocation21_spill] sm:$0xff] %v8782_v24  ;;  %11934 = vst [vmem:[#allocation22_spill] sm:$0xff] %v8784_v33  ;;  %v233_v26 = vmul.f32 %v8782_v24, %v8772_v62  ;;  %v232_v35 = vmul.f32 %v8784_v33, %v8780_v63  ;;  %1713 = vperm.xlu1 %8009, %v6474_v11   ;;  %1708 = vperm.xlu0 %8008, %v6473_v14   ;;  %v6536_v24 = vld [vmem:[%s11679_s3 + $0x478] sm:$0xff]  ;;  %v9400_v33 = vld [vmem:[#allocation2 + $0x40] sm:$0xff] }
  0xc9   :  { %v8812_v11 = vsel %vm115_vm1, %v101_v17, %v102_v28  ;;  %12018 = vst [vmem:[#allocation80_spill] sm:$0xff] %v9400_v33  ;;  %v1236_v46 = vpack.c.bf16 %v9402_v48, %v9400_v33  ;;  %v4341_v48 = vld [vmem:[%s11677_s1 + $0x38] sm:$0xff]  ;;  %v9463_v33 = vld [vmem:[#allocation2 + $0x70] sm:$0xff] }
  0xca   :  { %v246_v14 = vpack.c.bf16 %v233_v26, %v232_v35  ;;  %7304 = vmatmul.mubr.msk.bf16.vlgmr.msra.gmra.mrb[0].mxu0 %vm394_vm0, %v245_v0  ;;  %v8831_v0 = vld [vmem:[#allocation4 + $0x30] sm:$0xff]  }
  0xcb   :  { %7320 = vmatpush3.bf16.msra.mxu0 %v8014_v19  ;;  %v8817_v50 = vpop.permute.xlu1 %185  ;;  %v8819_v61 = vpop.permute.xlu0 %180  ;;  %v6477_v19 = vld [vmem:[%s11679_s3 + $0x340] sm:$0xff] }
  0xcc   :  { %11935 = vst [vmem:[#allocation23_spill] sm:$0xff] %v8817_v50  ;;  %11936 = vst [vmem:[#allocation24_spill] sm:$0xff] %v8819_v61  ;;  %v235_v17 = vmul.f32 %v8817_v50, %v8804_v51  ;;  %v234_v28 = vmul.f32 %v8819_v61, %v8812_v11  ;;  %1723 = vperm.xlu1 %8009, %v6476_v34   ;;  %1718 = vperm.xlu0 %8008, %v6475_v15  }
  0xcd   :  { %7307 = vmatprep.mubr.msk.bf16.mxu0 %vm394_vm0, %v246_v14  ;;  %v8842_v34 = vsel %vm115_vm1, %v104_v52, %v105_v53  ;;  %v8850_v15 = vsel %vm115_vm1, %v103_v29, %v104_v52  ;;  %7321 = vmatprep.subr.bf16.mxu0 %v8015_v16  ;;  %v8872_v52 = vsel %vm115_vm1, %v106_v57, %v107_v58 }
  0xce   :  { %v247_v26 = vpack.c.bf16 %v235_v17, %v234_v28 }
  0xcf   :  { %v8852_v35 = vpop.permute.xlu1 %195  ;;  %v8854_v14 = vpop.permute.xlu0 %190  ;;  %7322 = vmatpush3.bf16.msra.mxu0 %v8015_v16  ;;  %v8880_v16 = vsel %vm115_vm1, %v105_v53, %v106_v57  ;;  %v6481_v53 = vld [vmem:[%s11679_s3 + $0x360] sm:$0xff] }
  0xd0   :  { %11937 = vst [vmem:[#allocation25_spill] sm:$0xff] %v8852_v35  ;;  %11938 = vst [vmem:[#allocation26_spill] sm:$0xff] %v8854_v14  ;;  %v237_v56 = vmul.f32 %v8852_v35, %v8842_v34  ;;  %v236_v29 = vmul.f32 %v8854_v14, %v8850_v15  ;;  %1733 = vperm.xlu1 %8009, %v6478_v37   ;;  %1728 = vperm.xlu0 %8008, %v6477_v19   ;;  %v6482_v19 = vld [vmem:[%s11679_s3 + $0x368] sm:$0xff]  ;;  %v11959_v35 = vrot.slane %v8587_v5, 1 }
  0xd1   :  { %7339 = vmatprep.subr.bf16.mxu0 %v8831_v0 }
  0xd2   :  { %v248_v37 = vpack.c.bf16 %v237_v56, %v236_v29  ;;  %7308 = vmatmul.mubr.msk.bf16.gmra.mrb[4].mxu0 %vm394_vm0, %v247_v26  ;;  %v8906_v26 = vsel %vm115_vm1, %v108_v1, %v11695_v3  ;;  %v8914_v29 = vsel %vm115_vm1, %v107_v58, %v108_v1  ;;  %v6483_v3 = vld [vmem:[%s11679_s3 + $0x370] sm:$0xff]  ;;  %v11943_v1 = vrot.slane %v8628_v27, 7 }
  0xd3   :  { %v8885_v17 = vpop.permute.xlu1 %205  ;;  %v8887_v28 = vpop.permute.xlu0 %200 }
  0xd4   :  { %11939 = vst [vmem:[#allocation27_spill] sm:$0xff] %v8885_v17  ;;  %11940 = vst [vmem:[#allocation28_spill] sm:$0xff] %v8887_v28  ;;  %v239_v57 = vmul.f32 %v8885_v17, %v8872_v52  ;;  %v238_v56 = vmul.f32 %v8887_v28, %v8880_v16  ;;  %1743 = vperm.xlu1 %8009, %v6480_v2   ;;  %1738 = vperm.xlu0 %8008, %v6479_v47   ;;  %v11946_v17 = vrot.slane %v8678_v55, 7 }
  0xd5   :  { %7311 = vmatprep.mubr.msk.bf16.mxu0 %vm394_vm0, %v248_v37 }
  0xd6   :  { %v249_v2 = vpack.c.bf16 %v239_v57, %v238_v56  ;;  %v11944_v57 = vrot.slane %v8701_v4, 7 }
  0xd7   :  { %v8916_v47 = vpop.permute.xlu1 %215  ;;  %v8918_v37 = vpop.permute.xlu0 %210 }
  0xd8   :  { %11941 = vst [vmem:[#allocation29_spill] sm:$0xff] %v8916_v47  ;;  %11942 = vst [vmem:[#allocation30_spill] sm:$0xff] %v8918_v37  ;;  %v241_v38 = vmul.f32 %v8916_v47, %v8906_v26  ;;  %v240_v58 = vmul.f32 %v8918_v37, %v8914_v29  ;;  %1753 = vperm.xlu1 %8009, %v6482_v19   ;;  %1748 = vperm.xlu0 %8008, %v6481_v53   ;;  %v11945_v28 = vmov %v11944_v57 }
  0xd9   :  { %v8936_v56 = vsel %vm115_vm1, %v11944_v57, %v11943_v1  ;;  %v8944_v47 = vsel %vm115_vm1, %v11946_v17, %v11945_v28  ;;  %v6496_v1 = vld [vmem:[%s11679_s3 + $0x388] sm:$0xff]  ;;  %v6495_v17 = vld [vmem:[%s11679_s3 + $0x380] sm:$0xff]  ;;  %v11953_v53 = vrot.slane %v8611_v18, 1 }
  0xda   :  { %v250_v25 = vpack.c.bf16 %v241_v38, %v240_v58  ;;  %7312 = vmatmul.mubr.msk.bf16.gmra.mrb[8].mxu0 %vm394_vm0, %v249_v2  ;;  %v11949_v2 = vrot.slane %v8587_v5, 1  ;;  %v11950_v58 = vrot.slane %v8598_v10, 1 }
  0xdb   :  { %v8949_v37 = vpop.permute.xlu1 %225  ;;  %v8951_v30 = vpop.permute.xlu0 %220 }
  0xdc   :  { %11947 = vst [vmem:[#allocation31_spill] sm:$0xff] %v8949_v37  ;;  %11948 = vst [vmem:[#allocation32_spill] sm:$0xff] %v8951_v30  ;;  %v243_v38 = vmul.f32 %v8949_v37, %v8936_v56  ;;  %v242_v28 = vmul.f32 %v8951_v30, %v8944_v47  ;;  %1763 = vperm.xlu1 %8009, %v6484_v36   ;;  %1758 = vperm.xlu0 %8008, %v6483_v3   ;;  %v11952_v19 = vmov %v11950_v58  ;;  %v6498_v30 = vld [vmem:[%s11679_s3 + $0x398] sm:$0xff] }
  0xdd   :  { %7315 = vmatprep.mubr.msk.bf16.mxu0 %vm394_vm0, %v250_v25  ;;  %v8970_v57 = vsel %vm665_vm2, %v11950_v58, %v11949_v2  ;;  %v8978_v37 = vsel %vm665_vm2, %v11953_v53, %v11952_v19  ;;  %v6497_v2 = vld [vmem:[%s11679_s3 + $0x390] sm:$0xff]  ;;  %v11956_v53 = vrot.slane %v8596_v9, 1 }
  0xde   :  { %11951 = vst [vmem:[#allocation33_spill] sm:$0xff] %v8970_v57  ;;  %v251_v36 = vpack.c.bf16 %v243_v38, %v242_v28  ;;  %v11957_v38 = vrot.slane %v8592_v7, 1  ;;  %v6499_v7 = vld [vmem:[%s11679_s3 + $0x3a0] sm:$0xff] }
  0xdf   :  { %v8980_v3 = vpop.permute.xlu1 %706  ;;  %v8982_v25 = vpop.permute.xlu0 %701 }
  0xe0   :  { %11954 = vst [vmem:[#allocation34_spill] sm:$0xff] %v8980_v3  ;;  %11955 = vst [vmem:[#allocation35_spill] sm:$0xff] %v8982_v25  ;;  %v780_v10 = vmul.f32 %v8980_v3, %v8970_v57  ;;  %v779_v19 = vmul.f32 %v8982_v25, %v8978_v37  ;;  %1968 = vperm.xlu1 %8009, %v6496_v1   ;;  %1963 = vperm.xlu0 %8008, %v6495_v17   ;;  %v11958_v58 = vmov %v11957_v38 }
  0xe1   :  { %v9000_v28 = vsel %vm665_vm2, %v11957_v38, %v11956_v53  ;;  %v9008_v3 = vsel %vm665_vm2, %v11959_v35, %v11958_v58  ;;  %v6500_v53 = vld [vmem:[%s11679_s3 + $0x3a8] sm:$0xff]  ;;  %v11966_v58 = vrot.slane %v8596_v9, 1 }
  0xe2   :  { %11960 = vst [vmem:[#allocation36_spill] sm:$0xff] %v9008_v3  ;;  %v795_v23 = vpack.c.bf16 %v780_v10, %v779_v19  ;;  %7316 = vmatmul.mubr.msk.bf16.gmra.mrb[12].mxu0 %vm394_vm0, %v251_v36  ;;  %v11963_v36 = vrot.slane %v8615_v21, 1  ;;  %v11964_v10 = vrot.slane %v8594_v8, 1  ;;  %v8017_v8 = vld [vmem:[#allocation4 + $0x38] sm:$0xff]  }
  0xe3   :  { %v9011_v1 = vpop.permute.xlu1 %716  ;;  %v9013_v17 = vpop.permute.xlu0 %711 }
  0xe4   :  { %11961 = vst [vmem:[#allocation37_spill] sm:$0xff] %v9011_v1  ;;  %11962 = vst [vmem:[#allocation38_spill] sm:$0xff] %v9013_v17  ;;  %v782_v5 = vmul.f32 %v9011_v1, %v9000_v28  ;;  %v781_v35 = vmul.f32 %v9013_v17, %v9008_v3  ;;  %1978 = vperm.xlu1 %8009, %v6498_v30   ;;  %1973 = vperm.xlu0 %8008, %v6497_v2   ;;  %v11965_v38 = vmov %v11964_v10  ;;  %v6502_v1 = vld [vmem:[%s11679_s3 + $0x3b8] sm:$0xff] }
  0xe5   :  { %7323 = vmatprep.mubr.msk.bf16.mxu0 %vm394_vm0, %v795_v23  ;;  %v9032_v19 = vsel %vm665_vm2, %v11964_v10, %v11963_v36  ;;  %v9040_v25 = vsel %vm665_vm2, %v11966_v58, %v11965_v38  ;;  %v6501_v36 = vld [vmem:[%s11679_s3 + $0x3b0] sm:$0xff]  ;;  %v11973_v17 = vrot.slane %v8615_v21, 1  ;;  %v6503_v21 = vld [vmem:[%s11679_s3 + $0x3c0] sm:$0xff] }
  0xe6   :  { %11967 = vst [vmem:[#allocation39_spill] sm:$0xff] %v9040_v25  ;;  %v796_v30 = vpack.c.bf16 %v782_v5, %v781_v35  ;;  %v11970_v5 = vrot.slane %v8652_v39, 1  ;;  %v11971_v35 = vrot.slane %v8613_v20, 1  ;;  %v6504_v20 = vld [vmem:[%s11679_s3 + $0x3c8] sm:$0xff] }
  0xe7   :  { %v9042_v2 = vpop.permute.xlu1 %726  ;;  %v9044_v23 = vpop.permute.xlu0 %721 }
  0xe8   :  { %11968 = vst [vmem:[#allocation40_spill] sm:$0xff] %v9042_v2  ;;  %11969 = vst [vmem:[#allocation41_spill] sm:$0xff] %v9044_v23  ;;  %v784_v9 = vmul.f32 %v9042_v2, %v9032_v19  ;;  %v783_v10 = vmul.f32 %v9044_v23, %v9040_v25  ;;  %1988 = vperm.xlu1 %8009, %v6500_v53   ;;  %1983 = vperm.xlu0 %8008, %v6499_v7   ;;  %v11972_v58 = vmov %v11971_v35 }
  0xe9   :  { %v9062_v38 = vsel %vm665_vm2, %v11971_v35, %v11970_v5  ;;  %v9070_v2 = vsel %vm665_vm2, %v11973_v17, %v11972_v58  ;;  %v659_v53 = vrot.slane %v8658_v42, 1  ;;  %v660_v7 = vrot.slane %v8676_v54, 1  ;;  %v9086_v17 = vld [vmem:[#allocation4 + $0x40] sm:$0xff]  }
  0xea   :  { %11974 = vst [vmem:[#allocation42_spill] sm:$0xff] %v9070_v2  ;;  %v797_v14 = vpack.c.bf16 %v784_v9, %v783_v10  ;;  %7324 = vmatmul.mubr.msk.bf16.vlgmr.msra.gmra.mrb[0].mxu0 %vm394_vm0, %v796_v30  ;;  %v11978_v30 = vrot.slane %v8654_v40, 1  ;;  %v11980_v35 = vrot.slane %v8652_v39, 1  ;;  %v11983_v40 = vrot.slane %v8656_v41, 1 }
  0xeb   :  { %7340 = vmatpush3.bf16.msra.mxu0 %v8831_v0  ;;  %v9076_v23 = vpop.permute.xlu1 %736  ;;  %v9078_v5 = vpop.permute.xlu0 %731  ;;  %v11977_v0 = vrot.slane %v8656_v41, 1  ;;  %v9119_v39 = vsel %vm665_vm2, %v659_v53, %v660_v7 }
  0xec   :  { %11975 = vst [vmem:[#allocation43_spill] sm:$0xff] %v9076_v23  ;;  %11976 = vst [vmem:[#allocation44_spill] sm:$0xff] %v9078_v5  ;;  %v786_v42 = vmul.f32 %v9076_v23, %v9062_v38  ;;  %v785_v54 = vmul.f32 %v9078_v5, %v9070_v2  ;;  %1998 = vperm.xlu1 %8009, %v6502_v1   ;;  %1993 = vperm.xlu0 %8008, %v6501_v36   ;;  %v11979_v10 = vmov %v11978_v30  ;;  %v9355_v5 = vld [vmem:[#allocation2 + $0x18] sm:$0xff] }
  0xed   :  { %7327 = vmatprep.mubr.msk.bf16.mxu0 %vm394_vm0, %v797_v14  ;;  %v9099_v9 = vsel %vm665_vm2, %v11978_v30, %v11977_v0  ;;  %v9107_v58 = vsel %vm665_vm2, %v11980_v35, %v11979_v10  ;;  %7341 = vmatprep.subr.bf16.mxu0 %v8017_v8 }
  0xee   :  { %v798_v1 = vpack.c.bf16 %v786_v42, %v785_v54  ;;  %v9125_v42 = vsel %vm665_vm2, %v11983_v40, %v659_v53  ;;  %v6505_v54 = vld [vmem:[%s11679_s3 + $0x3d0] sm:$0xff]  ;;  %v663_v40 = vrot.slane %v8628_v27, 1 }
  0xef   :  { %v9109_v36 = vpop.permute.xlu1 %746  ;;  %v9111_v14 = vpop.permute.xlu0 %741  ;;  %7342 = vmatpush3.bf16.msra.mxu0 %v8017_v8  ;;  %v6506_v8 = vld [vmem:[%s11679_s3 + $0x3d8] sm:$0xff] }
  0xf0   :  { %11981 = vst [vmem:[#allocation45_spill] sm:$0xff] %v9109_v36  ;;  %11982 = vst [vmem:[#allocation46_spill] sm:$0xff] %v9111_v14  ;;  %v788_v23 = vmul.f32 %v9109_v36, %v9099_v9  ;;  %v787_v0 = vmul.f32 %v9111_v14, %v9107_v58  ;;  %2008 = vperm.xlu1 %8009, %v6504_v20   ;;  %2003 = vperm.xlu0 %8008, %v6503_v21   ;;  %v661_v20 = vrot.slane %v8678_v55, 1  ;;  %v9353_v36 = vld [vmem:[#allocation2 + $0x10] sm:$0xff] }
  0xf1   :  { %v662_v21 = vrot.slane %v8701_v4, 1  ;;  %7359 = vmatprep.subr.bf16.mxu0 %v9086_v17 }
  0xf2   :  { %v799_v30 = vpack.c.bf16 %v788_v23, %v787_v0  ;;  %7328 = vmatmul.mubr.msk.bf16.gmra.mrb[4].mxu0 %vm394_vm0, %v798_v1  ;;  %v9152_v23 = vsel %vm665_vm2, %v660_v7, %v661_v20  ;;  %v6508_v1 = vld [vmem:[%s11679_s3 + $0x3e8] sm:$0xff]  ;;  %v6507_v0 = vld [vmem:[%s11679_s3 + $0x3e0] sm:$0xff] }
  0xf3   :  { %v9137_v41 = vpop.permute.xlu1 %756  ;;  %v9139_v53 = vpop.permute.xlu0 %751  ;;  %v9148_v55 = vsel %vm665_vm2, %v661_v20, %v662_v21  ;;  %v11988_v20 = vrot.slane %v8611_v18, 1  ;;  %v9177_v27 = vsel %vm665_vm2, %v662_v21, %v663_v40 }
  0xf4   :  { %11984 = vst [vmem:[#allocation47_spill] sm:$0xff] %v9137_v41  ;;  %11985 = vst [vmem:[#allocation48_spill] sm:$0xff] %v9139_v53  ;;  %v790_v10 = vmul.f32 %v9137_v41, %v9119_v39  ;;  %v789_v35 = vmul.f32 %v9139_v53, %v9125_v42  ;;  %2018 = vperm.xlu1 %8009, %v6506_v8   ;;  %2013 = vperm.xlu0 %8008, %v6505_v54  }
  0xf5   :  { %7331 = vmatprep.mubr.msk.bf16.mxu0 %vm394_vm0, %v799_v30  ;;  %v9173_v41 = vsel %vm665_vm2, %v663_v40, %v11988_v20  ;;  %v6521_v40 = vld [vmem:[%s11679_s3 + $0x400] sm:$0xff] }
  0xf6   :  { %v800_v8 = vpack.c.bf16 %v790_v10, %v789_v35  ;;  %v6510_v10 = vld [vmem:[%s11679_s3 + $0x3f8] sm:$0xff]  ;;  %v6509_v35 = vld [vmem:[%s11679_s3 + $0x3f0] sm:$0xff] }
  0xf7   :  { %v9161_v54 = vpop.permute.xlu1 %766  ;;  %v9163_v30 = vpop.permute.xlu0 %761 }
  0xf8   :  { %11986 = vst [vmem:[#allocation49_spill] sm:$0xff] %v9161_v54  ;;  %11987 = vst [vmem:[#allocation50_spill] sm:$0xff] %v9163_v30  ;;  %v792_v53 = vmul.f32 %v9161_v54, %v9148_v55  ;;  %v791_v7 = vmul.f32 %v9163_v30, %v9152_v23  ;;  %2028 = vperm.xlu1 %8009, %v6508_v1   ;;  %2023 = vperm.xlu0 %8008, %v6507_v0  }
  0xfa   :  { %v801_v1 = vpack.c.bf16 %v792_v53, %v791_v7  ;;  %7332 = vmatmul.mubr.msk.bf16.gmra.mrb[8].mxu0 %vm394_vm0, %v800_v8  ;;  %v6522_v53 = vld [vmem:[%s11679_s3 + $0x408] sm:$0xff] }
  0xfb   :  { %v9186_v18 = vpop.permute.xlu1 %776  ;;  %v9188_v0 = vpop.permute.xlu0 %771 }
  0xfc   :  { %11989 = vst [vmem:[#allocation51_spill] sm:$0xff] %v9186_v18  ;;  %11990 = vst [vmem:[#allocation52_spill] sm:$0xff] %v9188_v0  ;;  %v794_v20 = vmul.f32 %v9186_v18, %v9173_v41  ;;  %v793_v21 = vmul.f32 %v9188_v0, %v9177_v27  ;;  %2038 = vperm.xlu1 %8009, %v6510_v10   ;;  %2033 = vperm.xlu0 %8008, %v6509_v35   ;;  %v6524_v35 = vld [vmem:[%s11679_s3 + $0x418] sm:$0xff] }
  0xfd   :  { %7335 = vmatprep.mubr.msk.bf16.mxu0 %vm394_vm0, %v801_v1  ;;  %v6523_v1 = vld [vmem:[%s11679_s3 + $0x410] sm:$0xff] }
  0xfe   :  { %v802_v8 = vpack.c.bf16 %v794_v20, %v793_v21 }
  0xff   :  { %v9201_v7 = vpop.permute.xlu1 %981  ;;  %v9203_v54 = vpop.permute.xlu0 %976 }
 0x100   :  { %11991 = vst [vmem:[#allocation53_spill] sm:$0xff] %v9201_v7  ;;  %11992 = vst [vmem:[#allocation54_spill] sm:$0xff] %v9203_v54  ;;  %v1055_v18 = vmul.f32 %v9201_v7, %v8746_v44  ;;  %v1054_v10 = vmul.f32 %v9203_v54, %v8708_v12  ;;  %2243 = vperm.xlu1 %8009, %v6522_v53   ;;  %2238 = vperm.xlu0 %8008, %v6521_v40   ;;  %v6525_v40 = vld [vmem:[%s11679_s3 + $0x420] sm:$0xff] }
 0x102   :  { %v1070_v20 = vpack.c.bf16 %v1055_v18, %v1054_v10  ;;  %7336 = vmatmul.mubr.msk.bf16.gmra.mrb[12].mxu0 %vm394_vm0, %v802_v8  ;;  %v6526_v18 = vld [vmem:[%s11679_s3 + $0x428] sm:$0xff] }
 0x103   :  { %v9216_v21 = vpop.permute.xlu1 %991  ;;  %v9218_v0 = vpop.permute.xlu0 %986 }
 0x104   :  { %11993 = vst [vmem:[#allocation55_spill] sm:$0xff] %v9216_v21  ;;  %11994 = vst [vmem:[#allocation56_spill] sm:$0xff] %v9218_v0  ;;  %v1057_v7 = vmul.f32 %v9216_v21, %v8780_v63  ;;  %v1056_v53 = vmul.f32 %v9218_v0, %v8738_v43  ;;  %2253 = vperm.xlu1 %8009, %v6524_v35   ;;  %2248 = vperm.xlu0 %8008, %v6523_v1   ;;  %v6528_v1 = vld [vmem:[%s11679_s3 + $0x438] sm:$0xff] }
 0x105   :  { %7343 = vmatprep.mubr.msk.bf16.mxu0 %vm394_vm0, %v1070_v20  ;;  %v8019_v20 = vld [vmem:[#allocation4 + $0x48] sm:$0xff]   ;;  %v9392_v0 = vld [vmem:[#allocation2 + $0x38] sm:$0xff] }
 0x106   :  { %v1071_v8 = vpack.c.bf16 %v1057_v7, %v1056_v53  ;;  %v6527_v7 = vld [vmem:[%s11679_s3 + $0x430] sm:$0xff]  ;;  %12015 = vst [vmem:[#allocation77_spill] sm:$0xff] %v9392_v0 }
 0x107   :  { %v9231_v10 = vpop.permute.xlu1 %1001  ;;  %v9233_v54 = vpop.permute.xlu0 %996 }
 0x108   :  { %11995 = vst [vmem:[#allocation57_spill] sm:$0xff] %v9231_v10  ;;  %11996 = vst [vmem:[#allocation58_spill] sm:$0xff] %v9233_v54  ;;  %v1059_v30 = vmul.f32 %v9231_v10, %v8812_v11  ;;  %v1058_v35 = vmul.f32 %v9233_v54, %v8772_v62  ;;  %2263 = vperm.xlu1 %8009, %v6526_v18   ;;  %2258 = vperm.xlu0 %8008, %v6525_v40  }
 0x10a   :  { %v1072_v53 = vpack.c.bf16 %v1059_v30, %v1058_v35  ;;  %7344 = vmatmul.mubr.msk.bf16.vlgmr.msra.gmra.mrb[0].mxu0 %vm394_vm0, %v1071_v8  ;;  %v6354_v30 = vld [vmem:[%s11679_s3 + $0xc8] sm:$0xff]  ;;  %v9262_v8 = vld [vmem:[#allocation4 + $0x50] sm:$0xff]  }
 0x10b   :  { %7360 = vmatpush3.bf16.msra.mxu0 %v9086_v17  ;;  %v9247_v10 = vpop.permute.xlu1 %1011  ;;  %v9249_v14 = vpop.permute.xlu0 %1006  ;;  %v6353_v17 = vld [vmem:[%s11679_s3 + $0xc0] sm:$0xff] }
 0x10c   :  { %11997 = vst [vmem:[#allocation59_spill] sm:$0xff] %v9247_v10  ;;  %11998 = vst [vmem:[#allocation60_spill] sm:$0xff] %v9249_v14  ;;  %v1061_v18 = vmul.f32 %v9247_v10, %v8850_v15  ;;  %v1060_v40 = vmul.f32 %v9249_v14, %v8804_v51  ;;  %2273 = vperm.xlu1 %8009, %v6528_v1   ;;  %2268 = vperm.xlu0 %8008, %v6527_v7  }
 0x10d   :  { %7347 = vmatprep.mubr.msk.bf16.mxu0 %vm394_vm0, %v1072_v53  ;;  %7361 = vmatprep.subr.bf16.mxu0 %v8019_v20  ;;  %v6530_v53 = vld [vmem:[%s11679_s3 + $0x448] sm:$0xff] }
 0x10e   :  { %v1073_v35 = vpack.c.bf16 %v1061_v18, %v1060_v40  ;;  %v6529_v18 = vld [vmem:[%s11679_s3 + $0x440] sm:$0xff] }
 0x10f   :  { %v9264_v10 = vpop.permute.xlu1 %1021  ;;  %v9266_v54 = vpop.permute.xlu0 %1016  ;;  %7362 = vmatpush3.bf16.msra.mxu0 %v8019_v20 }
 0x110   :  { %11999 = vst [vmem:[#allocation61_spill] sm:$0xff] %v9264_v10  ;;  %12000 = vst [vmem:[#allocation62_spill] sm:$0xff] %v9266_v54  ;;  %v1063_v1 = vmul.f32 %v9264_v10, %v8880_v16  ;;  %v1062_v7 = vmul.f32 %v9266_v54, %v8842_v34  ;;  %320 = vperm.xlu1 %8009, %v6354_v30   ;;  %315 = vperm.xlu0 %8008, %v6353_v17  }
 0x111   :  { %7379 = vmatprep.subr.bf16.mxu0 %v9262_v8 }
 0x112   :  { %v1074_v40 = vpack.c.bf16 %v1063_v1, %v1062_v7  ;;  %7348 = vmatmul.mubr.msk.bf16.gmra.mrb[4].mxu0 %vm394_vm0, %v1073_v35  ;;  %v6356_v1 = vld [vmem:[%s11679_s3 + $0xd8] sm:$0xff]  ;;  %v6355_v35 = vld [vmem:[%s11679_s3 + $0xd0] sm:$0xff] }
 0x113   :  { %v9280_v20 = vpop.permute.xlu1 %1031  ;;  %v9282_v10 = vpop.permute.xlu0 %1026 }
 0x114   :  { %12001 = vst [vmem:[#allocation63_spill] sm:$0xff] %v9280_v20  ;;  %12002 = vst [vmem:[#allocation64_spill] sm:$0xff] %v9282_v10  ;;  %v1065_v30 = vmul.f32 %v9280_v20, %v8914_v29  ;;  %v1064_v17 = vmul.f32 %v9282_v10, %v8872_v52  ;;  %2283 = vperm.xlu1 %8009, %v6530_v53   ;;  %2278 = vperm.xlu0 %8008, %v6529_v18   ;;  %v6532_v18 = vld [vmem:[%s11679_s3 + $0x458] sm:$0xff] }
 0x115   :  { %7351 = vmatprep.mubr.msk.bf16.mxu0 %vm394_vm0, %v1074_v40  ;;  %v6531_v40 = vld [vmem:[%s11679_s3 + $0x450] sm:$0xff] }
 0x116   :  { %v1075_v7 = vpack.c.bf16 %v1065_v30, %v1064_v17 }
 0x117   :  { %v9295_v54 = vpop.permute.xlu1 %1041  ;;  %v9297_v14 = vpop.permute.xlu0 %1036 }
 0x118   :  { %12003 = vst [vmem:[#allocation65_spill] sm:$0xff] %v9295_v54  ;;  %12004 = vst [vmem:[#allocation66_spill] sm:$0xff] %v9297_v14  ;;  %v1067_v20 = vmul.f32 %v9295_v54, %v8944_v47  ;;  %v1066_v53 = vmul.f32 %v9297_v14, %v8906_v26  ;;  %330 = vperm.xlu1 %8009, %v6356_v1   ;;  %325 = vperm.xlu0 %8008, %v6355_v35   ;;  %v6357_v35 = vld [vmem:[%s11679_s3 + $0xe0] sm:$0xff] }
 0x11a   :  { %v1076_v30 = vpack.c.bf16 %v1067_v20, %v1066_v53  ;;  %7352 = vmatmul.mubr.msk.bf16.gmra.mrb[8].mxu0 %vm394_vm0, %v1075_v7  ;;  %v6358_v20 = vld [vmem:[%s11679_s3 + $0xe8] sm:$0xff] }
 0x11b   :  { %v9310_v17 = vpop.permute.xlu1 %1051  ;;  %v9312_v10 = vpop.permute.xlu0 %1046 }
 0x11c   :  { %12005 = vst [vmem:[#allocation67_spill] sm:$0xff] %v9310_v17  ;;  %12006 = vst [vmem:[#allocation68_spill] sm:$0xff] %v9312_v10  ;;  %v1069_v54 = vmul.f32 %v9310_v17, %v8714_v13  ;;  %v1068_v1 = vmul.f32 %v9312_v10, %v8936_v56  ;;  %2293 = vperm.xlu1 %8009, %v6532_v18   ;;  %2288 = vperm.xlu0 %8008, %v6531_v40   ;;  %v9329_v17 = vld [vmem:[#allocation2 + $0x8] sm:$0xff]  ;;  %v9331_v10 = vld [vmem:[#allocation2] sm:$0xff] }
 0x11d   :  { %7355 = vmatprep.mubr.msk.bf16.mxu0 %vm394_vm0, %v1076_v30  ;;  %12009 = vst [vmem:[#allocation71_spill] sm:$0xff] %v9331_v10  ;;  %v1232_v18 = vpack.c.bf16 %v9329_v17, %v9331_v10  ;;  %v6534_v40 = vld [vmem:[%s11679_s3 + $0x468] sm:$0xff] }
 0x11e   :  { %v1077_v7 = vpack.c.bf16 %v1069_v54, %v1068_v1  ;;  %v6533_v54 = vld [vmem:[%s11679_s3 + $0x460] sm:$0xff] }
 0x11f   :  { %v9325_v53 = vpop.permute.xlu1 %1418  ;;  %v9327_v14 = vpop.permute.xlu0 %1413 }
 0x120   :  { %12007 = vst [vmem:[#allocation69_spill] sm:$0xff] %v9325_v53  ;;  %12008 = vst [vmem:[#allocation70_spill] sm:$0xff] %v9327_v14  ;;  %340 = vperm.xlu1 %8009, %v6358_v20   ;;  %335 = vperm.xlu0 %8008, %v6357_v35   ;;  %v6360_v20 = vld [vmem:[%s11679_s3 + $0xf8] sm:$0xff]  ;;  %v6359_v35 = vld [vmem:[%s11679_s3 + $0xf0] sm:$0xff] }
 0x122   :  { %7356 = vmatmul.mubr.msk.bf16.gmra.mrb[12].mxu0 %vm394_vm0, %v1077_v7  ;;  %v1233_v7 = vpack.c.bf16 %v9355_v5, %v9353_v36 }
 0x123   :  { %v9342_v30 = vpop.permute.xlu1 %1428  ;;  %v9344_v1 = vpop.permute.xlu0 %1423  ;;  %7363 = vmatprep.mubr.msk.bf16.mxu0 %vm394_vm0, %v1232_v18 }
 0x124   :  { %12010 = vst [vmem:[#allocation72_spill] sm:$0xff] %v9342_v30  ;;  %12011 = vst [vmem:[#allocation73_spill] sm:$0xff] %v9344_v1  ;;  %2303 = vperm.xlu1 %8009, %v6534_v40   ;;  %2298 = vperm.xlu0 %8008, %v6533_v54   ;;  %v9363_v40 = vld [vmem:[#allocation2 + $0x20] sm:$0xff]  ;;  %v9365_v54 = vld [vmem:[#allocation2 + $0x28] sm:$0xff] }
 0x125   :  { %v1234_v61 = vpack.c.bf16 %v9365_v54, %v9363_v40 }
 0x127   :  { %v9359_v50 = vpop.permute.xlu1 %1438  ;;  %v9361_v18 = vpop.permute.xlu0 %1433 }
 0x128   :  { %12012 = vst [vmem:[#allocation74_spill] sm:$0xff] %v9359_v50  ;;  %12013 = vst [vmem:[#allocation75_spill] sm:$0xff] %v9361_v18  ;;  %350 = vperm.xlu1 %8009, %v6360_v20   ;;  %345 = vperm.xlu0 %8008, %v6359_v35   ;;  %v4335_v20 = vld [vmem:[%s11677_s1 + $0x8] sm:$0xff]  ;;  %v4334_v35 = vld [vmem:[%s11677_s1] sm:$0xff] }
 0x12a   :  { %7364 = vmatmul.mubr.msk.bf16.vlgmr.msra.gmra.mrb[0].mxu0 %vm394_vm0, %v1233_v7  ;;  %v9388_v7 = vld [vmem:[#allocation4 + $0x60] sm:$0xff]  }
 0x12b   :  { %7380 = vmatpush3.bf16.msra.mxu0 %v9262_v8  ;;  %v9377_v59 = vpop.permute.xlu1 %1448  ;;  %v9379_v21 = vpop.permute.xlu0 %1443  ;;  %7367 = vmatprep.mubr.msk.bf16.mxu0 %vm394_vm0, %v1234_v61  ;;  %v9390_v8 = vld [vmem:[#allocation2 + $0x30] sm:$0xff] }
 0x12c   :  { %12014 = vst [vmem:[#allocation76_spill] sm:$0xff] %v9377_v59  ;;  %2313 = vperm.xlu1 %8009, %v6536_v24   ;;  %2308 = vperm.xlu0 %8008, %v6535_v60   ;;  %v1235_v61 = vpack.c.bf16 %v9392_v0, %v9390_v8  ;;  %v4340_v0 = vld [vmem:[%s11677_s1 + $0x30] sm:$0xff] }
 0x12d   :  { %7381 = vmatprep.subr.bf16.mxu0 %v8021_v45 }
 0x12f   :  { %v9396_v24 = vpop.permute.xlu1 %1458  ;;  %v9398_v60 = vpop.permute.xlu0 %1453  ;;  %7382 = vmatpush3.bf16.msra.mxu0 %v8021_v45  ;;  %v4339_v45 = vld [vmem:[%s11677_s1 + $0x28] sm:$0xff] }
 0x130   :  { %12016 = vst [vmem:[#allocation78_spill] sm:$0xff] %v9396_v24  ;;  %12017 = vst [vmem:[#allocation79_spill] sm:$0xff] %v9398_v60  ;;  %4357 = vperm.xlu1 %8009, %v4335_v20   ;;  %4352 = vperm.xlu0 %8008, %v4334_v35   ;;  %v4338_v20 = vld [vmem:[%s11677_s1 + $0x20] sm:$0xff]  ;;  %v9425_v35 = vld [vmem:[#allocation2 + $0x50] sm:$0xff] }
 0x131   :  { %7399 = vmatprep.subr.bf16.mxu0 %v9388_v7  ;;  %12022 = vst [vmem:[#allocation84_spill] sm:$0xff] %v9425_v35 }
 0x132   :  { %7368 = vmatmul.mubr.msk.bf16.gmra.mrb[4].mxu0 %vm394_vm0, %v1235_v61  ;;  %v1237_v61 = vpack.c.bf16 %v9427_v31, %v9425_v35 }
 0x133   :  { %v9414_v6 = vpop.permute.xlu1 %1468  ;;  %v9416_v22 = vpop.permute.xlu0 %1463  ;;  %7371 = vmatprep.mubr.msk.bf16.mxu0 %vm394_vm0, %v1236_v46 }
 0x134   :  { %12020 = vst [vmem:[#allocation82_spill] sm:$0xff] %v9414_v6  ;;  %12021 = vst [vmem:[#allocation83_spill] sm:$0xff] %v9416_v22  ;;  %4367 = vperm.xlu1 %8009, %v4337_v49   ;;  %4362 = vperm.xlu0 %8008, %v4336_v32   ;;  %v9435_v32 = vld [vmem:[#allocation2 + $0x60] sm:$0xff] }
 0x135   :  { %12026 = vst [vmem:[#allocation88_spill] sm:$0xff] %v9435_v32  ;;  %v1238_v49 = vpack.c.bf16 %v8701_v4, %v9435_v32  ;;  %v1492_v4 = vmul.f32 %v9325_v53, %v9008_v3  ;;  %v9461_v32 = vld [vmem:[#allocation2 + $0x78] sm:$0xff] }
 0x136   :  { %12029 = vst [vmem:[#allocation91_spill] sm:$0xff] %v9461_v32 }
 0x137   :  { %v9431_v10 = vpop.permute.xlu1 %1478  ;;  %v9433_v46 = vpop.permute.xlu0 %1473 }
 0x138   :  { %12024 = vst [vmem:[#allocation86_spill] sm:$0xff] %v9431_v10  ;;  %12025 = vst [vmem:[#allocation87_spill] sm:$0xff] %v9433_v46  ;;  %4377 = vperm.xlu1 %8009, %v4339_v45   ;;  %4372 = vperm.xlu0 %8008, %v4338_v20   ;;  %v1491_v45 = vmul.f32 %v9327_v14, %v8970_v57  ;;  %v4343_v20 = vld [vmem:[%s11677_s1 + $0x48] sm:$0xff]  ;;  %v4345_v14 = vld [vmem:[%s11677_s1 + $0x58] sm:$0xff] }
 0x139   :  { %v4344_v57 = vld [vmem:[%s11677_s1 + $0x50] sm:$0xff] }
 0x13a   :  { %7372 = vmatmul.mubr.msk.bf16.gmra.mrb[8].mxu0 %vm394_vm0, %v1237_v61  ;;  %v4342_v61 = vld [vmem:[%s11677_s1 + $0x40] sm:$0xff]  ;;  %v1507_v53 = vpack.c.bf16 %v1492_v4, %v1491_v45  ;;  %v1493_v4 = vmul.f32 %v9344_v1, %v9000_v28  ;;  %v1496_v45 = vmul.f32 %v9359_v50, %v9070_v2  ;;  %v4349_v50 = vld [vmem:[%s11677_s1 + $0x78] sm:$0xff]  ;;  %v8023_v1 = vld [vmem:[#allocation4 + $0x68] sm:$0xff]  }
 0x13b   :  { %v9446_v31 = vpop.permute.xlu1 %1488  ;;  %v9448_v35 = vpop.permute.xlu0 %1483  ;;  %7375 = vmatprep.mubr.msk.bf16.mxu0 %vm394_vm0, %v1238_v49 }
 0x13c   :  { %12027 = vst [vmem:[#allocation89_spill] sm:$0xff] %v9446_v31  ;;  %12028 = vst [vmem:[#allocation90_spill] sm:$0xff] %v9448_v35  ;;  %4387 = vperm.xlu1 %8009, %v4341_v48   ;;  %4382 = vperm.xlu0 %8008, %v4340_v0   ;;  %v1239_v48 = vpack.c.bf16 %v9461_v32, %v9463_v33 }
 0x13f   :  { %v9467_v0 = vpop.permute.xlu1 %1693  ;;  %v9469_v49 = vpop.permute.xlu0 %1688 }
 0x140   :  { %12030 = vst [vmem:[#allocation92_spill] sm:$0xff] %v9467_v0  ;;  %12031 = vst [vmem:[#allocation93_spill] sm:$0xff] %v9469_v49  ;;  %4397 = vperm.xlu1 %8009, %v4343_v20   ;;  %4392 = vperm.xlu0 %8008, %v4342_v61   ;;  %v1494_v20 = vmul.f32 %v9342_v30, %v9040_v25  ;;  %v1495_v61 = vmul.f32 %v9361_v18, %v9032_v19  ;;  %v4348_v18 = vld [vmem:[%s11677_s1 + $0x70] sm:$0xff] }
 0x142   :  { %7376 = vmatmul.mubr.msk.bf16.gmra.mrb[12].mxu0 %vm394_vm0, %v1239_v48  ;;  %v4346_v48 = vld [vmem:[%s11677_s1 + $0x60] sm:$0xff] }
 0x143   :  { %7383 = vmatprep.mubr.msk.bf16.mxu0 %vm394_vm0, %v1507_v53  ;;  %v9479_v3 = vpop.permute.xlu1 %1703  ;;  %v9481_v32 = vpop.permute.xlu0 %1698  ;;  %v4347_v53 = vld [vmem:[%s11677_s1 + $0x68] sm:$0xff] }
 0x144   :  { %4407 = vperm.xlu1 %8009, %v4345_v14   ;;  %4402 = vperm.xlu0 %8008, %v4344_v57   ;;  %v1508_v14 = vpack.c.bf16 %v1494_v20, %v1493_v4  ;;  %v1509_v57 = vpack.c.bf16 %v1496_v45, %v1495_v61  ;;  %v1498_v4 = vmul.f32 %v9377_v59, %v9107_v58  ;;  %v8024_v61 = vld [vmem:[#allocation4 + $0x70] sm:$0xff]  }
 0x145   :  { %v1497_v45 = vmul.f32 %v9379_v21, %v9062_v38 }
 0x147   :  { %v9497_v30 = vpop.permute.xlu1 %1713  ;;  %v9499_v25 = vpop.permute.xlu0 %1708 }
 0x148   :  { %12032 = vst [vmem:[#allocation94_spill] sm:$0xff] %v9497_v30  ;;  %12033 = vst [vmem:[#allocation95_spill] sm:$0xff] %v9499_v25  ;;  %4417 = vperm.xlu1 %8009, %v4347_v53   ;;  %4412 = vperm.xlu0 %8008, %v4346_v48   ;;  %v1500_v53 = vmul.f32 %v9396_v24, %v9125_v42  ;;  %v1499_v48 = vmul.f32 %v9398_v60, %v9099_v9 }
 0x149   :  { %v1502_v24 = vmul.f32 %v9414_v6, %v9152_v23  ;;  %v1501_v60 = vmul.f32 %v9416_v22, %v9119_v39  ;;  %v1767_v22 = vmul.f32 %v9467_v0, %v8738_v43  ;;  %v1769_v43 = vmul.f32 %v9479_v3, %v8772_v62 }
 0x14a   :  { %7384 = vmatmul.mubr.msk.bf16.vlgmr.msra.gmra.mrb[0].mxu0 %vm394_vm0, %v1508_v14  ;;  %v1511_v59 = vpack.c.bf16 %v1500_v53, %v1499_v48  ;;  %v1771_v0 = vmul.f32 %v9497_v30, %v8804_v51  ;;  %v8026_v30 = vld [vmem:[#allocation4 + $0x80] sm:$0xff]  }
 0x14b   :  { %7387 = vmatprep.mubr.msk.bf16.mxu0 %vm394_vm0, %v1509_v57  ;;  %7400 = vmatpush3.bf16.msra.mxu0 %v9388_v7  ;;  %v9510_v2 = vpop.permute.xlu1 %1723  ;;  %v9512_v20 = vpop.permute.xlu0 %1718  ;;  %v1510_v57 = vpack.c.bf16 %v1498_v4, %v1497_v45  ;;  %v1503_v4 = vmul.f32 %v9433_v46, %v9148_v55  ;;  %v1505_v46 = vmul.f32 %v9448_v35, %v9173_v41  ;;  %v12144_v35 = vld [vmem:[#allocation29_spill] sm:$0xff] }
 0x14c   :  { %12034 = vst [vmem:[#allocation96_spill] sm:$0xff] %v9510_v2  ;;  %12035 = vst [vmem:[#allocation97_spill] sm:$0xff] %v9512_v20  ;;  %4427 = vperm.xlu1 %8009, %v4349_v50   ;;  %4422 = vperm.xlu0 %8008, %v4348_v18   ;;  %v1773_v51 = vmul.f32 %v9510_v2, %v8842_v34 }
 0x14d   :  { %7401 = vmatprep.subr.bf16.mxu0 %v8023_v1 }
 0x14f   :  { %v9522_v7 = vpop.permute.xlu1 %1733  ;;  %v9524_v14 = vpop.permute.xlu0 %1728  ;;  %7402 = vmatpush3.bf16.msra.mxu0 %v8023_v1  ;;  %v1504_v1 = vmul.f32 %v9431_v10, %v9177_v27  ;;  %v1506_v10 = vmul.f32 %v9446_v31, %v8978_v37 }
 0x150   :  { %12036 = vst [vmem:[#allocation98_spill] sm:$0xff] %v9522_v7  ;;  %12037 = vst [vmem:[#allocation99_spill] sm:$0xff] %v9524_v14  ;;  %7419 = vmatprep.subr.bf16.mxu0 %v8024_v61 }
 0x151   :  { %v1513_v48 = vpack.c.bf16 %v1504_v1, %v1503_v4  ;;  %v1514_v4 = vpack.c.bf16 %v1506_v10, %v1505_v46 }
 0x152   :  { %7388 = vmatmul.mubr.msk.bf16.gmra.mrb[4].mxu0 %vm394_vm0, %v1510_v57 }
 0x153   :  { %7391 = vmatprep.mubr.msk.bf16.mxu0 %vm394_vm0, %v1511_v59  ;;  %v9528_v50 = vpop.permute.xlu1 %1743  ;;  %v9530_v18 = vpop.permute.xlu0 %1738  ;;  %v1512_v59 = vpack.c.bf16 %v1502_v24, %v1501_v60  ;;  %v1766_v24 = vmul.f32 %v9469_v49, %v8746_v44  ;;  %v1768_v44 = vmul.f32 %v9481_v32, %v8780_v63 }
 0x154   :  { %12038 = vst [vmem:[#allocation100_spill] sm:$0xff] %v9528_v50  ;;  %12039 = vst [vmem:[#allocation101_spill] sm:$0xff] %v9530_v18 }
 0x157   :  { %v9540_v45 = vpop.permute.xlu1 %1753  ;;  %v9542_v53 = vpop.permute.xlu0 %1748 }
 0x158   :  { %12040 = vst [vmem:[#allocation102_spill] sm:$0xff] %v9540_v45  ;;  %12041 = vst [vmem:[#allocation103_spill] sm:$0xff] %v9542_v53 }
 0x15a   :  { %7392 = vmatmul.mubr.msk.bf16.gmra.mrb[8].mxu0 %vm394_vm0, %v1512_v59  ;;  %v1782_v59 = vpack.c.bf16 %v1767_v22, %v1766_v24  ;;  %v1770_v22 = vmul.f32 %v9499_v25, %v8812_v11  ;;  %v1783_v24 = vpack.c.bf16 %v1769_v43, %v1768_v44  ;;  %v1772_v11 = vmul.f32 %v9512_v20, %v8850_v15  ;;  %v12134_v25 = vld [vmem:[#allocation17_spill] sm:$0xff] }
 0x15b   :  { %7395 = vmatprep.mubr.msk.bf16.mxu0 %vm394_vm0, %v1513_v48  ;;  %v9546_v57 = vpop.permute.xlu1 %1763  ;;  %v9548_v6 = vpop.permute.xlu0 %1758  ;;  %v1774_v43 = vmul.f32 %v9524_v14, %v8880_v16  ;;  %v1776_v16 = vmul.f32 %v9530_v18, %v8914_v29  ;;  %v12112_v14 = vld [vmem:[#allocation16_spill] sm:$0xff] }
 0x15c   :  { %12042 = vst [vmem:[#allocation104_spill] sm:$0xff] %v9546_v57  ;;  %12043 = vst [vmem:[#allocation105_spill] sm:$0xff] %v9548_v6  ;;  %v1781_v29 = vmul.f32 %v9546_v57, %v8708_v12 }
 0x15f   :  { %v9558_v60 = vpop.permute.xlu1 %1968  ;;  %v9560_v1 = vpop.permute.xlu0 %1963 }
 0x160   :  { %12044 = vst [vmem:[#allocation106_spill] sm:$0xff] %v9558_v60  ;;  %12045 = vst [vmem:[#allocation107_spill] sm:$0xff] %v9560_v1 }
 0x162   :  { %7396 = vmatmul.mubr.msk.bf16.gmra.mrb[12].mxu0 %vm394_vm0, %v1514_v4  ;;  %v8025_v4 = vld [vmem:[#allocation4 + $0x78] sm:$0xff]  }
 0x163   :  { %7403 = vmatprep.mubr.msk.bf16.mxu0 %vm394_vm0, %v1782_v59  ;;  %v9564_v48 = vpop.permute.xlu1 %1978  ;;  %v9566_v31 = vpop.permute.xlu0 %1973  ;;  %v1784_v59 = vpack.c.bf16 %v1771_v0, %v1770_v22  ;;  %v1775_v0 = vmul.f32 %v9522_v7, %v8872_v52  ;;  %v1785_v22 = vpack.c.bf16 %v1773_v51, %v1772_v11  ;;  %v1777_v52 = vmul.f32 %v9528_v50, %v8906_v26 }
 0x167   :  { %v9576_v10 = vpop.permute.xlu1 %1988  ;;  %v9578_v46 = vpop.permute.xlu0 %1983 }
 0x168   :  { %12046 = vst [vmem:[#allocation108_spill] sm:$0xff] %v9576_v10  ;;  %12047 = vst [vmem:[#allocation109_spill] sm:$0xff] %v9578_v46 }
 0x16a   :  { %7404 = vmatmul.mubr.msk.bf16.vlgmr.msra.gmra.mrb[0].mxu0 %vm394_vm0, %v1783_v24  ;;  %v1786_v24 = vpack.c.bf16 %v1775_v0, %v1774_v43  ;;  %v1787_v0 = vpack.c.bf16 %v1777_v52, %v1776_v16 }
 0x16b   :  { %7407 = vmatprep.mubr.msk.bf16.mxu0 %vm394_vm0, %v1784_v59  ;;  %7420 = vmatpush3.bf16.msra.mxu0 %v8024_v61  ;;  %v9582_v62 = vpop.permute.xlu1 %1998  ;;  %v9584_v63 = vpop.permute.xlu0 %1993  ;;  %v1778_v59 = vmul.f32 %v9542_v53, %v8944_v47  ;;  %v1780_v47 = vmul.f32 %v9548_v6, %v8714_v13  ;;  %v2044_v13 = vmul.f32 %v9363_v40, %v9564_v48 }
 0x16c   :  { %12048 = vst [vmem:[#allocation110_spill] sm:$0xff] %v9582_v62  ;;  %12049 = vst [vmem:[#allocation111_spill] sm:$0xff] %v9584_v63  ;;  %7421 = vmatprep.subr.bf16.mxu0 %v8025_v4 }
 0x16f   :  { %v9594_v44 = vpop.permute.xlu1 %2008  ;;  %v9596_v61 = vpop.permute.xlu0 %2003  ;;  %7422 = vmatpush3.bf16.msra.mxu0 %v8025_v4  ;;  %v1779_v4 = vmul.f32 %v9540_v45, %v8936_v56  ;;  %v2042_v56 = vmul.f32 %v9353_v36, %v9558_v60  ;;  %v2043_v36 = vmul.f32 %v9355_v5, %v9566_v31  ;;  %v12105_v45 = vld [vmem:[#allocation56_spill] sm:$0xff] }
 0x170   :  { %12050 = vst [vmem:[#allocation112_spill] sm:$0xff] %v9594_v44  ;;  %12051 = vst [vmem:[#allocation113_spill] sm:$0xff] %v9596_v61  ;;  %7439 = vmatprep.subr.bf16.mxu0 %v8026_v30 }
 0x171   :  { %v1788_v43 = vpack.c.bf16 %v1779_v4, %v1778_v59  ;;  %v1789_v4 = vpack.c.bf16 %v1781_v29, %v1780_v47 }
 0x172   :  { %7408 = vmatmul.mubr.msk.bf16.gmra.mrb[4].mxu0 %vm394_vm0, %v1785_v22 }
 0x173   :  { %7411 = vmatprep.mubr.msk.bf16.mxu0 %vm394_vm0, %v1786_v24  ;;  %v9600_v34 = vpop.permute.xlu1 %2018  ;;  %v9602_v15 = vpop.permute.xlu0 %2013  ;;  %v2041_v24 = vmul.f32 %v9329_v17, %v9560_v1  ;;  %v2046_v17 = vmul.f32 %v9390_v8, %v9576_v10  ;;  %v12064_v8 = vld [vmem:[#allocation80_spill] sm:$0xff] }
 0x174   :  { %12052 = vst [vmem:[#allocation114_spill] sm:$0xff] %v9600_v34  ;;  %12053 = vst [vmem:[#allocation115_spill] sm:$0xff] %v9602_v15  ;;  %v12070_v1 = vld [vmem:[#allocation88_spill] sm:$0xff] }
 0x175   :  { %v2057_v59 = vpack.c.bf16 %v2042_v56, %v2041_v24  ;;  %v2058_v56 = vpack.c.bf16 %v2044_v13, %v2043_v36  ;;  %v8027_v24 = vld [vmem:[#allocation4 + $0x88] sm:$0xff]   ;;  %v12066_v13 = vld [vmem:[#allocation84_spill] sm:$0xff] }
 0x176   :  { %v2050_v36 = vmul.f32 %v12066_v13, %v9594_v44 }
 0x177   :  { %v9612_v51 = vpop.permute.xlu1 %2028  ;;  %v9614_v11 = vpop.permute.xlu0 %2023 }
 0x178   :  { %12054 = vst [vmem:[#allocation116_spill] sm:$0xff] %v9612_v51  ;;  %12055 = vst [vmem:[#allocation117_spill] sm:$0xff] %v9614_v11 }
 0x17a   :  { %7412 = vmatmul.mubr.msk.bf16.gmra.mrb[8].mxu0 %vm394_vm0, %v1787_v0 }
 0x17b   :  { %7415 = vmatprep.mubr.msk.bf16.mxu0 %vm394_vm0, %v1788_v43  ;;  %v9618_v26 = vpop.permute.xlu1 %2038  ;;  %v9620_v22 = vpop.permute.xlu0 %2033  ;;  %v2045_v43 = vmul.f32 %v9365_v54, %v9578_v46  ;;  %v12065_v54 = vld [vmem:[#allocation77_spill] sm:$0xff] }
 0x17c   :  { %12056 = vst [vmem:[#allocation118_spill] sm:$0xff] %v9618_v26  ;;  %12057 = vst [vmem:[#allocation119_spill] sm:$0xff] %v9620_v22  ;;  %v2047_v10 = vmul.f32 %v12065_v54, %v9584_v63 }
 0x17f   :  { %v9630_v52 = vpop.permute.xlu1 %2243  ;;  %v9632_v16 = vpop.permute.xlu0 %2238 }
 0x180   :  { %12058 = vst [vmem:[#allocation120_spill] sm:$0xff] %v9630_v52  ;;  %12059 = vst [vmem:[#allocation121_spill] sm:$0xff] %v9632_v16 }
 0x182   :  { %7416 = vmatmul.mubr.msk.bf16.gmra.mrb[12].mxu0 %vm394_vm0, %v1789_v4  ;;  %v2059_v4 = vpack.c.bf16 %v2046_v17, %v2045_v43  ;;  %v12067_v17 = vld [vmem:[#allocation81_spill] sm:$0xff] }
 0x183   :  { %7423 = vmatprep.mubr.msk.bf16.mxu0 %vm394_vm0, %v2057_v59  ;;  %v9636_v12 = vpop.permute.xlu1 %2253  ;;  %v9638_v0 = vpop.permute.xlu0 %2248  ;;  %v2048_v59 = vmul.f32 %v12064_v8, %v9582_v62  ;;  %v2049_v43 = vmul.f32 %v12067_v17, %v9596_v61 }
 0x185   :  { %v2061_v63 = vpack.c.bf16 %v2050_v36, %v2049_v43 }
 0x187   :  { %v9648_v29 = vpop.permute.xlu1 %2263  ;;  %v9650_v47 = vpop.permute.xlu0 %2258 }
 0x188   :  { %12060 = vst [vmem:[#allocation122_spill] sm:$0xff] %v9648_v29  ;;  %12061 = vst [vmem:[#allocation123_spill] sm:$0xff] %v9650_v47 }
 0x18a   :  { %7424 = vmatmul.mubr.msk.bf16.vlgmr.msra.gmra.mrb[0].mxu0 %vm394_vm0, %v2058_v56 }
 0x18b   :  { %7427 = vmatprep.mubr.msk.bf16.mxu0 %vm394_vm0, %v2059_v4  ;;  %7440 = vmatpush3.bf16.msra.mxu0 %v8026_v30  ;;  %v9654_v40 = vpop.permute.xlu1 %2273  ;;  %v9656_v5 = vpop.permute.xlu0 %2268  ;;  %v2060_v4 = vpack.c.bf16 %v2048_v59, %v2047_v10  ;;  %v12071_v10 = vld [vmem:[#allocation85_spill] sm:$0xff] }
 0x18c   :  { %12062 = vst [vmem:[#allocation124_spill] sm:$0xff] %v9654_v40  ;;  %12063 = vst [vmem:[#allocation125_spill] sm:$0xff] %v9656_v5  ;;  %7441 = vmatprep.subr.bf16.mxu0 %v8027_v24  ;;  %v2051_v59 = vmul.f32 %v12071_v10, %v9602_v15 }
 0x18f   :  { %v9666_v56 = vpop.permute.xlu1 %320  ;;  %v9668_v30 = vpop.permute.xlu0 %315  ;;  %7442 = vmatpush3.bf16.msra.mxu0 %v8027_v24  ;;  %v2052_v24 = vmul.f32 %v12070_v1, %v9600_v34 }
 0x190   :  { %v362_v46 = vmul.f32 %v12064_v8, %v9666_v56  ;;  %v361_v62 = vmul.f32 %v12065_v54, %v9668_v30  ;;  %v2054_v8 = vmul.f32 %v9463_v33, %v9612_v51  ;;  %v8225_v54 = vld [vmem:[#allocation2 + $0x68] sm:$0xff] }
 0x191   :  { %v2062_v36 = vpack.c.bf16 %v2052_v24, %v2051_v59  ;;  %v12075_v24 = vld [vmem:[#allocation91_spill] sm:$0xff] }
 0x192   :  { %7428 = vmatmul.mubr.msk.bf16.gmra.mrb[4].mxu0 %vm394_vm0, %v2060_v4  ;;  %v373_v60 = vpack.c.bf16 %v362_v46, %v361_v62  ;;  %v2053_v46 = vmul.f32 %v8225_v54, %v9614_v11  ;;  %v12074_v11 = vld [vmem:[#allocation71_spill] sm:$0xff]  ;;  %v2055_v59 = vmul.f32 %v12075_v24, %v9620_v22 }
 0x193   :  { %7431 = vmatprep.mubr.msk.bf16.mxu0 %vm394_vm0, %v2061_v63  ;;  %v9676_v44 = vpop.permute.xlu1 %2283  ;;  %v9678_v61 = vpop.permute.xlu0 %2278  ;;  %v2056_v57 = vmul.f32 %v12074_v11, %v9618_v26 }
 0x194   :  { %12068 = vst [vmem:[#allocation80_spill] sm:$0xff] %v9676_v44  ;;  %12069 = vst [vmem:[#allocation77_spill] sm:$0xff] %v9678_v61  ;;  %7291 = vmatprep.mubr.msk.bf16.mxu1 %vm394_vm0, %v373_v60  ;;  %v2063_v34 = vpack.c.bf16 %v2054_v8, %v2053_v46 }
 0x197   :  { %v9688_v62 = vpop.permute.xlu1 %330  ;;  %v9690_v63 = vpop.permute.xlu0 %325 }
 0x198   :  { %v364_v43 = vmul.f32 %v12066_v13, %v9688_v62  ;;  %v363_v4 = vmul.f32 %v12067_v17, %v9690_v63  ;;  %v2317_v13 = vmul.f32 %v9630_v52, %v9000_v28  ;;  %v12076_v17 = vld [vmem:[#allocation36_spill] sm:$0xff] }
 0x199   :  { %v2316_v8 = vmul.f32 %v9632_v16, %v12076_v17  ;;  %v2319_v17 = vmul.f32 %v9636_v12, %v9032_v19  ;;  %v12096_v16 = vld [vmem:[#allocation20_spill] sm:$0xff] }
 0x19a   :  { %v374_v15 = vpack.c.bf16 %v364_v43, %v363_v4  ;;  %7432 = vmatmul.mubr.msk.bf16.gmra.mrb[8].mxu0 %vm394_vm0, %v2062_v36  ;;  %v2064_v36 = vpack.c.bf16 %v2056_v57, %v2055_v59  ;;  %v12079_v57 = vld [vmem:[#allocation39_spill] sm:$0xff] }
 0x19b   :  { %7435 = vmatprep.mubr.msk.bf16.mxu0 %vm394_vm0, %v2063_v34  ;;  %v9698_v60 = vpop.permute.xlu1 %2293  ;;  %v9700_v51 = vpop.permute.xlu0 %2288  ;;  %v2332_v4 = vpack.c.bf16 %v2317_v13, %v2316_v8  ;;  %v2318_v59 = vmul.f32 %v9638_v0, %v12079_v57 }
 0x19c   :  { %12072 = vst [vmem:[#allocation84_spill] sm:$0xff] %v9698_v60  ;;  %12073 = vst [vmem:[#allocation81_spill] sm:$0xff] %v9700_v51  ;;  %7292 = vmatmul.mubr.msk.bf16.vlgmr.msra.gmra.mrb[0].mxu1 %vm394_vm0, %v374_v15 }
 0x19f   :  { %v9711_v46 = vpop.permute.xlu1 %340  ;;  %v9713_v34 = vpop.permute.xlu0 %335 }
 0x1a0   :  { %v366_v43 = vmul.f32 %v12070_v1, %v9711_v46  ;;  %v365_v11 = vmul.f32 %v12071_v10, %v9713_v34  ;;  %v2321_v1 = vmul.f32 %v9648_v29, %v9062_v38  ;;  %v12080_v10 = vld [vmem:[#allocation42_spill] sm:$0xff]  ;;  %v2323_v38 = vmul.f32 %v9654_v40, %v9099_v9 }
 0x1a1   :  { %v2320_v13 = vmul.f32 %v9650_v47, %v12080_v10  ;;  %v2327_v9 = vmul.f32 %v9698_v60, %v9148_v55  ;;  %v12083_v55 = vld [vmem:[#allocation33_spill] sm:$0xff] }
 0x1a2   :  { %v375_v24 = vpack.c.bf16 %v366_v43, %v365_v11  ;;  %7436 = vmatmul.mubr.msk.bf16.gmra.mrb[12].mxu0 %vm394_vm0, %v2064_v36  ;;  %v2333_v43 = vpack.c.bf16 %v2319_v17, %v2318_v59  ;;  %v2325_v17 = vmul.f32 %v9676_v44, %v9119_v39  ;;  %v12092_v44 = vld [vmem:[#allocation12_spill] sm:$0xff] }
 0x1a3   :  { %7443 = vmatprep.mubr.msk.bf16.mxu0 %vm394_vm0, %v2332_v4  ;;  %v9721_v28 = vpop.permute.xlu1 %2303  ;;  %v9723_v15 = vpop.permute.xlu0 %2298  ;;  %v2334_v4 = vpack.c.bf16 %v2321_v1, %v2320_v13 }
 0x1a4   :  { %12077 = vst [vmem:[#allocation88_spill] sm:$0xff] %v9721_v28  ;;  %12078 = vst [vmem:[#allocation85_spill] sm:$0xff] %v9723_v15  ;;  %7295 = vmatprep.mubr.msk.bf16.mxu1 %vm394_vm0, %v375_v24  ;;  %v2322_v24 = vmul.f32 %v9656_v5, %v9107_v58  ;;  %v2326_v58 = vmul.f32 %v9700_v51, %v9152_v23  ;;  %v2329_v1 = vmul.f32 %v9721_v28, %v9173_v41  ;;  %v12089_v28 = vld [vmem:[#allocation9_spill] sm:$0xff] }
 0x1a5   :  { %v2328_v39 = vmul.f32 %v9723_v15, %v9177_v27  ;;  %v8028_v27 = vld [vmem:[%s11682_s6 + $0x20] sm:$0xff]  }
 0x1a6   :  { %v2337_v10 = vpack.c.bf16 %v2327_v9, %v2326_v58  ;;  %7459 = vmatprep.subr.bf16.mxu1 %v8028_v27 }
 0x1a7   :  { %v9734_v8 = vpop.permute.xlu1 %350  ;;  %v9736_v36 = vpop.permute.xlu0 %345  ;;  %7460 = vmatpush3.bf16.msra.mxu1 %v8028_v27 }
 0x1a8   :  { %v368_v11 = vmul.f32 %v9463_v33, %v9734_v8  ;;  %v367_v19 = vmul.f32 %v8225_v54, %v9736_v36  ;;  %v2324_v33 = vmul.f32 %v9678_v61, %v9125_v42  ;;  %v2335_v54 = vpack.c.bf16 %v2323_v38, %v2322_v24 }
 0x1a9   :  { %v2338_v42 = vpack.c.bf16 %v2329_v1, %v2328_v39 }
 0x1aa   :  { %v376_v57 = vpack.c.bf16 %v368_v11, %v367_v19  ;;  %7444 = vmatmul.mubr.msk.bf16.vlgmr.msra.gmra.mrb[0].mxu0 %vm394_vm0, %v2333_v43  ;;  %v2336_v59 = vpack.c.bf16 %v2325_v17, %v2324_v33  ;;  %v8029_v19 = vld [vmem:[%s11682_s6 + $0x28] sm:$0xff]  }
 0x1ab   :  { %7447 = vmatprep.mubr.msk.bf16.mxu0 %vm394_vm0, %v2334_v4  ;;  %v9762_v13 = vpop.permute.xlu1 %2313  ;;  %v9764_v43 = vpop.permute.xlu0 %2308  ;;  %7461 = vmatprep.subr.bf16.mxu1 %v8029_v19  ;;  %v8030_v4 = vld [vmem:[%s11682_s6 + $0x30] sm:$0xff]  }
 0x1ac   :  { %7296 = vmatmul.mubr.msk.bf16.gmra.mrb[4].mxu1 %vm394_vm0, %v376_v57  ;;  %12081 = vst [vmem:[#allocation71_spill] sm:$0xff] %v9762_v13  ;;  %12082 = vst [vmem:[#allocation91_spill] sm:$0xff] %v9764_v43  ;;  %v2331_v11 = vmul.f32 %v9762_v13, %v12083_v55  ;;  %v2330_v23 = vmul.f32 %v9764_v43, %v8978_v37  ;;  %v8031_v37 = vld [vmem:[%s11682_s6 + $0x38] sm:$0xff]   ;;  %v9788_v57 = vld [vmem:[%s11682_s6] sm:$0xff]  }
 0x1ad   :  { %7462 = vmatpush3.bf16.msra.mxu1 %v8029_v19 }
 0x1ae   :  { %v2339_v41 = vpack.c.bf16 %v2331_v11, %v2330_v23  ;;  %7463 = vmatprep.subr.bf16.mxu1 %v8030_v4 }
 0x1b1   :  { %7464 = vmatpush3.bf16.msra.mxu1 %v8030_v4 }
 0x1b2   :  { %7448 = vmatmul.mubr.msk.bf16.gmra.mrb[4].mxu0 %vm394_vm0, %v2335_v54  ;;  %7465 = vmatprep.subr.bf16.mxu1 %v8031_v37  ;;  %v9802_v54 = vld [vmem:[%s11681_s5] ss:$0 sm:$0xff] }
 0x1b3   :  { %7451 = vmatprep.mubr.msk.bf16.mxu0 %vm394_vm0, %v2336_v59 }
 0x1b5   :  { %7466 = vmatpush3.bf16.msra.mxu1 %v8031_v37 }
 0x1b6   :  { %7483 = vmatprep.subr.bf16.mxu1 %v9788_v57 }
 0x1ba   :  { %7452 = vmatmul.mubr.msk.bf16.gmra.mrb[8].mxu0 %vm394_vm0, %v2337_v10 }
 0x1bb   :  { %7455 = vmatprep.mubr.msk.bf16.mxu0 %vm394_vm0, %v2338_v42 }
 0x1c2   :  { %7456 = vmatmul.mubr.msk.bf16.gmra.mrb[12].mxu0 %vm394_vm0, %v2339_v41 }
 0x26f   :  { %v9791_v38 = vpop.f32.mrb[0].mxu1 }
 0x270   :  { %v9793_v24 = vpop.f32.mrb[1].mxu1 }
 0x271   :  { %v9795_v17 = vpop.f32.mrb[2].mxu1 }
 0x272   :  { %v9797_v33 = vpop.f32.mrb[3].mxu1 }
 0x27d   :  { %v7445_v59 = vpop.f32.mrb[0].mxu0 }
 0x27e   :  { %v2503_v9 = vadd.f32 %v7445_v59, %v9802_v54  ;;  %v2415_v58 = vpop.f32.mrb[1].mxu0 }
 0x27f   :  { %v2501_v1 = vadd.f32 %v9802_v54, %v2415_v58  ;;  %v7446_v39 = vpop.f32.mrb[2].mxu0  ;;  %v9806_v10 = vpop.f32.mrb[4].mxu1  ;;  %v12087_v58 = vld [vmem:[#allocation11_spill] sm:$0xff] }
 0x280   :  { %v9808_v42 = vmax.f32 %v2503_v9, 0.0  ;;  %v2504_v55 = vadd.f32 %v7446_v39, %v9802_v54  ;;  %v2418_v11 = vpop.f32.mrb[3].mxu0  ;;  %v9811_v23 = vpop.f32.mrb[5].mxu1 }
 0x281   :  { %v9813_v41 = vmax.f32 %v2501_v1, 0.0  ;;  %v2502_v27 = vadd.f32 %v9802_v54, %v2418_v11  ;;  %v9816_v19 = vpop.f32.mrb[6].mxu1  ;;  %v12217_v1 = vld [vmem:[#allocation57_spill] sm:$0xff] }
 0x282   :  { %12084 = vst [vmem:[#allocation36_spill] sm:$0xff] %v9808_v42  ;;  %v9818_v4 = vmax.f32 %v2504_v55, 0.0  ;;  %v9820_v37 = vpop.f32.mrb[7].mxu1  ;;  %v2535_v59 = vrot.slane %v9808_v42, 7  ;;  %v9825_v9 = vmul.f32 %v9808_v42, %v12087_v58  ;;  %v2923_v39 = vrot.slane %v9808_v42, 1 }
 0x283   :  { %12085 = vst [vmem:[#allocation39_spill] sm:$0xff] %v9813_v41  ;;  %v9828_v26 = vmax.f32 %v2502_v27, 0.0  ;;  %v9851_v13 = vmul.f32 %v9813_v41, %v12092_v44  ;;  %v12094_v61 = vrot.slane %v9813_v41, 7 }
 0x284   :  { %12086 = vst [vmem:[#allocation42_spill] sm:$0xff] %v9818_v4  ;;  %v2536_v11 = vrot.slane %v9818_v4, 7  ;;  %v11812_v22 = vrot.slane %v9818_v4, 1 }
 0x285   :  { %12088 = vst [vmem:[#allocation33_spill] sm:$0xff] %v9828_v26  ;;  %v2534_v43 = vrot.slane %v9828_v26, 7  ;;  %v9839_v58 = vmul.f32 %v9828_v26, %v12089_v28  ;;  %v7449_v15 = vpop.f32.mrb[4].mxu0  ;;  %v12095_v40 = vrot.slane %v9828_v26, 1 }
 0x286   :  { %v9846_v60 = vsel %vm665_vm2, %v2923_v39, %v11812_v22  ;;  %v2507_v51 = vadd.f32 %v7449_v15, %v9802_v54  ;;  %v2431_v55 = vpop.f32.mrb[5].mxu0  ;;  %v2561_v28 = vsel %vm115_vm1, %v2535_v59, %v2536_v11 }
 0x287   :  { %12091 = vst [vmem:[#allocation11_spill] sm:$0xff] %v9846_v60  ;;  %v9857_v27 = vsel %vm115_vm1, %v2534_v43, %v2535_v59  ;;  %v9863_v22 = vsel %vm115_vm1, %v12094_v61, %v2534_v43  ;;  %v9871_v44 = vsel %vm665_vm2, %v12095_v40, %v2923_v39  ;;  %v7450_v5 = vpop.f32.mrb[6].mxu0  ;;  %v2505_v59 = vadd.f32 %v9802_v54, %v2431_v55  ;;  %v12099_v40 = vld [vmem:[#allocation14_spill] sm:$0xff] }
 0x288   :  { %12093 = vst [vmem:[#allocation9_spill] sm:$0xff] %v9857_v27  ;;  %v9873_v29 = vmax.f32 %v2507_v51, 0.0  ;;  %v2508_v47 = vadd.f32 %v7450_v5, %v9802_v54  ;;  %v2434_v52 = vpop.f32.mrb[7].mxu0  ;;  %v9879_v61 = vmul.f32 %v9863_v22, %v12096_v16  ;;  %v9883_v43 = vmul.f32 %v9818_v4, %v9566_v31  ;;  %v12100_v51 = vld [vmem:[#allocation19_spill] sm:$0xff]  ;;  %v12103_v16 = vld [vmem:[#allocation22_spill] sm:$0xff] }
 0x289   :  { %v2506_v15 = vadd.f32 %v9802_v54, %v2434_v52  ;;  %v9888_v39 = vmul.f32 %v9818_v4, %v12099_v40  ;;  %v9892_v55 = vmul.f32 %v9857_v27, %v12100_v51  ;;  %v9894_v5 = vmax.f32 %v2505_v59, 0.0  ;;  %v12107_v51 = vld [vmem:[#allocation55_spill] sm:$0xff] }
 0x28a   :  { %12097 = vst [vmem:[#allocation12_spill] sm:$0xff] %v9879_v61  ;;  %12098 = vst [vmem:[#allocation20_spill] sm:$0xff] %v9883_v43  ;;  %v9896_v42 = vmax.f32 %v2508_v47, 0.0  ;;  %v9899_v6 = vmul.f32 %v2561_v28, %v12103_v16  ;;  %v9903_v31 = vmul.f32 %v9857_v27, %v12105_v45  ;;  %v9911_v50 = vmul.f32 %v2561_v28, %v12107_v51  ;;  %v12110_v45 = vld [vmem:[#allocation15_spill] sm:$0xff]  ;;  %v12111_v61 = vld [vmem:[#allocation13_spill] sm:$0xff] }
 0x28b   :  { %12101 = vst [vmem:[#allocation14_spill] sm:$0xff] %v9892_v55  ;;  %12102 = vst [vmem:[#allocation19_spill] sm:$0xff] %v9894_v5  ;;  %v9906_v53 = vmax.f32 %v2506_v15, 0.0  ;;  %v2537_v59 = vrot.slane %v9894_v5, 7  ;;  %v9917_v16 = vmul.f32 %v9894_v5, %v9564_v48  ;;  %v9921_v18 = vmul.f32 %v9873_v29, %v12110_v45 }
 0x28c   :  { %12104 = vst [vmem:[#allocation22_spill] sm:$0xff] %v9899_v6  ;;  %12106 = vst [vmem:[#allocation56_spill] sm:$0xff] %v9903_v31  ;;  %v9928_v47 = vmul.f32 %v9894_v5, %v12111_v61  ;;  %v12126_v6 = vld [vmem:[#allocation26_spill] sm:$0xff] }
 0x28d   :  { %12108 = vst [vmem:[#allocation55_spill] sm:$0xff] %v9911_v50  ;;  %12109 = vst [vmem:[#allocation126_spill] sm:$0xff] %v9917_v16  ;;  %v7453_v51 = vpop.f32.mrb[8].mxu0  ;;  %v2538_v48 = vrot.slane %v9906_v53, 7  ;;  %v9936_v15 = vmul.f32 %v9906_v53, %v12112_v14  ;;  %v9943_v61 = vsel %vm115_vm1, %v2536_v11, %v2537_v59  ;;  %v9958_v16 = vmul.f32 %v2561_v28, %v9481_v32 }
 0x28e   :  { %v7743_v7 = vadd.f32 %v7453_v51, %v9791_v38  ;;  %v2447_v45 = vpop.f32.mrb[9].mxu0 }
 0x28f   :  { %v7744_v52 = vadd.f32 %v2447_v45, %v9793_v24  ;;  %v7454_v40 = vpop.f32.mrb[10].mxu0  ;;  %v12113_v24 = vld [vmem:[#allocation21_spill] sm:$0xff]  ;;  %12115 = vst [vmem:[#allocation13_spill] sm:$0xff] %v9958_v16  ;;  %v9982_v28 = vsel %vm115_vm1, %v2537_v59, %v2538_v48 }
 0x290   :  { %v2511_v38 = vadd.f32 %v7743_v7, %v9802_v54  ;;  %v7745_v51 = vadd.f32 %v7454_v40, %v9795_v17  ;;  %v2450_v43 = vpop.f32.mrb[11].mxu0  ;;  %v9953_v45 = vmul.f32 %v9943_v61, %v12113_v24  ;;  %v9962_v7 = vmul.f32 %v9943_v61, %v9479_v3 }
 0x291   :  { %v2509_v2 = vadd.f32 %v7744_v52, %v9802_v54  ;;  %v7746_v11 = vadd.f32 %v2450_v43, %v9797_v33  ;;  %v12117_v24 = vrot.slane %v9873_v29, 7 }
 0x292   :  { %12114 = vst [vmem:[#allocation15_spill] sm:$0xff] %v9953_v45  ;;  %12116 = vst [vmem:[#allocation16_spill] sm:$0xff] %v9962_v7  ;;  %v9964_v17 = vmax.f32 %v2511_v38, 0.0  ;;  %v2512_v40 = vadd.f32 %v7745_v51, %v9802_v54  ;;  %v12120_v7 = vld [vmem:[#allocation23_spill] sm:$0xff] }
 0x293   :  { %v9973_v52 = vsel %vm115_vm1, %v2538_v48, %v12117_v24  ;;  %v9975_v33 = vmax.f32 %v2509_v2, 0.0  ;;  %v2510_v32 = vadd.f32 %v7746_v11, %v9802_v54  ;;  %v9990_v24 = vmul.f32 %v9896_v42, %v9668_v30  ;;  %v12118_v2 = vld [vmem:[#allocation24_spill] sm:$0xff] }
 0x294   :  { %v9986_v51 = vmax.f32 %v2512_v40, 0.0  ;;  %v10005_v30 = vmul.f32 %v9964_v17, %v9688_v62 }
 0x295   :  { %v2541_v11 = vrot.slane %v9975_v33, 7  ;;  %v9994_v55 = vmax.f32 %v2510_v32, 0.0  ;;  %v7457_v3 = vpop.f32.mrb[12].mxu0  ;;  %v9998_v59 = vmul.f32 %v9975_v33, %v9666_v56 }
 0x296   :  { %v2544_v40 = vrot.slane %v9986_v51, 7  ;;  %v7747_v14 = vadd.f32 %v7457_v3, %v9806_v10  ;;  %v2463_v43 = vpop.f32.mrb[13].mxu0  ;;  %v10013_v48 = vmul.f32 %v9986_v51, %v9713_v34  ;;  %v10029_v34 = vmul.f32 %v9973_v52, %v12120_v7 }
 0x297   :  { %v7748_v32 = vadd.f32 %v2463_v43, %v9811_v23  ;;  %v7458_v38 = vpop.f32.mrb[14].mxu0  ;;  %v10019_v62 = vmul.f32 %v9994_v55, %v9690_v63  ;;  %v10023_v23 = vmul.f32 %v9982_v28, %v12118_v2  ;;  %v2542_v7 = vrot.slane %v9994_v55, 7 }
 0x298   :  { %v2515_v10 = vadd.f32 %v7747_v14, %v9802_v54  ;;  %v7749_v3 = vadd.f32 %v7458_v38, %v9816_v19  ;;  %v2466_v16 = vpop.f32.mrb[15].mxu0  ;;  %12121 = vst [vmem:[#allocation24_spill] sm:$0xff] %v10029_v34  ;;  %v12122_v14 = vrot.slane %v9896_v42, 7 }
 0x299   :  { %12119 = vst [vmem:[#allocation21_spill] sm:$0xff] %v10023_v23  ;;  %v2513_v43 = vadd.f32 %v7748_v32, %v9802_v54  ;;  %v7750_v56 = vadd.f32 %v2466_v16, %v9820_v37  ;;  %v12124_v37 = vrot.slane %v9873_v29, 7  ;;  %v10126_v20 = vsel %vm115_vm1, %v2541_v11, %v2542_v7 }
 0x29a   :  { %v10035_v19 = vsel %vm115_vm1, %v12122_v14, %v2541_v11  ;;  %v10037_v63 = vmax.f32 %v2515_v10, 0.0  ;;  %v2516_v38 = vadd.f32 %v7749_v3, %v9802_v54  ;;  %v12123_v32 = vmov %v12122_v14  ;;  %v12128_v3 = vld [vmem:[#allocation10_spill] sm:$0xff]  ;;  %v12129_v14 = vld [vmem:[#allocation25_spill] sm:$0xff] }
 0x29b   :  { %v10048_v16 = vsel %vm115_vm1, %v12124_v37, %v12123_v32  ;;  %v10051_v31 = vmax.f32 %v2513_v43, 0.0  ;;  %v2514_v10 = vadd.f32 %v7750_v56, %v9802_v54  ;;  %v10081_v23 = vmul.f32 %v10035_v19, %v12129_v14 }
 0x29c   :  { %v2547_v2 = vrot.slane %v10037_v63, 7  ;;  %v10058_v50 = vmax.f32 %v2516_v38, 0.0  ;;  %v10062_v45 = vmul.f32 %v10048_v16, %v12126_v6  ;;  %v10073_v56 = vmul.f32 %v10037_v63, %v9734_v8 }
 0x29d   :  { %v2545_v32 = vrot.slane %v10051_v31, 7  ;;  %v10065_v37 = vmax.f32 %v2514_v10, 0.0  ;;  %v10069_v54 = vmul.f32 %v10051_v31, %v9711_v46  ;;  %12130 = vst [vmem:[#allocation10_spill] sm:$0xff] %v10081_v23  ;;  %v12131_v14 = vrot.slane %v9813_v41, 7  ;;  %v12142_v23 = vld [vmem:[#allocation30_spill] sm:$0xff] }
 0x29e   :  { %12125 = vst [vmem:[#allocation23_spill] sm:$0xff] %v10058_v50  ;;  %12127 = vst [vmem:[#allocation26_spill] sm:$0xff] %v10062_v45  ;;  %v2548_v38 = vrot.slane %v10058_v50, 7  ;;  %v2597_v6 = vmul.f32 %v10058_v50, %v12128_v3 }
 0x29f   :  { %v2546_v46 = vrot.slane %v10065_v37, 7  ;;  %v10089_v8 = vmul.f32 %v10065_v37, %v9736_v36  ;;  %v8033_v36 = vld [vmem:[%s11682_s6 + $0x8] sm:$0xff]  }
 0x2a0   :  { %v2613_v43 = vpack.c.bf16 %v9851_v13, %v2597_v6  ;;  %v10094_v3 = vsel %vm115_vm1, %v2547_v2, %v2548_v38  ;;  %v10100_v10 = vsel %vm115_vm1, %v2548_v38, %v12131_v14  ;;  %v12132_v6 = vld [vmem:[#allocation18_spill] sm:$0xff]  ;;  %v12135_v38 = vrot.slane %v9964_v17, 7  ;;  %v12136_v13 = vld [vmem:[#allocation27_spill] sm:$0xff] }
 0x2a1   :  { %v10111_v34 = vmul.f32 %v10094_v3, %v12132_v6  ;;  %v10115_v27 = vmul.f32 %v10100_v10, %v12134_v25  ;;  %v10134_v25 = vsel %vm115_vm1, %v2544_v40, %v2545_v32 }
 0x2a2   :  { %v10121_v14 = vsel %vm115_vm1, %v2542_v7, %v12135_v38  ;;  %7467 = vmatprep.mubr.msk.bf16.mxu1 %vm2654_vm3, %v2613_v43  ;;  %v12138_v45 = vmov %v12135_v38  ;;  %v12139_v43 = vpack.c.bf16 %v9825_v9, %v9839_v58  ;;  %v12140_v7 = vld [vmem:[#allocation28_spill] sm:$0xff]  ;;  %v12146_v9 = vpack.c.bf16 %v9928_v47, %v9888_v39  ;;  %v12156_v39 = vld [vmem:[#allocation34_spill] sm:$0xff] }
 0x2a3   :  { %12133 = vst [vmem:[#allocation25_spill] sm:$0xff] %v10111_v34  ;;  %v10130_v6 = vmul.f32 %v10121_v14, %v12136_v13  ;;  %v10140_v38 = vsel %vm115_vm1, %v12138_v45, %v2544_v40  ;;  %v10150_v13 = vmul.f32 %v10126_v20, %v12140_v7  ;;  %v10158_v45 = vmul.f32 %v10134_v25, %v12144_v35  ;;  %v12158_v47 = vld [vmem:[#allocation38_spill] sm:$0xff] }
 0x2a4   :  { %7468 = vmatmul.mubr.msk.bf16.vlgmr.msra.gmra.mrb[8].mxu1 %vm2654_vm3, %v12139_v43  ;;  %v10154_v49 = vmul.f32 %v10140_v38, %v12142_v23  ;;  %v2934_v40 = vrot.slane %v10065_v37, 1  ;;  %v10168_v58 = vsel %vm115_vm1, %v2546_v46, %v2547_v2  ;;  %v10172_v23 = vsel %vm115_vm1, %v2545_v32, %v2546_v46  ;;  %v12149_v2 = vld [vmem:[#allocation32_spill] sm:$0xff]  ;;  %v12151_v46 = vld [vmem:[#allocation31_spill] sm:$0xff] }
 0x2a5   :  { %12137 = vst [vmem:[#allocation18_spill] sm:$0xff] %v10130_v6  ;;  %12141 = vst [vmem:[#allocation17_spill] sm:$0xff] %v10150_v13  ;;  %7471 = vmatprep.mubr.msk.bf16.mxu1 %vm2654_vm3, %v12146_v9  ;;  %7484 = vmatpush3.bf16.msra.mxu1 %v9788_v57  ;;  %v12147_v35 = vrot.slane %v9828_v26, 1  ;;  %v12148_v43 = vrot.slane %v9813_v41, 1  ;;  %v8034_v57 = vld [vmem:[%s11682_s6 + $0x10] sm:$0xff]   ;;  %v10191_v32 = vmul.f32 %v10172_v23, %v12149_v2  ;;  %v12168_v41 = vld [vmem:[#allocation41_spill] sm:$0xff] }
 0x2a6   :  { %12143 = vst [vmem:[#allocation27_spill] sm:$0xff] %v10154_v49  ;;  %12145 = vst [vmem:[#allocation28_spill] sm:$0xff] %v10158_v45  ;;  %7485 = vmatprep.subr.bf16.mxu1 %v8033_v36  ;;  %v10195_v9 = vmul.f32 %v10168_v58, %v12151_v46  ;;  %v10211_v2 = vmul.f32 %v9871_v44, %v12158_v47  ;;  %v12160_v49 = vld [vmem:[#allocation37_spill] sm:$0xff]  ;;  %v12162_v45 = vld [vmem:[#allocation35_spill] sm:$0xff] }
 0x2a7   :  { %v10180_v7 = vsel %vm665_vm2, %v12148_v43, %v12147_v35  ;;  %12150 = vst [vmem:[#allocation30_spill] sm:$0xff] %v10191_v32  ;;  %v12153_v35 = vmov %v12148_v43  ;;  %v12154_v43 = vrot.slane %v10058_v50, 1  ;;  %v10215_v46 = vmul.f32 %v9846_v60, %v12160_v49 }
 0x2a8   :  { %12152 = vst [vmem:[#allocation29_spill] sm:$0xff] %v10195_v9  ;;  %v10207_v13 = vmul.f32 %v10180_v7, %v12156_v39  ;;  %12159 = vst [vmem:[#allocation34_spill] sm:$0xff] %v10211_v2  ;;  %v12165_v39 = vrot.slane %v9894_v5, 1  ;;  %v12167_v49 = vrot.slane %v9818_v4, 1  ;;  %v12170_v9 = vld [vmem:[#allocation40_spill] sm:$0xff]  ;;  %v12178_v4 = vrot.slane %v9896_v42, 1 }
 0x2a9   :  { %v10203_v11 = vsel %vm665_vm2, %v12154_v43, %v12153_v35  ;;  %12161 = vst [vmem:[#allocation38_spill] sm:$0xff] %v10215_v46  ;;  %v12164_v35 = vrot.slane %v9906_v53, 1  ;;  %7486 = vmatpush3.bf16.msra.mxu1 %v8033_v36  ;;  %v12179_v2 = vrot.slane %v9873_v29, 1  ;;  %v12187_v46 = vld [vmem:[#allocation43_spill] sm:$0xff]  ;;  %v12237_v5 = vld [vmem:[#allocation70_spill] sm:$0xff] }
 0x2aa   :  { %12155 = vst [vmem:[#allocation32_spill] sm:$0xff] %v10203_v11  ;;  %12157 = vst [vmem:[#allocation31_spill] sm:$0xff] %v10207_v13  ;;  %v10221_v6 = vmul.f32 %v10203_v11, %v12162_v45  ;;  %v12166_v47 = vmov %v12165_v39  ;;  %7487 = vmatprep.subr.bf16.mxu1 %v8034_v57  ;;  %v12209_v13 = vld [vmem:[#allocation49_spill] sm:$0xff] }
 0x2ab   :  { %v10229_v43 = vsel %vm665_vm2, %v12165_v39, %v12164_v35  ;;  %v2948_v26 = vsel %vm665_vm2, %v12167_v49, %v12166_v47  ;;  %v12172_v35 = vld [vmem:[#allocation73_spill] sm:$0xff]  ;;  %v12174_v49 = vld [vmem:[#allocation72_spill] sm:$0xff]  ;;  %v10273_v36 = vsel %vm665_vm2, %v12179_v2, %v12178_v4  ;;  %v12184_v4 = vpack.c.bf16 %v9921_v18, %v9936_v15 }
 0x2ac   :  { %12163 = vst [vmem:[#allocation37_spill] sm:$0xff] %v10221_v6  ;;  %v10240_v32 = vmul.f32 %v2948_v26, %v12168_v41  ;;  %v10244_v11 = vmul.f32 %v10229_v43, %v12170_v9  ;;  %v10248_v39 = vmul.f32 %v9846_v60, %v12172_v35  ;;  %v8035_v47 = vld [vmem:[%s11682_s6 + $0x18] sm:$0xff]   ;;  %v10256_v45 = vmul.f32 %v2948_v26, %v12174_v49 }
 0x2ad   :  { %v10259_v41 = vmul.f32 %v2948_v26, %v9638_v0  ;;  %v10263_v9 = vmul.f32 %v10229_v43, %v9636_v12  ;;  %v12180_v49 = vmov %v12179_v2  ;;  %v12181_v26 = vrot.slane %v9906_v53, 1  ;;  %7472 = vmatmul.mubr.msk.bf16.gmra.mrb[12].mxu1 %vm2654_vm3, %v12184_v4 }
 0x2ae   :  { %12169 = vst [vmem:[#allocation35_spill] sm:$0xff] %v10240_v32  ;;  %12171 = vst [vmem:[#allocation41_spill] sm:$0xff] %v10244_v11  ;;  %v12182_v12 = vrot.slane %v9994_v55, 1  ;;  %v12183_v35 = vrot.slane %v9975_v33, 1  ;;  %v10305_v6 = vmul.f32 %v10273_v36, %v12187_v46  ;;  %v12189_v18 = vpack.c.bf16 %v9998_v59, %v9990_v24  ;;  %7488 = vmatpush3.bf16.msra.mxu1 %v8034_v57  ;;  %v10335_v59 = vld [vmem:[%s11682_s6 + $0x40] sm:$0xff]  }
 0x2af   :  { %12173 = vst [vmem:[#allocation40_spill] sm:$0xff] %v10248_v39  ;;  %12175 = vst [vmem:[#allocation73_spill] sm:$0xff] %v10256_v45  ;;  %v10281_v0 = vsel %vm665_vm2, %v12181_v26, %v12180_v49  ;;  %v12185_v26 = vld [vmem:[#allocation44_spill] sm:$0xff]  ;;  %v12190_v15 = vrot.slane %v9975_v33, 1  ;;  %v12193_v49 = vrot.slane %v9986_v51, 1  ;;  %v12194_v2 = vrot.slane %v9964_v17, 1  ;;  %7489 = vmatprep.subr.bf16.mxu1 %v8035_v47 }
 0x2b0   :  { %12176 = vst [vmem:[#allocation72_spill] sm:$0xff] %v10259_v41  ;;  %12177 = vst [vmem:[#allocation127_spill] sm:$0xff] %v10263_v9  ;;  %v10289_v32 = vsel %vm665_vm2, %v12183_v35, %v12182_v12  ;;  %v10301_v11 = vmul.f32 %v10281_v0, %v12185_v26  ;;  %v2935_v35 = vrot.slane %v10037_v63, 1  ;;  %7475 = vmatprep.mubr.msk.bf16.mxu1 %vm2654_vm3, %v12189_v18  ;;  %v12191_v12 = vrot.slane %v9896_v42, 1  ;;  %v12192_v26 = vld [vmem:[#allocation45_spill] sm:$0xff]  ;;  %v12195_v18 = vld [vmem:[#allocation46_spill] sm:$0xff] }
 0x2b1   :  { %12188 = vst [vmem:[#allocation43_spill] sm:$0xff] %v10305_v6  ;;  %v10322_v46 = vmul.f32 %v10289_v32, %v12192_v26  ;;  %v10330_v24 = vsel %vm665_vm2, %v12194_v2, %v12193_v49  ;;  %v12198_v26 = vrot.slane %v9994_v55, 1  ;;  %v12199_v49 = vld [vmem:[#allocation47_spill] sm:$0xff]  ;;  %v12201_v9 = vld [vmem:[#allocation48_spill] sm:$0xff]  ;;  %v12203_v57 = vrot.slane %v10051_v31, 1  ;;  %v12207_v6 = vld [vmem:[#allocation50_spill] sm:$0xff] }
 0x2b2   :  { %12186 = vst [vmem:[#allocation44_spill] sm:$0xff] %v10301_v11  ;;  %v10318_v4 = vsel %vm665_vm2, %v12191_v12, %v12190_v15  ;;  %v12197_v12 = vmov %v12194_v2  ;;  %v10353_v41 = vmul.f32 %v10330_v24, %v12199_v49  ;;  %v12205_v11 = vrot.slane %v9986_v51, 1  ;;  %7490 = vmatpush3.bf16.msra.mxu1 %v8035_v47  ;;  %v12213_v49 = vld [vmem:[#allocation51_spill] sm:$0xff]  ;;  %v12215_v47 = vld [vmem:[#allocation53_spill] sm:$0xff] }
 0x2b3   :  { %v10341_v15 = vmul.f32 %v10318_v4, %v12195_v18  ;;  %v10349_v2 = vsel %vm665_vm2, %v12198_v26, %v12197_v12  ;;  %v10363_v18 = vsel %vm665_vm2, %v12203_v57, %v2934_v40  ;;  %v12204_v45 = vmov %v12203_v57  ;;  %7507 = vmatprep.subr.bf16.mxu1 %v10335_v59 }
 0x2b4   :  { %12200 = vst [vmem:[#allocation46_spill] sm:$0xff] %v10353_v41  ;;  %v10357_v39 = vmul.f32 %v10349_v2, %v12201_v9  ;;  %v10371_v12 = vsel %vm665_vm2, %v12205_v11, %v12204_v45  ;;  %v12206_v26 = vrot.slane %v10058_v50, 1  ;;  %v10387_v60 = vmul.f32 %v10363_v18, %v12209_v13  ;;  %v12216_v45 = vld [vmem:[#allocation58_spill] sm:$0xff]  ;;  %v12245_v50 = vld [vmem:[#allocation79_spill] sm:$0xff] }
 0x2b5   :  { %12196 = vst [vmem:[#allocation45_spill] sm:$0xff] %v10341_v15  ;;  %v10383_v57 = vmul.f32 %v10371_v12, %v12207_v6  ;;  %v10391_v11 = vsel %vm665_vm2, %v2934_v40, %v2935_v35  ;;  %v12214_v15 = vld [vmem:[#allocation54_spill] sm:$0xff]  ;;  %v12220_v40 = vld [vmem:[#allocation59_spill] sm:$0xff] }
 0x2b6   :  { %12202 = vst [vmem:[#allocation47_spill] sm:$0xff] %v10357_v39  ;;  %v10377_v9 = vsel %vm665_vm2, %v2935_v35, %v12206_v26  ;;  %12210 = vst [vmem:[#allocation50_spill] sm:$0xff] %v10387_v60  ;;  %v12211_v26 = vld [vmem:[#allocation52_spill] sm:$0xff]  ;;  %v10405_v13 = vmul.f32 %v10100_v10, %v12214_v15  ;;  %v10412_v35 = vmul.f32 %v9863_v22, %v12215_v47  ;;  %v12221_v47 = vld [vmem:[#allocation62_spill] sm:$0xff] }
 0x2b7   :  { %12208 = vst [vmem:[#allocation48_spill] sm:$0xff] %v10383_v57  ;;  %v10397_v34 = vmul.f32 %v10391_v11, %v12211_v26  ;;  %v10401_v6 = vmul.f32 %v10377_v9, %v12213_v49  ;;  %v10416_v26 = vmul.f32 %v9943_v61, %v12216_v45  ;;  %v10420_v49 = vmul.f32 %v9982_v28, %v12217_v1  ;;  %v12218_v39 = vld [vmem:[#allocation60_spill] sm:$0xff]  ;;  %v12224_v45 = vld [vmem:[#allocation61_spill] sm:$0xff] }
 0x2b8   :  { %v10426_v41 = vmul.f32 %v9973_v52, %v12218_v39  ;;  %v10430_v57 = vmul.f32 %v10048_v16, %v12220_v40  ;;  %v10434_v60 = vmul.f32 %v10035_v19, %v12221_v47  ;;  %v12223_v61 = vpack.c.bf16 %v10005_v30, %v10019_v62  ;;  %v12225_v40 = vld [vmem:[#allocation64_spill] sm:$0xff]  ;;  %v12228_v62 = vld [vmem:[#allocation63_spill] sm:$0xff]  ;;  %v12229_v39 = vld [vmem:[#allocation66_spill] sm:$0xff] }
 0x2b9   :  { %12212 = vst [vmem:[#allocation49_spill] sm:$0xff] %v10397_v34  ;;  %v10446_v15 = vmul.f32 %v10126_v20, %v12224_v45  ;;  %v10450_v34 = vmul.f32 %v10121_v14, %v12225_v40  ;;  %v12227_v47 = vpack.c.bf16 %v10069_v54, %v10013_v48  ;;  %v10464_v45 = vmul.f32 %v10134_v25, %v12229_v39  ;;  %v12231_v1 = vld [vmem:[#allocation65_spill] sm:$0xff]  ;;  %v12233_v54 = vld [vmem:[#allocation68_spill] sm:$0xff]  ;;  %v12235_v30 = vld [vmem:[#allocation67_spill] sm:$0xff] }
 0x2ba   :  { %12219 = vst [vmem:[#allocation52_spill] sm:$0xff] %v10426_v41  ;;  %12222 = vst [vmem:[#allocation51_spill] sm:$0xff] %v10434_v60  ;;  %7476 = vmatmul.mubr.msk.bf16.gmra.mrb[16].mxu1 %vm2654_vm3, %v12223_v61  ;;  %v10460_v61 = vmul.f32 %v10140_v38, %v12228_v62  ;;  %v10468_v40 = vmul.f32 %v10172_v23, %v12231_v1  ;;  %v10478_v41 = vmul.f32 %v10094_v3, %v12235_v30  ;;  %v12239_v48 = vld [vmem:[#allocation69_spill] sm:$0xff]  ;;  %v12244_v39 = vld [vmem:[#allocation76_spill] sm:$0xff] }
 0x2bb   :  { %12226 = vst [vmem:[#allocation54_spill] sm:$0xff] %v10450_v34  ;;  %7479 = vmatprep.mubr.msk.bf16.mxu1 %vm2654_vm3, %v12227_v47  ;;  %12230 = vst [vmem:[#allocation53_spill] sm:$0xff] %v10464_v45  ;;  %v10474_v47 = vmul.f32 %v10168_v58, %v12233_v54  ;;  %v10500_v1 = vmul.f32 %v10180_v7, %v12237_v5  ;;  %v10504_v45 = vmul.f32 %v9871_v44, %v12239_v48  ;;  %v12240_v54 = vld [vmem:[#allocation75_spill] sm:$0xff] }
 0x2bc   :  { %12232 = vst [vmem:[#allocation58_spill] sm:$0xff] %v10468_v40  ;;  %12236 = vst [vmem:[#allocation60_spill] sm:$0xff] %v10478_v41  ;;  %v10508_v60 = vmul.f32 %v10229_v43, %v12240_v54  ;;  %v10516_v62 = vmul.f32 %v10273_v36, %v9379_v21  ;;  %v10520_v5 = vmul.f32 %v10318_v4, %v12244_v39  ;;  %v12247_v41 = vld [vmem:[#allocation78_spill] sm:$0xff]  ;;  %v12249_v21 = vld [vmem:[#allocation83_spill] sm:$0xff] }
 0x2bd   :  { %12234 = vst [vmem:[#allocation57_spill] sm:$0xff] %v10474_v47  ;;  %12238 = vst [vmem:[#allocation59_spill] sm:$0xff] %v10500_v1  ;;  %v12242_v47 = vld [vmem:[#allocation74_spill] sm:$0xff]  ;;  %v10524_v48 = vmul.f32 %v10289_v32, %v12245_v50  ;;  %v10528_v43 = vmul.f32 %v10349_v2, %v12247_v41  ;;  %v10536_v40 = vmul.f32 %v10330_v24, %v12249_v21  ;;  %v12254_v54 = vld [vmem:[#allocation87_spill] sm:$0xff] }
 0x2be   :  { %12241 = vst [vmem:[#allocation62_spill] sm:$0xff] %v10508_v60  ;;  %v10512_v30 = vmul.f32 %v10281_v0, %v12242_v47  ;;  %v12251_v39 = vld [vmem:[#allocation82_spill] sm:$0xff]  ;;  %v12253_v50 = vpack.c.bf16 %v10073_v56, %v10089_v8  ;;  %v10552_v60 = vmul.f32 %v10363_v18, %v12254_v54  ;;  %v12260_v47 = vld [vmem:[#allocation89_spill] sm:$0xff]  ;;  %v12261_v41 = vld [vmem:[#allocation32_spill] sm:$0xff] }
 0x2bf   :  { %12246 = vst [vmem:[#allocation64_spill] sm:$0xff] %v10524_v48  ;;  %12248 = vst [vmem:[#allocation63_spill] sm:$0xff] %v10528_v43  ;;  %v10540_v34 = vmul.f32 %v10371_v12, %v12251_v39  ;;  %v12256_v21 = vld [vmem:[#allocation86_spill] sm:$0xff]  ;;  %v12257_v39 = vld [vmem:[#allocation25_spill] sm:$0xff]  ;;  %v10570_v54 = vmul.f32 %v12261_v41, %v12260_v47 }
 0x2c0   :  { %12243 = vst [vmem:[#allocation61_spill] sm:$0xff] %v10512_v30  ;;  %12250 = vst [vmem:[#allocation66_spill] sm:$0xff] %v10536_v40  ;;  %v10556_v30 = vmul.f32 %v10391_v11, %v12256_v21  ;;  %v12258_v1 = vpack.c.bf16 %v10115_v27, %v12257_v39  ;;  %v12259_v8 = vld [vmem:[#allocation90_spill] sm:$0xff]  ;;  %v12262_v48 = vld [vmem:[#allocation93_spill] sm:$0xff] }
 0x2c1   :  { %12252 = vst [vmem:[#allocation65_spill] sm:$0xff] %v10540_v34  ;;  %12255 = vst [vmem:[#allocation68_spill] sm:$0xff] %v10552_v60  ;;  %v10574_v21 = vmul.f32 %v9863_v22, %v12262_v48  ;;  %v12263_v39 = vld [vmem:[#allocation92_spill] sm:$0xff]  ;;  %v12265_v56 = vld [vmem:[#allocation95_spill] sm:$0xff] }
 0x2c2   :  { %7480 = vmatmul.mubr.msk.bf16.gmra.mrb[20].mxu1 %vm2654_vm3, %v12253_v50  ;;  %v10566_v50 = vmul.f32 %v10377_v9, %v12259_v8  ;;  %v10584_v40 = vmul.f32 %v9982_v28, %v12265_v56  ;;  %v12266_v8 = vld [vmem:[#allocation94_spill] sm:$0xff]  ;;  %v12267_v22 = vld [vmem:[#allocation97_spill] sm:$0xff]  ;;  %v12269_v27 = vld [vmem:[#allocation96_spill] sm:$0xff] }
 0x2c3   :  { %7491 = vmatprep.mubr.msk.bf16.mxu1 %vm2654_vm3, %v12258_v1  ;;  %v12264_v1 = vld [vmem:[#allocation9_spill] sm:$0xff]  ;;  %v10588_v34 = vmul.f32 %v9973_v52, %v12266_v8  ;;  %v10594_v48 = vmul.f32 %v10048_v16, %v12267_v22  ;;  %v10598_v60 = vmul.f32 %v10035_v19, %v12269_v27  ;;  %v12272_v56 = vld [vmem:[#allocation98_spill] sm:$0xff]  ;;  %v12276_v27 = vld [vmem:[#allocation100_spill] sm:$0xff] }
 0x2c4   :  { %v10580_v43 = vmul.f32 %v12264_v1, %v12263_v39  ;;  %v12270_v39 = vld [vmem:[#allocation99_spill] sm:$0xff]  ;;  %v10610_v8 = vmul.f32 %v10121_v14, %v12272_v56  ;;  %v12274_v16 = vld [vmem:[#allocation101_spill] sm:$0xff]  ;;  %v12280_v52 = vld [vmem:[#allocation102_spill] sm:$0xff] }
 0x2c5   :  { %12268 = vst [vmem:[#allocation67_spill] sm:$0xff] %v10594_v48  ;;  %v10602_v1 = vmul.f32 %v10126_v20, %v12270_v39  ;;  %v10614_v22 = vmul.f32 %v10140_v38, %v12274_v16  ;;  %v10620_v20 = vmul.f32 %v10134_v25, %v12276_v27  ;;  %v12278_v39 = vld [vmem:[#allocation103_spill] sm:$0xff]  ;;  %v10628_v47 = vmul.f32 %v10168_v58, %v12280_v52  ;;  %v12282_v56 = vld [vmem:[#allocation105_spill] sm:$0xff]  ;;  %v12284_v25 = vld [vmem:[#allocation104_spill] sm:$0xff] }
 0x2c6   :  { %12273 = vst [vmem:[#allocation69_spill] sm:$0xff] %v10610_v8  ;;  %v10624_v28 = vmul.f32 %v10172_v23, %v12278_v39  ;;  %v8037_v14 = vld [vmem:[%s11682_s6 + $0x48] sm:$0xff]   ;;  %v10637_v16 = vmul.f32 %v10094_v3, %v12282_v56  ;;  %v10641_v27 = vmul.f32 %v10100_v10, %v12284_v25  ;;  %v12286_v39 = vld [vmem:[#allocation33_spill] sm:$0xff]  ;;  %v12288_v48 = vld [vmem:[#allocation106_spill] sm:$0xff] }
 0x2c7   :  { %12271 = vst [vmem:[#allocation70_spill] sm:$0xff] %v10602_v1  ;;  %12275 = vst [vmem:[#allocation75_spill] sm:$0xff] %v10614_v22  ;;  %v12285_v23 = vld [vmem:[#allocation107_spill] sm:$0xff]  ;;  %v12289_v38 = vld [vmem:[#allocation36_spill] sm:$0xff] }
 0x2c8   :  { %12277 = vst [vmem:[#allocation74_spill] sm:$0xff] %v10620_v20  ;;  %12279 = vst [vmem:[#allocation76_spill] sm:$0xff] %v10624_v28  ;;  %v10645_v19 = vmul.f32 %v12286_v39, %v12285_v23  ;;  %v10653_v1 = vmul.f32 %v12289_v38, %v12288_v48  ;;  %v12291_v3 = vld [vmem:[#allocation109_spill] sm:$0xff]  ;;  %v12293_v10 = vld [vmem:[#allocation14_spill] sm:$0xff] }
 0x2c9   :  { %12281 = vst [vmem:[#allocation79_spill] sm:$0xff] %v10628_v47  ;;  %12283 = vst [vmem:[#allocation78_spill] sm:$0xff] %v10637_v16  ;;  %v10657_v56 = vmul.f32 %v9906_v53, %v12291_v3  ;;  %v12294_v25 = vld [vmem:[#allocation12_spill] sm:$0xff]  ;;  %v12297_v52 = vld [vmem:[#allocation111_spill] sm:$0xff] }
 0x2ca   :  { %12287 = vst [vmem:[#allocation83_spill] sm:$0xff] %v10645_v19  ;;  %12290 = vst [vmem:[#allocation82_spill] sm:$0xff] %v10653_v1  ;;  %v12295_v8 = vpack.c.bf16 %v12293_v10, %v12294_v25  ;;  %v12296_v58 = vld [vmem:[#allocation108_spill] sm:$0xff]  ;;  %v10671_v48 = vmul.f32 %v9896_v42, %v12297_v52  ;;  %v12299_v28 = vld [vmem:[#allocation110_spill] sm:$0xff] }
 0x2cb   :  { %12292 = vst [vmem:[#allocation87_spill] sm:$0xff] %v10657_v56  ;;  %v10667_v22 = vmul.f32 %v9873_v29, %v12296_v58  ;;  %v10675_v3 = vmul.f32 %v9975_v33, %v12299_v28  ;;  %v12301_v47 = vld [vmem:[#allocation15_spill] sm:$0xff]  ;;  %v12302_v20 = vld [vmem:[#allocation22_spill] sm:$0xff]  ;;  %v12304_v58 = vld [vmem:[#allocation113_spill] sm:$0xff] }
 0x2cc   :  { %7492 = vmatmul.mubr.msk.bf16.vlgmr.msra.gmra.mrb[8].mxu1 %vm2654_vm3, %v12295_v8  ;;  %12298 = vst [vmem:[#allocation86_spill] sm:$0xff] %v10671_v48  ;;  %v12303_v10 = vpack.c.bf16 %v12301_v47, %v12302_v20  ;;  %v10686_v25 = vmul.f32 %v9994_v55, %v12304_v58  ;;  %v12306_v52 = vld [vmem:[#allocation112_spill] sm:$0xff]  ;;  %v12308_v20 = vld [vmem:[#allocation115_spill] sm:$0xff]  ;;  %v12309_v58 = vld [vmem:[#allocation114_spill] sm:$0xff] }
 0x2cd   :  { %12300 = vst [vmem:[#allocation25_spill] sm:$0xff] %v10675_v3  ;;  %7508 = vmatpush3.bf16.msra.mxu1 %v10335_v59  ;;  %v10690_v23 = vmul.f32 %v9964_v17, %v12306_v52  ;;  %v8038_v47 = vld [vmem:[%s11682_s6 + $0x50] sm:$0xff]   ;;  %v10705_v8 = vmul.f32 %v10051_v31, %v12309_v58  ;;  %v12310_v19 = vld [vmem:[#allocation117_spill] sm:$0xff]  ;;  %v12315_v3 = vld [vmem:[#allocation11_spill] sm:$0xff] }
 0x2ce   :  { %7495 = vmatprep.mubr.msk.bf16.mxu1 %vm2654_vm3, %v12303_v10  ;;  %12305 = vst [vmem:[#allocation90_spill] sm:$0xff] %v10686_v25  ;;  %7509 = vmatprep.subr.bf16.mxu1 %v8037_v14  ;;  %v10701_v10 = vmul.f32 %v9986_v51, %v12308_v20  ;;  %v10711_v1 = vmul.f32 %v10065_v37, %v12310_v19  ;;  %v12311_v16 = vld [vmem:[#allocation116_spill] sm:$0xff]  ;;  %v12312_v20 = vld [vmem:[#allocation121_spill] sm:$0xff]  ;;  %v12317_v52 = vld [vmem:[#allocation123_spill] sm:$0xff] }
 0x2cf   :  { %12307 = vst [vmem:[#allocation89_spill] sm:$0xff] %v10690_v23  ;;  %v10715_v28 = vmul.f32 %v10037_v63, %v12311_v16  ;;  %v10721_v48 = vmul.f32 %v9871_v44, %v12312_v20  ;;  %v12314_v58 = vld [vmem:[#allocation120_spill] sm:$0xff]  ;;  %v10731_v25 = vmul.f32 %v10281_v0, %v12317_v52  ;;  %v12318_v16 = vld [vmem:[#allocation122_spill] sm:$0xff]  ;;  %v8039_v44 = vld [vmem:[%s11682_s6 + $0x58] sm:$0xff]  }
 0x2d0   :  { %v10725_v56 = vmul.f32 %v12315_v3, %v12314_v58  ;;  %v10735_v23 = vmul.f32 %v10273_v36, %v12318_v16  ;;  %v12320_v58 = vld [vmem:[#allocation124_spill] sm:$0xff]  ;;  %v12321_v52 = vld [vmem:[#allocation77_spill] sm:$0xff]  ;;  %v12332_v16 = vld [vmem:[#allocation26_spill] sm:$0xff] }
 0x2d1   :  { %12313 = vst [vmem:[#allocation32_spill] sm:$0xff] %v10721_v48  ;;  %7510 = vmatpush3.bf16.msra.mxu1 %v8037_v14  ;;  %v12319_v14 = vld [vmem:[#allocation125_spill] sm:$0xff]  ;;  %v10748_v0 = vmul.f32 %v10289_v32, %v12320_v58  ;;  %v10752_v36 = vmul.f32 %v10349_v2, %v12321_v52  ;;  %v12322_v19 = vld [vmem:[#allocation80_spill] sm:$0xff] }
 0x2d2   :  { %12316 = vst [vmem:[#allocation93_spill] sm:$0xff] %v10725_v56  ;;  %7511 = vmatprep.subr.bf16.mxu1 %v8038_v47  ;;  %v10744_v20 = vmul.f32 %v10318_v4, %v12319_v14  ;;  %v10758_v59 = vmul.f32 %v10330_v24, %v12322_v19  ;;  %v12323_v3 = vld [vmem:[#allocation81_spill] sm:$0xff]  ;;  %v12324_v4 = vld [vmem:[#allocation84_spill] sm:$0xff] }
 0x2d3   :  { %v10762_v48 = vmul.f32 %v10371_v12, %v12323_v3  ;;  %v10766_v14 = vmul.f32 %v10363_v18, %v12324_v4  ;;  %v12325_v32 = vld [vmem:[#allocation24_spill] sm:$0xff]  ;;  %v12326_v58 = vld [vmem:[#allocation21_spill] sm:$0xff]  ;;  %v12330_v3 = vld [vmem:[#allocation91_spill] sm:$0xff] }
 0x2d4   :  { %v12327_v56 = vpack.c.bf16 %v12325_v32, %v12326_v58  ;;  %v12328_v52 = vld [vmem:[#allocation85_spill] sm:$0xff]  ;;  %v12329_v19 = vld [vmem:[#allocation88_spill] sm:$0xff]  ;;  %v10784_v18 = vmul.f32 %v12261_v41, %v12330_v3  ;;  %v12331_v4 = vld [vmem:[#allocation10_spill] sm:$0xff] }
 0x2d5   :  { %v10776_v24 = vmul.f32 %v10391_v11, %v12328_v52  ;;  %v10780_v12 = vmul.f32 %v10377_v9, %v12329_v19  ;;  %v12333_v32 = vpack.c.bf16 %v12331_v4, %v12332_v16  ;;  %7512 = vmatpush3.bf16.msra.mxu1 %v8038_v47  ;;  %v12334_v58 = vld [vmem:[#allocation71_spill] sm:$0xff]  ;;  %v8040_v41 = vld [vmem:[%s11682_s6 + $0x60] sm:$0xff]   ;;  %v12336_v19 = vld [vmem:[#allocation17_spill] sm:$0xff] }
 0x2d6   :  { %7496 = vmatmul.mubr.msk.bf16.gmra.mrb[12].mxu1 %vm2654_vm3, %v12327_v56  ;;  %v10796_v9 = vmul.f32 %v10180_v7, %v12334_v58  ;;  %7513 = vmatprep.subr.bf16.mxu1 %v8039_v44  ;;  %v12335_v52 = vld [vmem:[#allocation18_spill] sm:$0xff]  ;;  %v12338_v7 = vld [vmem:[#allocation28_spill] sm:$0xff]  ;;  %v12339_v4 = vld [vmem:[#allocation27_spill] sm:$0xff] }
 0x2d7   :  { %7499 = vmatprep.mubr.msk.bf16.mxu1 %vm2654_vm3, %v12333_v32  ;;  %v12337_v3 = vpack.c.bf16 %v12335_v52, %v12336_v19  ;;  %v12340_v32 = vpack.c.bf16 %v12338_v7, %v12339_v4  ;;  %v12341_v58 = vld [vmem:[#allocation29_spill] sm:$0xff]  ;;  %v12342_v11 = vld [vmem:[#allocation30_spill] sm:$0xff]  ;;  %v12344_v16 = vld [vmem:[#allocation31_spill] sm:$0xff] }
 0x2d8   :  { %v12343_v56 = vpack.c.bf16 %v12341_v58, %v12342_v11  ;;  %v12345_v2 = vld [vmem:[#allocation37_spill] sm:$0xff]  ;;  %v12347_v52 = vld [vmem:[#allocation38_spill] sm:$0xff]  ;;  %v12351_v4 = vld [vmem:[#allocation35_spill] sm:$0xff] }
 0x2d9   :  { %7514 = vmatpush3.bf16.msra.mxu1 %v8039_v44  ;;  %v12346_v47 = vpack.c.bf16 %v12344_v16, %v12345_v2  ;;  %v8041_v44 = vld [vmem:[%s11682_s6 + $0x68] sm:$0xff]   ;;  %v12348_v19 = vld [vmem:[#allocation34_spill] sm:$0xff]  ;;  %v12350_v7 = vld [vmem:[#allocation41_spill] sm:$0xff] }
 0x2da   :  { %7531 = vmatprep.subr.bf16.mxu1 %v8040_v41  ;;  %v8042_v2 = vld [vmem:[%s11682_s6 + $0x70] sm:$0xff]   ;;  %v12353_v11 = vld [vmem:[#allocation43_spill] sm:$0xff]  ;;  %v12356_v58 = vld [vmem:[#allocation45_spill] sm:$0xff] }
 0x2db   :  { %v12354_v16 = vld [vmem:[#allocation44_spill] sm:$0xff] }
 0x2de   :  { %7500 = vmatmul.mubr.msk.bf16.gmra.mrb[16].mxu1 %vm2654_vm3, %v12337_v3  ;;  %v12349_v3 = vpack.c.bf16 %v12347_v52, %v12348_v19  ;;  %v12357_v52 = vpack.c.bf16 %v10322_v46, %v12356_v58  ;;  %v12359_v19 = vld [vmem:[#allocation47_spill] sm:$0xff]  ;;  %v12364_v46 = vld [vmem:[#allocation49_spill] sm:$0xff] }
 0x2df   :  { %7503 = vmatprep.mubr.msk.bf16.mxu1 %vm2654_vm3, %v12340_v32  ;;  %v12352_v32 = vpack.c.bf16 %v12350_v7, %v12351_v4  ;;  %v12361_v7 = vld [vmem:[#allocation50_spill] sm:$0xff]  ;;  %v12362_v4 = vld [vmem:[#allocation48_spill] sm:$0xff] }
 0x2e6   :  { %7504 = vmatmul.mubr.msk.bf16.gmra.mrb[20].mxu1 %vm2654_vm3, %v12343_v56  ;;  %v8043_v56 = vld [vmem:[%s11682_s6 + $0x78] sm:$0xff]  }
 0x2e7   :  { %7515 = vmatprep.mubr.msk.bf16.mxu1 %vm2654_vm3, %v12346_v47  ;;  %v12355_v47 = vpack.c.bf16 %v12353_v11, %v12354_v16  ;;  %v12366_v11 = vpack.c.bf16 %v10412_v35, %v10405_v13  ;;  %v12367_v16 = vld [vmem:[#allocation55_spill] sm:$0xff]  ;;  %v8047_v13 = vld [vmem:[%s11682_s6 + $0x98] sm:$0xff]   ;;  %v12371_v35 = vld [vmem:[#allocation52_spill] sm:$0xff] }
 0x2ee   :  { %7516 = vmatmul.mubr.msk.bf16.vlgmr.msra.gmra.mrb[8].mxu1 %vm2654_vm3, %v12349_v3 }
 0x2ef   :  { %7519 = vmatprep.mubr.msk.bf16.mxu1 %vm2654_vm3, %v12352_v32  ;;  %7532 = vmatpush3.bf16.msra.mxu1 %v8040_v41  ;;  %v8044_v41 = vld [vmem:[%s11682_s6 + $0x80] sm:$0xff]   ;;  %v12363_v32 = vpack.c.bf16 %v12361_v7, %v12362_v4  ;;  %v12378_v7 = vld [vmem:[#allocation53_spill] sm:$0xff] }
 0x2f0   :  { %7533 = vmatprep.subr.bf16.mxu1 %v8041_v44 }
 0x2f3   :  { %7534 = vmatpush3.bf16.msra.mxu1 %v8041_v44  ;;  %v12358_v44 = vld [vmem:[#allocation46_spill] sm:$0xff] }
 0x2f4   :  { %7535 = vmatprep.subr.bf16.mxu1 %v8042_v2  ;;  %v12360_v3 = vpack.c.bf16 %v12358_v44, %v12359_v19  ;;  %v12372_v44 = vpack.c.bf16 %v10430_v57, %v12371_v35  ;;  %v12375_v19 = vld [vmem:[#allocation54_spill] sm:$0xff] }
 0x2f5   :  { %v12377_v57 = vld [vmem:[#allocation58_spill] sm:$0xff] }
 0x2f6   :  { %7520 = vmatmul.mubr.msk.bf16.gmra.mrb[12].mxu1 %vm2654_vm3, %v12355_v47  ;;  %v12368_v47 = vld [vmem:[#allocation56_spill] sm:$0xff]  ;;  %v12379_v4 = vpack.c.bf16 %v12377_v57, %v12378_v7  ;;  %v12402_v57 = vpack.c.bf16 %v10520_v5, %v10516_v62  ;;  %v12403_v7 = vld [vmem:[#allocation63_spill] sm:$0xff] }
 0x2f7   :  { %7523 = vmatprep.mubr.msk.bf16.mxu1 %vm2654_vm3, %v12357_v52  ;;  %7536 = vmatpush3.bf16.msra.mxu1 %v8042_v2  ;;  %v12365_v2 = vpack.c.bf16 %v10401_v6, %v12364_v46  ;;  %v12369_v58 = vpack.c.bf16 %v12367_v16, %v12368_v47  ;;  %v12370_v52 = vpack.c.bf16 %v10420_v49, %v10416_v26  ;;  %v8046_v6 = vld [vmem:[%s11682_s6 + $0x90] sm:$0xff]   ;;  %v12373_v26 = vld [vmem:[#allocation51_spill] sm:$0xff] }
 0x2f8   :  { %7537 = vmatprep.subr.bf16.mxu1 %v8043_v56  ;;  %v12374_v49 = vpack.c.bf16 %v10446_v15, %v12373_v26  ;;  %v12380_v15 = vld [vmem:[#allocation39_spill] sm:$0xff]  ;;  %v12381_v46 = vld [vmem:[#allocation60_spill] sm:$0xff] }
 0x2f9   :  { %v12386_v47 = vld [vmem:[#allocation19_spill] sm:$0xff]  ;;  %v12409_v62 = vld [vmem:[#allocation68_spill] sm:$0xff] }
 0x2fa   :  { %v12410_v5 = vpack.c.bf16 %v10556_v30, %v12409_v62  ;;  %v12416_v30 = vpack.c.bf16 %v10588_v34, %v10584_v40  ;;  %v12419_v34 = vld [vmem:[#allocation69_spill] sm:$0xff]  ;;  %v12420_v40 = vld [vmem:[#allocation70_spill] sm:$0xff] }
 0x2fb   :  { %7538 = vmatpush3.bf16.msra.mxu1 %v8043_v56  ;;  %v8045_v56 = vld [vmem:[%s11682_s6 + $0x88] sm:$0xff]   ;;  %v12447_v62 = vld [vmem:[#allocation118_spill] sm:$0xff] }
 0x2fc   :  { %7555 = vmatprep.subr.bf16.mxu1 %v8044_v41 }
 0x2fe   :  { %7524 = vmatmul.mubr.msk.bf16.gmra.mrb[16].mxu1 %vm2654_vm3, %v12360_v3  ;;  %v12376_v3 = vpack.c.bf16 %v10460_v61, %v12375_v19  ;;  %v8049_v61 = vld [vmem:[%s11682_s6 + $0xa8] sm:$0xff]   ;;  %v8054_v19 = vld [vmem:[%s11682_s6 + $0xd0] sm:$0xff]  }
 0x2ff   :  { %7527 = vmatprep.mubr.msk.bf16.mxu1 %vm2654_vm3, %v12363_v32  ;;  %v3341_v32 = vpack.c.bf16 %v12286_v39, %v12380_v15  ;;  %v8050_v39 = vld [vmem:[%s11682_s6 + $0xb0] sm:$0xff]  }
 0x306   :  { %7528 = vmatmul.mubr.msk.bf16.gmra.mrb[20].mxu1 %vm2654_vm3, %v12365_v2  ;;  %v12382_v2 = vld [vmem:[#allocation57_spill] sm:$0xff] }
 0x307   :  { %7539 = vmatprep.mubr.msk.bf16.mxu1 %vm2654_vm3, %v12366_v11  ;;  %v12383_v11 = vpack.c.bf16 %v12381_v46, %v12382_v2  ;;  %v8056_v46 = vld [vmem:[%s11682_s6 + $0xe0] sm:$0xff]   ;;  %v12406_v2 = vld [vmem:[#allocation65_spill] sm:$0xff] }
 0x30e   :  { %7540 = vmatmul.mubr.msk.bf16.vlgmr.msra.gmra.mrb[8].mxu1 %vm2654_vm3, %v12369_v58  ;;  %v12387_v58 = vpack.c.bf16 %v9906_v53, %v12386_v47  ;;  %v12389_v53 = vpack.c.bf16 %v9994_v55, %v9975_v33  ;;  %v8064_v33 = vld [vmem:[%s11684_s8] sm:$0xff]   ;;  %v8057_v47 = vld [vmem:[%s11682_s6 + $0xe8] sm:$0xff]  }
 0x30f   :  { %7543 = vmatprep.mubr.msk.bf16.mxu1 %vm2654_vm3, %v12370_v52  ;;  %7556 = vmatpush3.bf16.msra.mxu1 %v8044_v41  ;;  %v8048_v41 = vld [vmem:[%s11682_s6 + $0xa0] sm:$0xff]   ;;  %v8051_v52 = vld [vmem:[%s11682_s6 + $0xb8] sm:$0xff]  }
 0x310   :  { %7557 = vmatprep.subr.bf16.mxu1 %v8045_v56  ;;  %7675 = vmatprep.subr.bf16.mxu0 %v8064_v33 }
 0x311   :  { %7676 = vmatpush3.bf16.msra.mxu0 %v8064_v33 }
 0x313   :  { %7558 = vmatpush3.bf16.msra.mxu1 %v8045_v56  ;;  %v12384_v56 = vld [vmem:[#allocation42_spill] sm:$0xff] }
 0x314   :  { %7559 = vmatprep.subr.bf16.mxu1 %v8046_v6  ;;  %v12385_v16 = vpack.c.bf16 %v12384_v56, %v12289_v38  ;;  %v12388_v38 = vpack.c.bf16 %v9896_v42, %v9873_v29  ;;  %v12391_v29 = vpack.c.bf16 %v10065_v37, %v10051_v31  ;;  %v12392_v42 = vld [vmem:[#allocation23_spill] sm:$0xff]  ;;  %v8066_v31 = vld [vmem:[%s11684_s8 + $0x10] sm:$0xff]   ;;  %v12396_v37 = vld [vmem:[#allocation73_spill] sm:$0xff]  ;;  %v12411_v56 = vpack.c.bf16 %v10570_v54, %v10566_v50 }
 0x315   :  { %v12393_v55 = vpack.c.bf16 %v12392_v42, %v10037_v63  ;;  %v8053_v63 = vld [vmem:[%s11682_s6 + $0xc8] sm:$0xff]   ;;  %v8059_v50 = vld [vmem:[%s11682_s6 + $0xf8] sm:$0xff]  }
 0x316   :  { %7544 = vmatmul.mubr.msk.bf16.gmra.mrb[12].mxu1 %vm2654_vm3, %v12372_v44  ;;  %v12397_v44 = vld [vmem:[#allocation40_spill] sm:$0xff]  ;;  %v12417_v54 = vld [vmem:[#allocation67_spill] sm:$0xff] }
 0x317   :  { %7547 = vmatprep.mubr.msk.bf16.mxu1 %vm2654_vm3, %v12374_v49  ;;  %7560 = vmatpush3.bf16.msra.mxu1 %v8046_v6  ;;  %v8052_v6 = vld [vmem:[%s11682_s6 + $0xc0] sm:$0xff]   ;;  %v12398_v26 = vpack.c.bf16 %v12396_v37, %v12397_v44  ;;  %v8061_v37 = vld [vmem:[%s11682_s6 + $0x108] sm:$0xff]  }
 0x318   :  { %7561 = vmatprep.subr.bf16.mxu1 %v8047_v13  ;;  %v12400_v49 = vld [vmem:[#allocation62_spill] sm:$0xff] }
 0x319   :  { %v12433_v44 = vld [vmem:[#allocation126_spill] sm:$0xff] }
 0x31b   :  { %7562 = vmatpush3.bf16.msra.mxu1 %v8047_v13  ;;  %v12390_v13 = vpack.c.bf16 %v9986_v51, %v9964_v17  ;;  %v8065_v17 = vld [vmem:[%s11684_s8 + $0x8] sm:$0xff]  }
 0x31c   :  { %7579 = vmatprep.subr.bf16.mxu1 %v8048_v41  ;;  %v12394_v51 = vld [vmem:[#allocation59_spill] sm:$0xff]  ;;  %7677 = vmatprep.subr.bf16.mxu0 %v8065_v17 }
 0x31d   :  { %v12395_v35 = vpack.c.bf16 %v10504_v45, %v12394_v51  ;;  %7678 = vmatpush3.bf16.msra.mxu0 %v8065_v17  ;;  %v12399_v45 = vld [vmem:[#allocation61_spill] sm:$0xff]  ;;  %v12428_v17 = vld [vmem:[#allocation78_spill] sm:$0xff] }
 0x31e   :  { %7548 = vmatmul.mubr.msk.bf16.gmra.mrb[16].mxu1 %vm2654_vm3, %v12376_v3  ;;  %7679 = vmatprep.subr.bf16.mxu0 %v8066_v31  ;;  %v8055_v3 = vld [vmem:[%s11682_s6 + $0xd8] sm:$0xff]   ;;  %v12429_v51 = vpack.c.bf16 %v10641_v27, %v12428_v17  ;;  %v8062_v27 = vld [vmem:[%s11682_s6 + $0x110] sm:$0xff]  }
 0x31f   :  { %7551 = vmatprep.mubr.msk.bf16.mxu1 %vm2654_vm3, %v12379_v4  ;;  %v12404_v4 = vld [vmem:[#allocation64_spill] sm:$0xff] }
 0x321   :  { %7680 = vmatpush3.bf16.msra.mxu0 %v8066_v31  ;;  %v12431_v31 = vld [vmem:[#allocation83_spill] sm:$0xff] }
 0x326   :  { %7552 = vmatmul.mubr.msk.bf16.gmra.mrb[20].mxu1 %vm2654_vm3, %v12383_v11  ;;  %v12407_v11 = vld [vmem:[#allocation66_spill] sm:$0xff] }
 0x327   :  { %7563 = vmatprep.mubr.msk.bf16.mxu1 %vm2654_vm3, %v3341_v32  ;;  %v12405_v32 = vpack.c.bf16 %v12403_v7, %v12404_v4  ;;  %v12442_v4 = vld [vmem:[#allocation90_spill] sm:$0xff] }
 0x32e   :  { %7564 = vmatmul.mubr.msk.bf16.vlgmr.msra.gmra.mrb[8].mxu1 %vm2654_vm3, %v12385_v16  ;;  %v12412_v16 = vpack.c.bf16 %v10580_v43, %v10574_v21  ;;  %v8058_v43 = vld [vmem:[%s11682_s6 + $0xf0] sm:$0xff]   ;;  %v12418_v21 = vpack.c.bf16 %v10598_v60, %v12417_v54  ;;  %v12425_v60 = vld [vmem:[#allocation79_spill] sm:$0xff] }
 0x32f   :  { %7567 = vmatprep.mubr.msk.bf16.mxu1 %vm2654_vm3, %v12387_v58  ;;  %7580 = vmatpush3.bf16.msra.mxu1 %v8048_v41  ;;  %v12401_v41 = vpack.c.bf16 %v12399_v45, %v12400_v49  ;;  %v12413_v58 = vld [vmem:[#allocation16_spill] sm:$0xff]  ;;  %v12436_v49 = vld [vmem:[#allocation87_spill] sm:$0xff] }
 0x330   :  { %7581 = vmatprep.subr.bf16.mxu1 %v8049_v61 }
 0x333   :  { %7582 = vmatpush3.bf16.msra.mxu1 %v8049_v61  ;;  %v12408_v61 = vpack.c.bf16 %v12406_v2, %v12407_v11  ;;  %v12445_v2 = vpack.c.bf16 %v10715_v28, %v10711_v1  ;;  %v12446_v11 = vld [vmem:[#allocation119_spill] sm:$0xff]  ;;  %v12454_v1 = vpack.c.bf16 %v10735_v23, %v10731_v25  ;;  %v12455_v28 = vpack.c.bf16 %v10748_v0, %v10744_v20  ;;  %v4358_v20 = vpop.permute.xlu1 %4357 }
 0x334   :  { %7583 = vmatprep.subr.bf16.mxu1 %v8050_v39  ;;  %v12458_v23 = vpack.c.bf16 %v10780_v12, %v10776_v24  ;;  %v12459_v25 = vpack.c.bf16 %v10796_v9, %v10784_v18 }
 0x336   :  { %7568 = vmatmul.mubr.msk.bf16.gmra.mrb[12].mxu1 %vm2654_vm3, %v12388_v38  ;;  %v12421_v38 = vpack.c.bf16 %v12419_v34, %v12420_v40 }
 0x337   :  { %7571 = vmatprep.mubr.msk.bf16.mxu1 %vm2654_vm3, %v12389_v53  ;;  %7584 = vmatpush3.bf16.msra.mxu1 %v8050_v39  ;;  %v12414_v39 = vld [vmem:[#allocation13_spill] sm:$0xff]  ;;  %v8060_v53 = vld [vmem:[%s11682_s6 + $0x100] sm:$0xff]   ;;  %v4368_v0 = vpop.permute.xlu1 %4367 }
 0x338   :  { %7585 = vmatprep.subr.bf16.mxu1 %v8051_v52 }
 0x33b   :  { %7586 = vmatpush3.bf16.msra.mxu1 %v8051_v52  ;;  %v12415_v52 = vpack.c.bf16 %v12413_v58, %v12414_v39  ;;  %v4378_v24 = vpop.permute.xlu1 %4377 }
 0x33c   :  { %7603 = vmatprep.subr.bf16.mxu1 %v8052_v6 }
 0x33e   :  { %7572 = vmatmul.mubr.msk.bf16.gmra.mrb[16].mxu1 %vm2654_vm3, %v12390_v13  ;;  %v12423_v13 = vld [vmem:[#allocation75_spill] sm:$0xff] }
 0x33f   :  { %7575 = vmatprep.mubr.msk.bf16.mxu1 %vm2654_vm3, %v12391_v29 }
 0x346   :  { %7576 = vmatmul.mubr.msk.bf16.gmra.mrb[20].mxu1 %vm2654_vm3, %v12393_v55  ;;  %v12426_v55 = vld [vmem:[#allocation76_spill] sm:$0xff] }
 0x347   :  { %7587 = vmatprep.mubr.msk.bf16.mxu1 %vm2654_vm3, %v12395_v35  ;;  %v12427_v33 = vpack.c.bf16 %v12425_v60, %v12426_v55  ;;  %v12430_v35 = vld [vmem:[#allocation82_spill] sm:$0xff] }
 0x34e   :  { %7588 = vmatmul.mubr.msk.bf16.vlgmr.msra.gmra.mrb[8].mxu1 %vm2654_vm3, %v12398_v26  ;;  %v12434_v26 = vld [vmem:[#allocation20_spill] sm:$0xff] }
 0x34f   :  { %7591 = vmatprep.mubr.msk.bf16.mxu1 %vm2654_vm3, %v12401_v41  ;;  %7604 = vmatpush3.bf16.msra.mxu1 %v8052_v6  ;;  %v12422_v6 = vld [vmem:[#allocation74_spill] sm:$0xff]  ;;  %v12435_v45 = vpack.c.bf16 %v12433_v44, %v12434_v26  ;;  %v12437_v41 = vpack.c.bf16 %v10667_v22, %v12436_v49  ;;  %v12441_v22 = vld [vmem:[#allocation89_spill] sm:$0xff] }
 0x350   :  { %7605 = vmatprep.subr.bf16.mxu1 %v8053_v63  ;;  %v12424_v29 = vpack.c.bf16 %v12422_v6, %v12423_v13 }
 0x353   :  { %7606 = vmatpush3.bf16.msra.mxu1 %v8053_v63  ;;  %v12432_v63 = vpack.c.bf16 %v12430_v35, %v12431_v31 }
 0x354   :  { %7607 = vmatprep.subr.bf16.mxu1 %v8054_v19 }
 0x356   :  { %7592 = vmatmul.mubr.msk.bf16.gmra.mrb[12].mxu1 %vm2654_vm3, %v12402_v57  ;;  %v12439_v57 = vld [vmem:[#allocation86_spill] sm:$0xff] }
 0x357   :  { %7595 = vmatprep.mubr.msk.bf16.mxu1 %vm2654_vm3, %v12405_v32  ;;  %7608 = vmatpush3.bf16.msra.mxu1 %v8054_v19  ;;  %v8063_v19 = vld [vmem:[%s11682_s6 + $0x118] sm:$0xff]   ;;  %v12443_v32 = vpack.c.bf16 %v12441_v22, %v12442_v4 }
 0x358   :  { %7609 = vmatprep.subr.bf16.mxu1 %v8055_v3 }
 0x35b   :  { %7610 = vmatpush3.bf16.msra.mxu1 %v8055_v3  ;;  %v12438_v3 = vld [vmem:[#allocation25_spill] sm:$0xff] }
 0x35c   :  { %7627 = vmatprep.subr.bf16.mxu1 %v8056_v46  ;;  %v12440_v7 = vpack.c.bf16 %v12438_v3, %v12439_v57 }
 0x35e   :  { %7596 = vmatmul.mubr.msk.bf16.gmra.mrb[16].mxu1 %vm2654_vm3, %v12408_v61  ;;  %v3921_v61 = vmul.f32 %v12392_v42, %v12446_v11  ;;  %v12457_v42 = vpack.c.bf16 %v10766_v14, %v10762_v48  ;;  %v4353_v48 = vpop.permute.xlu0 %4352  ;;  %v11125_v14 = vld [vmem:[%s11683_s7] ss:$0 sm:$0xff] }
 0x35f   :  { %7599 = vmatprep.mubr.msk.bf16.mxu1 %vm2654_vm3, %v12410_v5  ;;  %v3922_v5 = vmul.f32 %v12380_v15, %v12447_v62  ;;  %v12456_v15 = vpack.c.bf16 %v10758_v59, %v10752_v36  ;;  %v8067_v59 = vld [vmem:[%s11684_s8 + $0x18] sm:$0xff]  }
 0x360   :  { %7681 = vmatprep.subr.bf16.mxu0 %v8067_v59 }
 0x361   :  { %7682 = vmatpush3.bf16.msra.mxu0 %v8067_v59 }
 0x362   :  { %v4363_v36 = vpop.permute.xlu0 %4362 }
 0x366   :  { %7600 = vmatmul.mubr.msk.bf16.gmra.mrb[20].mxu1 %vm2654_vm3, %v12411_v56  ;;  %v3930_v56 = vpack.c.bf16 %v3922_v5, %v3921_v61  ;;  %v4373_v12 = vpop.permute.xlu0 %4372 }
 0x367   :  { %7611 = vmatprep.mubr.msk.bf16.mxu1 %vm2654_vm3, %v12412_v16  ;;  %v12448_v16 = vld [vmem:[#allocation93_spill] sm:$0xff] }
 0x36a   :  { %v4383_v6 = vpop.permute.xlu0 %4382 }
 0x36e   :  { %7612 = vmatmul.mubr.msk.bf16.vlgmr.msra.gmra.mrb[8].mxu1 %vm2654_vm3, %v12415_v52 }
 0x36f   :  { %7615 = vmatprep.mubr.msk.bf16.mxu1 %vm2654_vm3, %v12416_v30  ;;  %7628 = vmatpush3.bf16.msra.mxu1 %v8056_v46  ;;  %v12444_v46 = vpack.c.bf16 %v10705_v8, %v10701_v10  ;;  %v12451_v8 = vld [vmem:[#allocation127_spill] sm:$0xff]  ;;  %v12452_v10 = vld [vmem:[#allocation72_spill] sm:$0xff] }
 0x370   :  { %7629 = vmatprep.subr.bf16.mxu1 %v8057_v47  ;;  %v12453_v39 = vpack.c.bf16 %v12451_v8, %v12452_v10 }
 0x373   :  { %7630 = vmatpush3.bf16.msra.mxu1 %v8057_v47  ;;  %v12449_v47 = vld [vmem:[#allocation32_spill] sm:$0xff] }
 0x374   :  { %7631 = vmatprep.subr.bf16.mxu1 %v8058_v43  ;;  %v12450_v58 = vpack.c.bf16 %v12448_v16, %v12449_v47 }
 0x376   :  { %7616 = vmatmul.mubr.msk.bf16.gmra.mrb[12].mxu1 %vm2654_vm3, %v12418_v21 }
 0x377   :  { %7619 = vmatprep.mubr.msk.bf16.mxu1 %vm2654_vm3, %v12421_v38  ;;  %7632 = vmatpush3.bf16.msra.mxu1 %v8058_v43  ;;  %v4388_v38 = vpop.permute.xlu1 %4387 }
 0x378   :  { %7633 = vmatprep.subr.bf16.mxu1 %v8059_v50 }
 0x37b   :  { %7634 = vmatpush3.bf16.msra.mxu1 %v8059_v50  ;;  %v4398_v26 = vpop.permute.xlu1 %4397 }
 0x37c   :  { %7651 = vmatprep.subr.bf16.mxu1 %v8060_v53 }
 0x37e   :  { %7620 = vmatmul.mubr.msk.bf16.gmra.mrb[16].mxu1 %vm2654_vm3, %v12424_v29 }
 0x37f   :  { %7623 = vmatprep.mubr.msk.bf16.mxu1 %vm2654_vm3, %v12427_v33  ;;  %v4408_v11 = vpop.permute.xlu1 %4407 }
 0x386   :  { %7624 = vmatmul.mubr.msk.bf16.gmra.mrb[20].mxu1 %vm2654_vm3, %v12429_v51 }
 0x387   :  { %7635 = vmatprep.mubr.msk.bf16.mxu1 %vm2654_vm3, %v12432_v63 }
 0x38e   :  { %7636 = vmatmul.mubr.msk.bf16.vlgmr.msra.gmra.mrb[8].mxu1 %vm2654_vm3, %v12435_v45 }
 0x38f   :  { %7639 = vmatprep.mubr.msk.bf16.mxu1 %vm2654_vm3, %v12437_v41  ;;  %7652 = vmatpush3.bf16.msra.mxu1 %v8060_v53 }
 0x390   :  { %7653 = vmatprep.subr.bf16.mxu1 %v8061_v37 }
 0x393   :  { %7654 = vmatpush3.bf16.msra.mxu1 %v8061_v37 }
 0x394   :  { %7655 = vmatprep.subr.bf16.mxu1 %v8062_v27 }
 0x396   :  { %7640 = vmatmul.mubr.msk.bf16.gmra.mrb[12].mxu1 %vm2654_vm3, %v12440_v7 }
 0x397   :  { %7643 = vmatprep.mubr.msk.bf16.mxu1 %vm2654_vm3, %v12443_v32  ;;  %7656 = vmatpush3.bf16.msra.mxu1 %v8062_v27  ;;  %v4393_v27 = vpop.permute.xlu0 %4392 }
 0x398   :  { %7657 = vmatprep.subr.bf16.mxu1 %v8063_v19 }
 0x39b   :  { %7658 = vmatpush3.bf16.msra.mxu1 %v8063_v19 }
 0x39e   :  { %7644 = vmatmul.mubr.msk.bf16.gmra.mrb[16].mxu1 %vm2654_vm3, %v12444_v46 }
 0x39f   :  { %7647 = vmatprep.mubr.msk.bf16.mxu1 %vm2654_vm3, %v12445_v2 }
 0x3a6   :  { %7648 = vmatmul.mubr.msk.bf16.gmra.mrb[20].mxu1 %vm2654_vm3, %v3930_v56  ;;  %v4403_v56 = vpop.permute.xlu0 %4402 }
 0x3a7   :  { %7659 = vmatprep.mubr.msk.bf16.mxu1 %vm2654_vm3, %v12450_v58 }
 0x3ae   :  { %7660 = vmatmul.mubr.msk.bf16.vlgmr.msra.gmra.mrb[8].mxu1 %vm2654_vm3, %v12453_v39 }
 0x3af   :  { %7663 = vmatprep.mubr.msk.bf16.mxu1 %vm2654_vm3, %v12454_v1 }
 0x3b6   :  { %7664 = vmatmul.mubr.msk.bf16.gmra.mrb[12].mxu1 %vm2654_vm3, %v12455_v28 }
 0x3b7   :  { %7667 = vmatprep.mubr.msk.bf16.mxu1 %vm2654_vm3, %v12456_v15 }
 0x3be   :  { %7668 = vmatmul.mubr.msk.bf16.gmra.mrb[16].mxu1 %vm2654_vm3, %v12457_v42 }
 0x3bf   :  { %7671 = vmatprep.mubr.msk.bf16.mxu1 %vm2654_vm3, %v12458_v23  ;;  %v4418_v23 = vpop.permute.xlu1 %4417 }
 0x3c6   :  { %7672 = vmatmul.mubr.msk.bf16.gmra.mrb[20].mxu1 %vm2654_vm3, %v12459_v25 }
 0x481   :  { %v7661_v18 = vpop.f32.mrb[8].mxu1 }
 0x482   :  { %v4304_v9 = vadd.f32 %v7661_v18, %v11125_v14  ;;  %v4216_v52 = vpop.f32.mrb[9].mxu1 }
 0x483   :  { %v4302_v30 = vadd.f32 %v11125_v14, %v4216_v52  ;;  %v7662_v43 = vpop.f32.mrb[10].mxu1 }
 0x484   :  { %v4320_v50 = vmax.f32 %v4304_v9, 0.0  ;;  %v4305_v54 = vadd.f32 %v7662_v43, %v11125_v14  ;;  %v4219_v21 = vpop.f32.mrb[11].mxu1 }
 0x485   :  { %v4318_v34 = vmax.f32 %v4302_v30, 0.0  ;;  %v4303_v40 = vadd.f32 %v11125_v14, %v4219_v21 }
 0x486   :  { %v4321_v53 = vmax.f32 %v4305_v54, 0.0  ;;  %v4432_v29 = vmul.f32 %v4363_v36, %v4320_v50 }
 0x487   :  { %v4319_v13 = vmax.f32 %v4303_v40, 0.0  ;;  %v4430_v55 = vmul.f32 %v4353_v48, %v4318_v34 }
 0x488   :  { %v4433_v60 = vmul.f32 %v4368_v0, %v4321_v53 }
 0x489   :  { %v4431_v33 = vmul.f32 %v4358_v20, %v4319_v13  ;;  %v7665_v17 = vpop.f32.mrb[12].mxu1  ;;  %v4413_v20 = vpop.permute.xlu0 %4412 }
 0x48a   :  { %v4447_v51 = vpack.c.bf16 %v4433_v60, %v4432_v29  ;;  %v4308_v35 = vadd.f32 %v7665_v17, %v11125_v14  ;;  %v4232_v31 = vpop.f32.mrb[13].mxu1 }
 0x48b   :  { %v4446_v63 = vpack.c.bf16 %v4431_v33, %v4430_v55  ;;  %v4306_v37 = vadd.f32 %v11125_v14, %v4232_v31  ;;  %v7666_v44 = vpop.f32.mrb[14].mxu1  ;;  %v8074_v31 = vld [vmem:[%s11687_s11 + $0x48] sm:$0xff]  }
 0x48c   :  { %v4324_v45 = vmax.f32 %v4308_v35, 0.0  ;;  %v4309_v49 = vadd.f32 %v7666_v44, %v11125_v14  ;;  %v4235_v41 = vpop.f32.mrb[15].mxu1  ;;  %v8072_v35 = vld [vmem:[%s11687_s11] sm:$0xff]   ;;  %v8080_v44 = vld [vmem:[%s11687_s11 + $0x10] sm:$0xff]  }
 0x48d   :  { %v4322_v19 = vmax.f32 %v4306_v37, 0.0  ;;  %v4307_v3 = vadd.f32 %v11125_v14, %v4235_v41  ;;  %7683 = vmatprep.mubr.msk.bf16.mxu0 %vm2654_vm3, %v4446_v63  ;;  %v4423_v53 = vpop.permute.xlu0 %4422  ;;  %v8076_v63 = vld [vmem:[%s11687_s11 + $0x8] sm:$0xff]   ;;  %v8078_v37 = vld [vmem:[%s11687_s11 + $0x50] sm:$0xff]   ;;  %v8088_v41 = vld [vmem:[%s11687_s11 + $0x20] sm:$0xff]  }
 0x48e   :  { %v4325_v57 = vmax.f32 %v4309_v49, 0.0  ;;  %7684 = vmatmul.mubr.msk.bf16.vlgmr.msra.gmra.mrb[16].mxu0 %vm2654_vm3, %v4447_v51  ;;  %v4436_v22 = vmul.f32 %v4383_v6, %v4324_v45  ;;  %v8070_v51 = vld [vmem:[%s11687_s11 + $0x40] sm:$0xff]   ;;  %v8084_v45 = vld [vmem:[%s11687_s11 + $0x18] sm:$0xff]  }
 0x48f   :  { %v4323_v7 = vmax.f32 %v4307_v3, 0.0  ;;  %v4434_v32 = vmul.f32 %v4373_v12, %v4322_v19  ;;  %7094 = vmatprep.subr.bf16.mxu0 %v8070_v51  ;;  %v8086_v49 = vld [vmem:[%s11687_s11 + $0x60] sm:$0xff]   ;;  %v8092_v19 = vld [vmem:[%s11687_s11 + $0x28] sm:$0xff]   ;;  %v8094_v3 = vld [vmem:[%s11687_s11 + $0x70] sm:$0xff]  }
 0x490   :  { %v4437_v4 = vmul.f32 %v4388_v38, %v4325_v57  ;;  %v4428_v38 = vpop.permute.xlu1 %4427  ;;  %7095 = vmatpush3.bf16.msra.mxu0 %v8072_v35  ;;  %v8096_v57 = vld [vmem:[%s11687_s11 + $0x30] sm:$0xff]  }
 0x491   :  { %v4435_v46 = vmul.f32 %v4378_v24, %v4323_v7  ;;  %v7669_v2 = vpop.f32.mrb[16].mxu1  ;;  %7096 = vmatprep.subr.bf16.mxu0 %v8074_v31  ;;  %v11199_v7 = vld [vmem:[%s11685_s9] ss:$0 sm:$0xff] }
 0x492   :  { %v4449_v61 = vpack.c.bf16 %v4437_v4, %v4436_v22  ;;  %v4312_v62 = vadd.f32 %v7669_v2, %v11125_v14  ;;  %v4248_v5 = vpop.f32.mrb[17].mxu1 }
 0x493   :  { %v4448_v16 = vpack.c.bf16 %v4435_v46, %v4434_v32  ;;  %v4310_v47 = vadd.f32 %v11125_v14, %v4248_v5  ;;  %v7670_v58 = vpop.f32.mrb[18].mxu1 }
 0x494   :  { %v4328_v8 = vmax.f32 %v4312_v62, 0.0  ;;  %v4313_v10 = vadd.f32 %v7670_v58, %v11125_v14  ;;  %v4251_v39 = vpop.f32.mrb[19].mxu1  ;;  %7097 = vmatpush3.bf16.msra.mxu0 %v8076_v63 }
 0x495   :  { %v4326_v1 = vmax.f32 %v4310_v47, 0.0  ;;  %v4311_v28 = vadd.f32 %v11125_v14, %v4251_v39  ;;  %7687 = vmatprep.mubr.msk.bf16.mxu0 %vm2654_vm3, %v4448_v16  ;;  %7098 = vmatprep.subr.bf16.mxu0 %v8078_v37 }
 0x496   :  { %v4329_v15 = vmax.f32 %v4313_v10, 0.0  ;;  %7688 = vmatmul.mubr.msk.bf16.gmra.mrb[20].mxu0 %vm2654_vm3, %v4449_v61  ;;  %v4440_v25 = vmul.f32 %v4403_v56, %v4328_v8 }
 0x497   :  { %v4327_v42 = vmax.f32 %v4311_v28, 0.0  ;;  %v4438_v48 = vmul.f32 %v4393_v27, %v4326_v1  ;;  %v8090_v27 = vld [vmem:[%s11687_s11 + $0x68] sm:$0xff]  }
 0x498   :  { %v4441_v59 = vmul.f32 %v4408_v11, %v4329_v15  ;;  %7099 = vmatpush3.bf16.msra.mxu0 %v8080_v44 }
 0x499   :  { %v4439_v0 = vmul.f32 %v4398_v26, %v4327_v42  ;;  %v7673_v36 = vpop.f32.mrb[20].mxu1  ;;  %v8082_v26 = vld [vmem:[%s11687_s11 + $0x58] sm:$0xff]  }
 0x49a   :  { %v4451_v24 = vpack.c.bf16 %v4441_v59, %v4440_v25  ;;  %v4316_v12 = vadd.f32 %v7673_v36, %v11125_v14  ;;  %v4264_v18 = vpop.f32.mrb[21].mxu1  ;;  %7100 = vmatprep.subr.bf16.mxu0 %v8082_v26 }
 0x49b   :  { %v4450_v9 = vpack.c.bf16 %v4439_v0, %v4438_v48  ;;  %v4314_v52 = vadd.f32 %v11125_v14, %v4264_v18  ;;  %v7674_v30 = vpop.f32.mrb[22].mxu1 }
 0x49c   :  { %v4332_v43 = vmax.f32 %v4316_v12, 0.0  ;;  %v4317_v50 = vadd.f32 %v7674_v30, %v11125_v14  ;;  %v4267_v54 = vpop.f32.mrb[23].mxu1  ;;  %7101 = vmatpush3.bf16.msra.mxu0 %v8084_v45 }
 0x49d   :  { %v4330_v21 = vmax.f32 %v4314_v52, 0.0  ;;  %v4315_v34 = vadd.f32 %v11125_v14, %v4267_v54  ;;  %7691 = vmatprep.mubr.msk.bf16.mxu0 %vm2654_vm3, %v4450_v9  ;;  %v8068_v14 = vld [vmem:[%s11686_s10] sm:$0xff]   ;;  %7102 = vmatprep.subr.bf16.mxu0 %v8086_v49 }
 0x49e   :  { %v4333_v40 = vmax.f32 %v4317_v50, 0.0  ;;  %7692 = vmatmul.mubr.msk.bf16.gmra.mrb[24].mxu0 %vm2654_vm3, %v4451_v24  ;;  %v4444_v13 = vmul.f32 %v4423_v53, %v4332_v43  ;;  %7715 = vmatprep.mubr.bf16.mxu1 %v8068_v14 }
 0x49f   :  { %v4331_v6 = vmax.f32 %v4315_v34, 0.0  ;;  %v4442_v60 = vmul.f32 %v4413_v20, %v4330_v21 }
 0x4a0   :  { %v4445_v29 = vmul.f32 %v4428_v38, %v4333_v40  ;;  %7103 = vmatpush3.bf16.msra.mxu0 %v8088_v41 }
 0x4a1   :  { %v4443_v55 = vmul.f32 %v4418_v23, %v4331_v6  ;;  %7104 = vmatprep.subr.bf16.mxu0 %v8090_v27 }
 0x4a2   :  { %v4453_v33 = vpack.c.bf16 %v4445_v29, %v4444_v13 }
 0x4a3   :  { %v4452_v17 = vpack.c.bf16 %v4443_v55, %v4442_v60 }
 0x4a4   :  { %7105 = vmatpush3.bf16.msra.mxu0 %v8092_v19 }
 0x4a5   :  { %7695 = vmatprep.mubr.msk.bf16.mxu0 %vm2654_vm3, %v4452_v17  ;;  %7106 = vmatprep.subr.bf16.mxu0 %v8094_v3 }
 0x4a6   :  { %7696 = vmatmul.mubr.msk.bf16.gmra.mrb[28].mxu0 %vm2654_vm3, %v4453_v33 }
 0x4a8   :  { %7107 = vmatpush3.bf16.msra.mxu0 %v8096_v57 }
 0x561   :  { %v7685_v22 = vpop.f32.mrb[16].mxu0 }
 0x562   :  { %v4560_v4 = vadd.f32 %v7685_v22, %v11199_v7  ;;  %v4551_v32 = vpop.f32.mrb[17].mxu0 }
 0x563   :  { %v4552_v46 = vadd.f32 %v11199_v7, %v4551_v32  ;;  %v7686_v2 = vpop.f32.mrb[18].mxu0 }
 0x564   :  { %v4616_v11 = vmax.f32 %v4560_v4, 0.0  ;;  %v4563_v61 = vadd.f32 %v7686_v2, %v11199_v7  ;;  %v4554_v62 = vpop.f32.mrb[19].mxu0 }
 0x565   :  { %v11204_v5 = vmax.f32 %v4552_v46, 0.0  ;;  %v4555_v56 = vadd.f32 %v11199_v7, %v4554_v62 }
 0x566   :  { %v4617_v16 = vmax.f32 %v4563_v61, 0.0  ;;  %v4632_v58 = vrot.slane %v4616_v11, 1 }
 0x567   :  { %v4615_v47 = vmax.f32 %v4555_v56, 0.0  ;;  %v4630_v10 = vrot.slane %v11204_v5, 1 }
 0x568   :  { %v4633_v8 = vrot.slane %v4617_v16, 1 }
 0x569   :  { %v4631_v39 = vrot.slane %v4615_v47, 1  ;;  %v7689_v1 = vpop.f32.mrb[20].mxu0 }
 0x56a   :  { %v4658_v15 = vsel %vm665_vm2, %v4632_v58, %v4633_v8  ;;  %v4576_v42 = vadd.f32 %v7689_v1, %v11199_v7  ;;  %v4567_v23 = vpop.f32.mrb[21].mxu0 }
 0x56b   :  { %v4664_v25 = vmax.f32 %v4616_v11, %v4658_v15  ;;  %v4659_v59 = vsel %vm665_vm2, %v4631_v39, %v4632_v58  ;;  %v11217_v20 = vsel %vm665_vm2, %v4630_v10, %v4631_v39  ;;  %v4568_v48 = vadd.f32 %v11199_v7, %v4567_v23  ;;  %v7690_v0 = vpop.f32.mrb[22].mxu0 }
 0x56c   :  { %v4662_v36 = vmax.f32 %v11204_v5, %v11217_v20  ;;  %v4663_v24 = vmax.f32 %v4615_v47, %v4659_v59  ;;  %v4620_v12 = vmax.f32 %v4576_v42, 0.0  ;;  %v4579_v18 = vadd.f32 %v7690_v0, %v11199_v7  ;;  %v4570_v9 = vpop.f32.mrb[23].mxu0 }
 0x56d   :  { %v4680_v52 = vmax.f32 %v4664_v25, %v4617_v16  ;;  %v4618_v30 = vmax.f32 %v4568_v48, 0.0  ;;  %v4571_v43 = vadd.f32 %v11199_v7, %v4570_v9 }
 0x56e   :  { %v4678_v50 = vmax.f32 %v4662_v36, %v4615_v47  ;;  %v4679_v54 = vmax.f32 %v4663_v24, %v4616_v11  ;;  %v4621_v21 = vmax.f32 %v4579_v18, 0.0  ;;  %v4636_v38 = vrot.slane %v4620_v12, 1 }
 0x56f   :  { %v4634_v34 = vrot.slane %v4618_v30, 1  ;;  %v4619_v40 = vmax.f32 %v4571_v43, 0.0 }
 0x570   :  { %v4637_v53 = vrot.slane %v4621_v21, 1  ;;  %v4694_v6 = vmax.f32 %v4678_v50, %v4659_v59  ;;  %v4695_v13 = vmax.f32 %v4679_v54, %v4658_v15 }
 0x571   :  { %v4657_v29 = vsel %vm665_vm2, %v4633_v8, %v4634_v34  ;;  %v4635_v60 = vrot.slane %v4619_v40, 1  ;;  %v7693_v55 = vpop.f32.mrb[24].mxu0 }
 0x572   :  { %v4665_v33 = vmax.f32 %v4617_v16, %v4657_v29  ;;  %v4654_v17 = vsel %vm665_vm2, %v4636_v38, %v4637_v53  ;;  %v4592_v14 = vadd.f32 %v7693_v55, %v11199_v7  ;;  %v4583_v51 = vpop.f32.mrb[25].mxu0  ;;  %v4714_v35 = vpack.c.bf16 %v4695_v13, %v4694_v6 }
 0x573   :  { %v4668_v31 = vmax.f32 %v4620_v12, %v4654_v17  ;;  %v4655_v63 = vsel %vm665_vm2, %v4635_v60, %v4636_v38  ;;  %v4656_v37 = vsel %vm665_vm2, %v4634_v34, %v4635_v60  ;;  %v4584_v44 = vadd.f32 %v11199_v7, %v4583_v51  ;;  %v7694_v26 = vpop.f32.mrb[26].mxu0 }
 0x574   :  { %v4681_v45 = vmax.f32 %v4665_v33, %v4618_v30  ;;  %v4666_v49 = vmax.f32 %v4618_v30, %v4656_v37  ;;  %v4667_v41 = vmax.f32 %v4619_v40, %v4655_v63  ;;  %v4624_v27 = vmax.f32 %v4592_v14, 0.0  ;;  %v4586_v19 = vpop.f32.mrb[27].mxu0  ;;  %7699 = vmatprep.subr.bf16.mxu1 %v4714_v35 }
 0x575   :  { %v4684_v3 = vmax.f32 %v4668_v31, %v4621_v21  ;;  %v4622_v57 = vmax.f32 %v4584_v44, 0.0  ;;  %v4595_v22 = vadd.f32 %v7694_v26, %v11199_v7  ;;  %v4587_v4 = vadd.f32 %v11199_v7, %v4586_v19  ;;  %7700 = vmatpush3.bf16.msra.mxu1 %v4714_v35 }
 0x576   :  { %v4682_v32 = vmax.f32 %v4666_v49, %v4619_v40  ;;  %v4683_v46 = vmax.f32 %v4667_v41, %v4620_v12  ;;  %v4696_v2 = vmax.f32 %v4680_v52, %v4657_v29  ;;  %v4697_v56 = vmax.f32 %v4681_v45, %v4656_v37 }
 0x577   :  { %v4638_v11 = vrot.slane %v4622_v57, 1  ;;  %v4625_v61 = vmax.f32 %v4595_v22, 0.0  ;;  %v4623_v62 = vmax.f32 %v4587_v4, 0.0  ;;  %v4640_v16 = vrot.slane %v4624_v27, 1 }
 0x578   :  { %v4698_v47 = vmax.f32 %v4682_v32, %v4655_v63  ;;  %v4699_v58 = vmax.f32 %v4683_v46, %v4654_v17  ;;  %v4715_v42 = vpack.c.bf16 %v4697_v56, %v4696_v2 }
 0x579   :  { %v4653_v8 = vsel %vm665_vm2, %v4637_v53, %v4638_v11  ;;  %v4641_v39 = vrot.slane %v4625_v61, 1  ;;  %v4639_v1 = vrot.slane %v4623_v62, 1  ;;  %v7697_v15 = vpop.f32.mrb[28].mxu0 }
 0x57a   :  { %v4669_v23 = vmax.f32 %v4621_v21, %v4653_v8  ;;  %v4608_v25 = vadd.f32 %v7697_v15, %v11199_v7  ;;  %v4599_v59 = vpop.f32.mrb[29].mxu0  ;;  %v4716_v48 = vpack.c.bf16 %v4699_v58, %v4698_v47  ;;  %v4700_v0 = vmax.f32 %v4684_v3, %v4653_v8  ;;  %7701 = vmatprep.subr.bf16.mxu1 %v4715_v42  ;;  %v8069_v8 = vld [vmem:[%s11686_s10 + $0x8] sm:$0xff]   ;;  %v8079_v15 = vld [vmem:[%s11687_s11 + $0xd0] sm:$0xff]  }
 0x57b   :  { %v4650_v36 = vsel %vm665_vm2, %v4640_v16, %v4641_v39  ;;  %v4651_v24 = vsel %vm665_vm2, %v4639_v1, %v4640_v16  ;;  %v4652_v12 = vsel %vm665_vm2, %v4638_v11, %v4639_v1  ;;  %v4600_v18 = vadd.f32 %v11199_v7, %v4599_v59  ;;  %v7698_v9 = vpop.f32.mrb[30].mxu0  ;;  %7702 = vmatpush3.bf16.msra.mxu1 %v4715_v42  ;;  %v8077_v1 = vld [vmem:[%s11687_s11 + $0x88] sm:$0xff]   ;;  %v8081_v42 = vld [vmem:[%s11687_s11 + $0x90] sm:$0xff]   ;;  %v8087_v59 = vld [vmem:[%s11687_s11 + $0xe0] sm:$0xff]  }
 0x57c   :  { %v4685_v52 = vmax.f32 %v4669_v23, %v4622_v57  ;;  %v4672_v30 = vmax.f32 %v4624_v27, %v4650_v36  ;;  %v4670_v43 = vmax.f32 %v4622_v57, %v4652_v12  ;;  %v4671_v50 = vmax.f32 %v4623_v62, %v4651_v24  ;;  %v4602_v54 = vpop.f32.mrb[31].mxu0  ;;  %7703 = vmatprep.subr.bf16.mxu1 %v4716_v48  ;;  %v8083_v23 = vld [vmem:[%s11687_s11 + $0xd8] sm:$0xff]  }
 0x57d   :  { %v4628_v21 = vmax.f32 %v4608_v25, 0.0  ;;  %v4626_v34 = vmax.f32 %v4600_v18, 0.0  ;;  %v4611_v40 = vadd.f32 %v7698_v9, %v11199_v7  ;;  %v4603_v38 = vadd.f32 %v11199_v7, %v4602_v54  ;;  %v8085_v25 = vld [vmem:[%s11687_s11 + $0x98] sm:$0xff]  }
 0x57e   :  { %v4688_v53 = vmax.f32 %v4672_v30, %v4625_v61  ;;  %v4686_v6 = vmax.f32 %v4670_v43, %v4623_v62  ;;  %v4687_v13 = vmax.f32 %v4671_v50, %v4624_v27  ;;  %v4701_v29 = vmax.f32 %v4685_v52, %v4652_v12  ;;  %v8097_v12 = vld [vmem:[%s11687_s11 + $0xb0] sm:$0xff]   ;;  %v8098_v18 = vld [vmem:[%s11687_s11 + $0x78] sm:$0xff]   ;;  %v8102_v43 = vld [vmem:[%s11687_s11 + $0x140] sm:$0xff]  }
 0x57f   :  { %v4642_v60 = vrot.slane %v4626_v34, 1  ;;  %v4629_v55 = vmax.f32 %v4611_v40, 0.0  ;;  %v4627_v33 = vmax.f32 %v4603_v38, 0.0  ;;  %7704 = vmatpush3.bf16.msra.mxu1 %v4716_v48  ;;  %v4644_v35 = vrot.slane %v4628_v21, 1  ;;  %v8089_v48 = vld [vmem:[%s11687_s11 + $0xa0] sm:$0xff]   ;;  %v8099_v9 = vld [vmem:[%s11687_s11 + $0xf8] sm:$0xff]   ;;  %7108 = vmatprep.subr.bf16.mxu0 %v8098_v18 }
 0x580   :  { %v4717_v17 = vpack.c.bf16 %v4701_v29, %v4700_v0  ;;  %v4702_v14 = vmax.f32 %v4686_v6, %v4651_v24  ;;  %v4703_v51 = vmax.f32 %v4687_v13, %v4650_v36  ;;  %v8091_v0 = vld [vmem:[%s11687_s11 + $0xe8] sm:$0xff]   ;;  %v8095_v24 = vld [vmem:[%s11687_s11 + $0xf0] sm:$0xff]   ;;  %v8100_v52 = vld [vmem:[%s11687_s11 + $0x38] sm:$0xff]  }
 0x581   :  { %v4649_v31 = vsel %vm665_vm2, %v4641_v39, %v4642_v60  ;;  %v4645_v63 = vrot.slane %v4629_v55, 1  ;;  %v4643_v37 = vrot.slane %v4627_v33, 1  ;;  %v8075_v39 = vld [vmem:[%s11687_s11 + $0xc8] sm:$0xff]   ;;  %v8101_v30 = vld [vmem:[%s11687_s11 + $0xb8] sm:$0xff]   ;;  %v8103_v50 = vld [vmem:[%s11687_s11 + $0x1c0] sm:$0xff]   ;;  %7109 = vmatpush3.bf16.msra.mxu0 %v8100_v52 }
 0x582   :  { %v4673_v44 = vmax.f32 %v4625_v61, %v4649_v31  ;;  %7705 = vmatprep.subr.bf16.mxu1 %v4717_v17  ;;  %v4718_v7 = vpack.c.bf16 %v4703_v51, %v4702_v14  ;;  %v4704_v26 = vmax.f32 %v4688_v53, %v4649_v31  ;;  %v8093_v36 = vld [vmem:[%s11687_s11 + $0xa8] sm:$0xff]   ;;  %7138 = vmatprep.subr.bf16.mxu0 %v8102_v43  ;;  %v8142_v52 = vld [vmem:[%s11687_s11 + $0x250] sm:$0xff]  }
 0x583   :  { %v4646_v45 = vsel %vm665_vm2, %v4644_v35, %v4645_v63  ;;  %v4661_v49 = vsel %vm665_vm2, %v4645_v63, %v4630_v10  ;;  %v4647_v41 = vsel %vm665_vm2, %v4643_v37, %v4644_v35  ;;  %v4648_v27 = vsel %vm665_vm2, %v4642_v60, %v4643_v37  ;;  %7706 = vmatpush3.bf16.msra.mxu1 %v4717_v17  ;;  %v8104_v60 = vld [vmem:[%s11687_s11 + $0x100] sm:$0xff]   ;;  %v8106_v35 = vld [vmem:[%s11687_s11 + $0x148] sm:$0xff]   ;;  %v8144_v43 = vld [vmem:[%s11687_s11 + $0x210] sm:$0xff]  }
 0x584   :  { %v4689_v19 = vmax.f32 %v4673_v44, %v4626_v34  ;;  %v4676_v3 = vmax.f32 %v4628_v21, %v4646_v45  ;;  %v4677_v57 = vmax.f32 %v4629_v55, %v4661_v49  ;;  %v4674_v22 = vmax.f32 %v4626_v34, %v4648_v27  ;;  %7707 = vmatprep.subr.bf16.mxu1 %v4718_v7  ;;  %v8105_v17 = vld [vmem:[%s11687_s11 + $0x180] sm:$0xff]   ;;  %v8107_v37 = vld [vmem:[%s11687_s11 + $0x1c8] sm:$0xff]  }
 0x585   :  { %v4675_v4 = vmax.f32 %v4627_v33, %v4647_v41  ;;  %v8108_v44 = vld [vmem:[%s11687_s11 + $0x108] sm:$0xff]  }
 0x586   :  { %v4692_v32 = vmax.f32 %v4676_v3, %v4629_v55  ;;  %v4693_v46 = vmax.f32 %v4677_v57, %v11204_v5  ;;  %v4690_v2 = vmax.f32 %v4674_v22, %v4627_v33  ;;  %v4705_v11 = vmax.f32 %v4689_v19, %v4648_v27  ;;  %v8071_v5 = vld [vmem:[%s11687_s11 + $0xc0] sm:$0xff]   ;;  %v8114_v27 = vld [vmem:[%s11687_s11 + $0x158] sm:$0xff]   ;;  %v8140_v18 = vld [vmem:[%s11687_s11 + $0x208] sm:$0xff]  }
 0x587   :  { %v4691_v61 = vmax.f32 %v4675_v4, %v4628_v21  ;;  %7708 = vmatpush3.bf16.msra.mxu1 %v4718_v7  ;;  %v8109_v7 = vld [vmem:[%s11687_s11 + $0x188] sm:$0xff]   ;;  %v8115_v19 = vld [vmem:[%s11687_s11 + $0x1d8] sm:$0xff]   ;;  %v8118_v22 = vld [vmem:[%s11687_s11 + $0x160] sm:$0xff]  }
 0x588   :  { %v4719_v10 = vpack.c.bf16 %v4705_v11, %v4704_v26  ;;  %v4706_v62 = vmax.f32 %v4690_v2, %v4647_v41  ;;  %v4708_v56 = vmax.f32 %v4692_v32, %v4661_v49  ;;  %v4709_v28 = vmax.f32 %v4693_v46, %v11217_v20  ;;  %v8073_v20 = vld [vmem:[%s11687_s11 + $0x80] sm:$0xff]   ;;  %v8110_v26 = vld [vmem:[%s11687_s11 + $0x150] sm:$0xff]   ;;  %v8116_v3 = vld [vmem:[%s11687_s11 + $0x118] sm:$0xff]  }
 0x589   :  { %v4707_v16 = vmax.f32 %v4691_v61, %v4646_v45  ;;  %v8111_v45 = vld [vmem:[%s11687_s11 + $0x1d0] sm:$0xff]   ;;  %v8117_v57 = vld [vmem:[%s11687_s11 + $0x198] sm:$0xff]   ;;  %v8119_v4 = vld [vmem:[%s11687_s11 + $0x1e0] sm:$0xff]  }
 0x58a   :  { %7709 = vmatprep.subr.bf16.mxu1 %v4719_v10  ;;  %v4721_v47 = vpack.c.bf16 %v4709_v28, %v4708_v56  ;;  %v8112_v49 = vld [vmem:[%s11687_s11 + $0x110] sm:$0xff]   ;;  %v8120_v32 = vld [vmem:[%s11687_s11 + $0x120] sm:$0xff]   ;;  %v8122_v2 = vld [vmem:[%s11687_s11 + $0x168] sm:$0xff]  }
 0x58b   :  { %v4720_v58 = vpack.c.bf16 %v4707_v16, %v4706_v62  ;;  %7710 = vmatpush3.bf16.msra.mxu1 %v4719_v10  ;;  %v8113_v41 = vld [vmem:[%s11687_s11 + $0x190] sm:$0xff]   ;;  %v8121_v46 = vld [vmem:[%s11687_s11 + $0x1a0] sm:$0xff]   ;;  %v8123_v11 = vld [vmem:[%s11687_s11 + $0x1e8] sm:$0xff]  }
 0x58c   :  { %v8124_v61 = vld [vmem:[%s11687_s11 + $0x128] sm:$0xff]   ;;  %v8126_v62 = vld [vmem:[%s11687_s11 + $0x170] sm:$0xff]  }
 0x58d   :  { %7711 = vmatprep.subr.bf16.mxu1 %v4720_v58  ;;  %v8125_v10 = vld [vmem:[%s11687_s11 + $0x1a8] sm:$0xff]   ;;  %v8127_v56 = vld [vmem:[%s11687_s11 + $0x1f0] sm:$0xff]  }
 0x58e   :  { %v8128_v28 = vld [vmem:[%s11687_s11 + $0x130] sm:$0xff]  }
 0x58f   :  { %7712 = vmatpush3.bf16.msra.mxu1 %v4720_v58  ;;  %v8129_v16 = vld [vmem:[%s11687_s11 + $0x1b0] sm:$0xff]   ;;  %v8131_v58 = vld [vmem:[%s11687_s11 + $0x1f8] sm:$0xff]  }
 0x590   :  { %7713 = vmatprep.subr.bf16.mxu1 %v4721_v47 }
 0x593   :  { %7714 = vmatpush3.bf16.msra.mxu1 %v4721_v47  ;;  %v8130_v47 = vld [vmem:[%s11687_s11 + $0x178] sm:$0xff]  }
 0x594   :  { %7116 = vmatprep.subr.bf16.mxu1 %v8071_v5  ;;  %v8132_v5 = vld [vmem:[%s11687_s11 + $0x138] sm:$0xff]  }
 0x596   :  { %7716 = vmatmul.mubr.bf16.vlgmr.msra.gmra.mrb[24].mxu1 %v8069_v8  ;;  %v8133_v8 = vld [vmem:[%s11687_s11 + $0x1b8] sm:$0xff]  }
 0x597   :  { %7117 = vmatpush3.bf16.msra.mxu1 %v8073_v20  ;;  %v8134_v20 = vld [vmem:[%s11687_s11 + $0x240] sm:$0xff]  }
 0x598   :  { %7118 = vmatprep.subr.bf16.mxu1 %v8075_v39 }
 0x59b   :  { %7119 = vmatpush3.bf16.msra.mxu1 %v8077_v1  ;;  %v8135_v1 = vld [vmem:[%s11687_s11 + $0x2c0] sm:$0xff]  }
 0x59c   :  { %7120 = vmatprep.subr.bf16.mxu1 %v8079_v15 }
 0x59f   :  { %7121 = vmatpush3.bf16.msra.mxu1 %v8081_v42  ;;  %v8136_v42 = vld [vmem:[%s11687_s11 + $0x200] sm:$0xff]  }
 0x5a0   :  { %7122 = vmatprep.subr.bf16.mxu1 %v8083_v23 }
 0x5a3   :  { %7123 = vmatpush3.bf16.msra.mxu1 %v8085_v25 }
 0x5a4   :  { %7124 = vmatprep.subr.bf16.mxu1 %v8087_v59  ;;  %v8137_v59 = vld [vmem:[%s11687_s11 + $0x280] sm:$0xff]  }
 0x5a7   :  { %7125 = vmatpush3.bf16.msra.mxu1 %v8089_v48 }
 0x5a8   :  { %7126 = vmatprep.subr.bf16.mxu1 %v8091_v0  ;;  %v8138_v0 = vld [vmem:[%s11687_s11 + $0x248] sm:$0xff]  }
 0x5ab   :  { %7127 = vmatpush3.bf16.msra.mxu1 %v8093_v36 }
 0x5ac   :  { %7128 = vmatprep.subr.bf16.mxu1 %v8095_v24  ;;  %v8139_v24 = vld [vmem:[%s11687_s11 + $0x2c8] sm:$0xff]  }
 0x5af   :  { %7129 = vmatpush3.bf16.msra.mxu1 %v8097_v12 }
 0x5b0   :  { %7130 = vmatprep.subr.bf16.mxu1 %v8099_v9  ;;  %v8141_v9 = vld [vmem:[%s11687_s11 + $0x288] sm:$0xff]  }
 0x5b3   :  { %7131 = vmatpush3.bf16.msra.mxu1 %v8101_v30  ;;  %v8143_v30 = vld [vmem:[%s11687_s11 + $0x2d0] sm:$0xff]  }
 0x5b4   :  { %7160 = vmatprep.subr.bf16.mxu1 %v8103_v50  ;;  %v8145_v50 = vld [vmem:[%s11687_s11 + $0x290] sm:$0xff]  }
 0x669   :  { %v11325_v54 = vpop.f32.mrb[24].mxu1 }
 0x66a   :  { %v4768_v21 = vpop.f32.mrb[25].mxu1  ;;  %v4798_v15 = vrot.slane %v11325_v54, 2  ;;  %v4802_v23 = vrot.slane %v11325_v54, 6 }
 0x66b   :  { %v4786_v34 = vrot.slane %v4768_v21, 4  ;;  %v11327_v40 = vpop.f32.mrb[26].mxu1  ;;  %v4784_v38 = vrot.slane %v4768_v21, 2  ;;  %v4788_v53 = vrot.slane %v4768_v21, 6  ;;  %v4811_v55 = vpack.c.bf16 %v4768_v21, %v4768_v21  ;;  %v8146_v21 = vld [vmem:[%s11687_s11 + $0x258] sm:$0xff]  }
 0x66c   :  { %v11329_v6 = vpop.f32.mrb[27].mxu1  ;;  %v4820_v36 = vpack.c.bf16 %v4798_v15, %v4798_v15  ;;  %v4822_v12 = vpack.c.bf16 %v4802_v23, %v4802_v23  ;;  %v8186_v15 = vld [vmem:[%s11687_s11 + $0x368] sm:$0xff]  }
 0x66d   :  { %v4813_v13 = vpack.c.bf16 %v4786_v34, %v4786_v34  ;;  %v4812_v29 = vpack.c.bf16 %v4784_v38, %v4784_v38  ;;  %v4814_v33 = vpack.c.bf16 %v4788_v53, %v4788_v53  ;;  %v4791_v14 = vrot.slane %v11329_v6, 2  ;;  %v8147_v34 = vld [vmem:[%s11687_s11 + $0x2d8] sm:$0xff]   ;;  %v8188_v23 = vld [vmem:[%s11687_s11 + $0x328] sm:$0xff]  }
 0x66e   :  { %v4795_v51 = vrot.slane %v11329_v6, 6  ;;  %v4793_v39 = vrot.slane %v11329_v6, 4  ;;  %v4815_v25 = vpack.c.bf16 %v11329_v6, %v11329_v6  ;;  %v8148_v38 = vld [vmem:[%s11687_s11 + $0x218] sm:$0xff]   ;;  %v8150_v6 = vld [vmem:[%s11687_s11 + $0x260] sm:$0xff]  }
 0x66f   :  { %5890 = vmatprep.mubr.bf16.mxu0 %v4812_v29  ;;  %5930 = vmatprep.mubr.bf16.mxu1 %v4814_v33  ;;  %v4816_v31 = vpack.c.bf16 %v4791_v14, %v4791_v14  ;;  %v8149_v53 = vld [vmem:[%s11687_s11 + $0x298] sm:$0xff]   ;;  %v8152_v29 = vld [vmem:[%s11687_s11 + $0x220] sm:$0xff]   ;;  %v8155_v33 = vld [vmem:[%s11687_s11 + $0x2e8] sm:$0xff]  }
 0x670   :  { %5891 = vmatmul.mubr.bf16.vlgmr.msra.gmra.mrb[32].mxu0 %v4811_v55  ;;  %v4818_v63 = vpack.c.bf16 %v4795_v51, %v4795_v51  ;;  %5931 = vmatmul.mubr.bf16.vlgmr.msra.gmra.mrb[28].mxu1 %v4813_v13  ;;  %v4817_v48 = vpack.c.bf16 %v4793_v39, %v4793_v39  ;;  %v8151_v13 = vld [vmem:[%s11687_s11 + $0x2e0] sm:$0xff]   ;;  %v8154_v55 = vld [vmem:[%s11687_s11 + $0x268] sm:$0xff]   ;;  %v8158_v51 = vld [vmem:[%s11687_s11 + $0x270] sm:$0xff]  }
 0x671   :  { %7139 = vmatpush3.bf16.msra.mxu0 %v8104_v60  ;;  %7161 = vmatpush3.bf16.msra.mxu1 %v8105_v17  ;;  %v8153_v60 = vld [vmem:[%s11687_s11 + $0x2a0] sm:$0xff]   ;;  %v8156_v17 = vld [vmem:[%s11687_s11 + $0x228] sm:$0xff]  }
 0x672   :  { %5970 = vmatprep.mubr.bf16.mxu0 %v4816_v31  ;;  %6010 = vmatprep.mubr.bf16.mxu1 %v4818_v63  ;;  %v8157_v14 = vld [vmem:[%s11687_s11 + $0x2a8] sm:$0xff]   ;;  %v8160_v31 = vld [vmem:[%s11687_s11 + $0x230] sm:$0xff]   ;;  %v8184_v39 = vld [vmem:[%s11687_s11 + $0x320] sm:$0xff]  }
 0x673   :  { %7140 = vmatprep.subr.bf16.mxu0 %v8106_v35  ;;  %7162 = vmatprep.subr.bf16.mxu1 %v8107_v37  ;;  %v8159_v35 = vld [vmem:[%s11687_s11 + $0x2f0] sm:$0xff]   ;;  %v8162_v37 = vld [vmem:[%s11687_s11 + $0x278] sm:$0xff]  }
 0x674   :  { %v8161_v63 = vld [vmem:[%s11687_s11 + $0x2b0] sm:$0xff]  }
 0x675   :  { %7141 = vmatpush3.bf16.msra.mxu0 %v8108_v44  ;;  %7163 = vmatpush3.bf16.msra.mxu1 %v8109_v7  ;;  %v8163_v44 = vld [vmem:[%s11687_s11 + $0x2f8] sm:$0xff]  }
 0x676   :  { %7142 = vmatprep.subr.bf16.mxu0 %v8110_v26  ;;  %7164 = vmatprep.subr.bf16.mxu1 %v8111_v45  ;;  %v8164_v7 = vld [vmem:[%s11687_s11 + $0x238] sm:$0xff]   ;;  %v8166_v45 = vld [vmem:[%s11687_s11 + $0x340] sm:$0xff]  }
 0x677   :  { %v8165_v26 = vld [vmem:[%s11687_s11 + $0x2b8] sm:$0xff]  }
 0x679   :  { %7143 = vmatpush3.bf16.msra.mxu0 %v8112_v49  ;;  %7165 = vmatpush3.bf16.msra.mxu1 %v8113_v41  ;;  %v4800_v49 = vrot.slane %v11325_v54, 4  ;;  %v8167_v41 = vld [vmem:[%s11687_s11 + $0x3c0] sm:$0xff]  }
 0x67a   :  { %7144 = vmatprep.subr.bf16.mxu0 %v8114_v27  ;;  %7166 = vmatprep.subr.bf16.mxu1 %v8115_v19  ;;  %v4805_v27 = vrot.slane %v11327_v40, 2  ;;  %v8168_v19 = vld [vmem:[%s11687_s11 + $0x300] sm:$0xff]  }
 0x67d   :  { %7145 = vmatpush3.bf16.msra.mxu0 %v8116_v3  ;;  %7167 = vmatpush3.bf16.msra.mxu1 %v8117_v57  ;;  %v4809_v3 = vrot.slane %v11327_v40, 6  ;;  %v4819_v57 = vpack.c.bf16 %v11325_v54, %v11325_v54 }
 0x67e   :  { %7146 = vmatprep.subr.bf16.mxu0 %v8118_v22  ;;  %7168 = vmatprep.subr.bf16.mxu1 %v8119_v4  ;;  %v8169_v22 = vld [vmem:[%s11687_s11 + $0x380] sm:$0xff]   ;;  %v4821_v4 = vpack.c.bf16 %v4800_v49, %v4800_v49 }
 0x67f   :  { %v4826_v54 = vpack.c.bf16 %v4809_v3, %v4809_v3 }
 0x681   :  { %7147 = vmatpush3.bf16.msra.mxu0 %v8120_v32  ;;  %7169 = vmatpush3.bf16.msra.mxu1 %v8121_v46  ;;  %v8170_v32 = vld [vmem:[%s11687_s11 + $0x348] sm:$0xff]   ;;  %v4824_v46 = vpack.c.bf16 %v4805_v27, %v4805_v27 }
 0x682   :  { %7148 = vmatprep.subr.bf16.mxu0 %v8122_v2  ;;  %7170 = vmatprep.subr.bf16.mxu1 %v8123_v11  ;;  %v8171_v2 = vld [vmem:[%s11687_s11 + $0x3c8] sm:$0xff]  }
 0x683   :  { %v8172_v11 = vld [vmem:[%s11687_s11 + $0x308] sm:$0xff]  }
 0x685   :  { %7149 = vmatpush3.bf16.msra.mxu0 %v8124_v61  ;;  %7171 = vmatpush3.bf16.msra.mxu1 %v8125_v10  ;;  %v8173_v61 = vld [vmem:[%s11687_s11 + $0x388] sm:$0xff]   ;;  %v8174_v10 = vld [vmem:[%s11687_s11 + $0x350] sm:$0xff]  }
 0x686   :  { %7150 = vmatprep.subr.bf16.mxu0 %v8126_v62  ;;  %7172 = vmatprep.subr.bf16.mxu1 %v8127_v56  ;;  %v8175_v62 = vld [vmem:[%s11687_s11 + $0x3d0] sm:$0xff]  }
 0x687   :  { %v8176_v56 = vld [vmem:[%s11687_s11 + $0x310] sm:$0xff]  }
 0x689   :  { %7151 = vmatpush3.bf16.msra.mxu0 %v8128_v28  ;;  %7173 = vmatpush3.bf16.msra.mxu1 %v8129_v16  ;;  %v8177_v28 = vld [vmem:[%s11687_s11 + $0x390] sm:$0xff]   ;;  %v8178_v16 = vld [vmem:[%s11687_s11 + $0x358] sm:$0xff]  }
 0x68a   :  { %7152 = vmatprep.subr.bf16.mxu0 %v8130_v47  ;;  %7174 = vmatprep.subr.bf16.mxu1 %v8131_v58  ;;  %v8179_v47 = vld [vmem:[%s11687_s11 + $0x3d8] sm:$0xff]  }
 0x68b   :  { %v8180_v58 = vld [vmem:[%s11687_s11 + $0x318] sm:$0xff]  }
 0x68d   :  { %7153 = vmatpush3.bf16.msra.mxu0 %v8132_v5  ;;  %7175 = vmatpush3.bf16.msra.mxu1 %v8133_v8  ;;  %v8181_v5 = vld [vmem:[%s11687_s11 + $0x398] sm:$0xff]   ;;  %v8182_v8 = vld [vmem:[%s11687_s11 + $0x360] sm:$0xff]  }
 0x68e   :  { %7182 = vmatprep.subr.bf16.mxu0 %v8134_v20  ;;  %7204 = vmatprep.subr.bf16.mxu1 %v8135_v1  ;;  %v8183_v20 = vld [vmem:[%s11687_s11 + $0x3e0] sm:$0xff]  }
 0x68f   :  { %v8185_v1 = vld [vmem:[%s11687_s11 + $0x3a0] sm:$0xff]  }
 0x690   :  { %5971 = vmatmul.mubr.bf16.vlgmr.msra.gmra.mrb[36].mxu0 %v4815_v25  ;;  %6011 = vmatmul.mubr.bf16.vlgmr.msra.gmra.mrb[32].mxu1 %v4817_v48  ;;  %v8189_v25 = vld [vmem:[%s11687_s11 + $0x3a8] sm:$0xff]   ;;  %v8191_v48 = vld [vmem:[%s11687_s11 + $0x3f0] sm:$0xff]  }
 0x691   :  { %7183 = vmatpush3.bf16.msra.mxu0 %v8136_v42  ;;  %6050 = vmatprep.mubr.bf16.mxu0 %v4820_v36  ;;  %v8187_v42 = vld [vmem:[%s11687_s11 + $0x3e8] sm:$0xff]   ;;  %v8193_v36 = vld [vmem:[%s11687_s11 + $0x3b0] sm:$0xff]  }
 0x692   :  { %7205 = vmatpush3.bf16.msra.mxu1 %v8137_v59  ;;  %6090 = vmatprep.mubr.bf16.mxu1 %v4822_v12  ;;  %v8190_v59 = vld [vmem:[%s11687_s11 + $0x370] sm:$0xff]   ;;  %v8195_v12 = vld [vmem:[%s11687_s11 + $0x3f8] sm:$0xff]  }
 0x693   :  { %7184 = vmatprep.subr.bf16.mxu0 %v8138_v0  ;;  %7206 = vmatprep.subr.bf16.mxu1 %v8139_v24  ;;  %v8192_v0 = vld [vmem:[%s11687_s11 + $0x330] sm:$0xff]   ;;  %v8194_v24 = vld [vmem:[%s11687_s11 + $0x378] sm:$0xff]  }
 0x695   :  { %7185 = vmatpush3.bf16.msra.mxu0 %v8140_v18  ;;  %v8196_v18 = vld [vmem:[%s11687_s11 + $0x338] sm:$0xff]  }
 0x696   :  { %7207 = vmatpush3.bf16.msra.mxu1 %v8141_v9  ;;  %7186 = vmatprep.subr.bf16.mxu0 %v8142_v52  ;;  %v8197_v9 = vld [vmem:[%s11687_s11 + $0x3b8] sm:$0xff]   ;;  %v4807_v52 = vrot.slane %v11327_v40, 4 }
 0x697   :  { %7208 = vmatprep.subr.bf16.mxu1 %v8143_v30  ;;  %v4823_v30 = vpack.c.bf16 %v11327_v40, %v11327_v40  ;;  %v8200_v40 = vld [vmem:[%s11689_s13 + $0x10] sm:$0xff]  }
 0x699   :  { %7187 = vmatpush3.bf16.msra.mxu0 %v8144_v43  ;;  %v4825_v43 = vpack.c.bf16 %v4807_v52, %v4807_v52 }
 0x69a   :  { %7209 = vmatpush3.bf16.msra.mxu1 %v8145_v50  ;;  %7188 = vmatprep.subr.bf16.mxu0 %v8146_v21  ;;  %v8198_v50 = vld [vmem:[%s11689_s13] sm:$0xff]   ;;  %v8281_v21 = vmov 0.0  }
 0x69b   :  { %7210 = vmatprep.subr.bf16.mxu1 %v8147_v34  ;;  %v8199_v34 = vld [vmem:[%s11689_s13 + $0x8] sm:$0xff]  }
 0x69d   :  { %7189 = vmatpush3.bf16.msra.mxu0 %v8148_v38  ;;  %v8201_v38 = vld [vmem:[%s11689_s13 + $0x18] sm:$0xff]  }
 0x69e   :  { %7211 = vmatpush3.bf16.msra.mxu1 %v8149_v53  ;;  %7190 = vmatprep.subr.bf16.mxu0 %v8150_v6  ;;  %v8202_v53 = vld [vmem:[%s11689_s13 + $0x20] sm:$0xff]   ;;  %v8203_v6 = vld [vmem:[%s11689_s13 + $0x28] sm:$0xff]  }
 0x69f   :  { %7212 = vmatprep.subr.bf16.mxu1 %v8151_v13  ;;  %v8204_v13 = vld [vmem:[%s11689_s13 + $0x30] sm:$0xff]  }
 0x6a1   :  { %7191 = vmatpush3.bf16.msra.mxu0 %v8152_v29  ;;  %v8205_v29 = vld [vmem:[%s11689_s13 + $0x38] sm:$0xff]  }
 0x6a2   :  { %7213 = vmatpush3.bf16.msra.mxu1 %v8153_v60  ;;  %7192 = vmatprep.subr.bf16.mxu0 %v8154_v55 }
 0x6a3   :  { %7214 = vmatprep.subr.bf16.mxu1 %v8155_v33  ;;  %v6736_v33 = vld [vmem:[%s11688_s12] ss:$0 sm:$0xff] }
 0x6a5   :  { %7193 = vmatpush3.bf16.msra.mxu0 %v8156_v17 }
 0x6a6   :  { %7215 = vmatpush3.bf16.msra.mxu1 %v8157_v14  ;;  %7194 = vmatprep.subr.bf16.mxu0 %v8158_v51 }
 0x6a7   :  { %7216 = vmatprep.subr.bf16.mxu1 %v8159_v35 }
 0x6a9   :  { %7195 = vmatpush3.bf16.msra.mxu0 %v8160_v31 }
 0x6aa   :  { %7217 = vmatpush3.bf16.msra.mxu1 %v8161_v63  ;;  %7196 = vmatprep.subr.bf16.mxu0 %v8162_v37 }
 0x6ab   :  { %7218 = vmatprep.subr.bf16.mxu1 %v8163_v44 }
 0x6ad   :  { %7197 = vmatpush3.bf16.msra.mxu0 %v8164_v7 }
 0x6ae   :  { %7219 = vmatpush3.bf16.msra.mxu1 %v8165_v26  ;;  %7226 = vmatprep.subr.bf16.mxu0 %v8166_v45 }
 0x6af   :  { %7248 = vmatprep.subr.bf16.mxu1 %v8167_v41 }
 0x6b0   :  { %6051 = vmatmul.mubr.bf16.vlgmr.msra.gmra.mrb[40].mxu0 %v4819_v57 }
 0x6b1   :  { %6091 = vmatmul.mubr.bf16.vlgmr.msra.gmra.mrb[36].mxu1 %v4821_v4  ;;  %7227 = vmatpush3.bf16.msra.mxu0 %v8168_v19 }
 0x6b2   :  { %6130 = vmatprep.mubr.bf16.mxu0 %v4824_v46  ;;  %7249 = vmatpush3.bf16.msra.mxu1 %v8169_v22 }
 0x6b3   :  { %6170 = vmatprep.mubr.bf16.mxu1 %v4826_v54  ;;  %7228 = vmatprep.subr.bf16.mxu0 %v8170_v32 }
 0x6b4   :  { %7250 = vmatprep.subr.bf16.mxu1 %v8171_v2 }
 0x6b5   :  { %7229 = vmatpush3.bf16.msra.mxu0 %v8172_v11 }
 0x6b6   :  { %7251 = vmatpush3.bf16.msra.mxu1 %v8173_v61  ;;  %7230 = vmatprep.subr.bf16.mxu0 %v8174_v10 }
 0x6b7   :  { %7252 = vmatprep.subr.bf16.mxu1 %v8175_v62 }
 0x6b9   :  { %7231 = vmatpush3.bf16.msra.mxu0 %v8176_v56 }
 0x6ba   :  { %7253 = vmatpush3.bf16.msra.mxu1 %v8177_v28  ;;  %7232 = vmatprep.subr.bf16.mxu0 %v8178_v16 }
 0x6bb   :  { %7254 = vmatprep.subr.bf16.mxu1 %v8179_v47 }
 0x6bd   :  { %7233 = vmatpush3.bf16.msra.mxu0 %v8180_v58 }
 0x6be   :  { %7255 = vmatpush3.bf16.msra.mxu1 %v8181_v5  ;;  %7234 = vmatprep.subr.bf16.mxu0 %v8182_v8 }
 0x6bf   :  { %7256 = vmatprep.subr.bf16.mxu1 %v8183_v20 }
 0x6c1   :  { %7235 = vmatpush3.bf16.msra.mxu0 %v8184_v39 }
 0x6c2   :  { %7257 = vmatpush3.bf16.msra.mxu1 %v8185_v1  ;;  %7236 = vmatprep.subr.bf16.mxu0 %v8186_v15 }
 0x6c3   :  { %7258 = vmatprep.subr.bf16.mxu1 %v8187_v42 }
 0x6c5   :  { %7237 = vmatpush3.bf16.msra.mxu0 %v8188_v23 }
 0x6c6   :  { %7259 = vmatpush3.bf16.msra.mxu1 %v8189_v25  ;;  %7238 = vmatprep.subr.bf16.mxu0 %v8190_v59 }
 0x6c7   :  { %7260 = vmatprep.subr.bf16.mxu1 %v8191_v48 }
 0x6c9   :  { %7239 = vmatpush3.bf16.msra.mxu0 %v8192_v0 }
 0x6ca   :  { %7261 = vmatpush3.bf16.msra.mxu1 %v8193_v36  ;;  %7240 = vmatprep.subr.bf16.mxu0 %v8194_v24 }
 0x6cb   :  { %7262 = vmatprep.subr.bf16.mxu1 %v8195_v12 }
 0x6cd   :  { %7241 = vmatpush3.bf16.msra.mxu0 %v8196_v18 }
 0x6ce   :  { %7263 = vmatpush3.bf16.msra.mxu1 %v8197_v9  ;;  %7719 = vmatprep.subr.bf16.mxu0 %v8281_v21  ;;  %v6865_v9 = vld [vmem:[%s11690_s14] ss:$0 sm:$0xff] }
 0x6d0   :  { %6131 = vmatmul.mubr.bf16.vlgmr.msra.gmra.mrb[44].mxu0 %v4823_v30 }
 0x6d1   :  { %6171 = vmatmul.mubr.bf16.vlgmr.msra.gmra.mrb[40].mxu1 %v4825_v43  ;;  %7720 = vmatpush3.bf16.msra.mxu0 %v8198_v50 }
 0x6d2   :  { %7721 = vmatprep.subr.bf16.mxu0 %v8281_v21  ;;  %7735 = vmatprep.mubr.msk.bf16.mxu0 %vm8282_vm4, %v8281_v21 }
 0x6d5   :  { %7722 = vmatpush3.bf16.msra.mxu0 %v8199_v34 }
 0x6d6   :  { %7723 = vmatprep.subr.bf16.mxu0 %v8281_v21 }
 0x6d9   :  { %7724 = vmatpush3.bf16.msra.mxu0 %v8200_v40 }
 0x6da   :  { %7725 = vmatprep.subr.bf16.mxu0 %v8281_v21 }
 0x6dd   :  { %7726 = vmatpush3.bf16.msra.mxu0 %v8201_v38 }
 0x6de   :  { %7727 = vmatprep.subr.bf16.mxu0 %v8281_v21 }
 0x6e1   :  { %7728 = vmatpush3.bf16.msra.mxu0 %v8202_v53 }
 0x6e2   :  { %7729 = vmatprep.subr.bf16.mxu0 %v8281_v21 }
 0x6e5   :  { %7730 = vmatpush3.bf16.msra.mxu0 %v8203_v6 }
 0x6e6   :  { %7731 = vmatprep.subr.bf16.mxu0 %v8281_v21 }
 0x6e9   :  { %7732 = vmatpush3.bf16.msra.mxu0 %v8204_v13 }
 0x6ea   :  { %7733 = vmatprep.subr.bf16.mxu0 %v8281_v21 }
 0x6ed   :  { %7734 = vmatpush3.bf16.msra.mxu0 %v8205_v29 }
 0x743   :  { %v7110_v60 = vpop.f32.mrb[32].mxu0  ;;  %v7132_v55 = vpop.f32.mrb[28].mxu1 }
 0x744   :  { %v7111_v17 = vpop.f32.mrb[33].mxu0  ;;  %v7133_v51 = vpop.f32.mrb[29].mxu1 }
 0x745   :  { %v7112_v14 = vadd.f32 %v7111_v17, %v7110_v60  ;;  %v7113_v35 = vpop.f32.mrb[34].mxu0  ;;  %v7134_v31 = vadd.f32 %v7133_v51, %v7132_v55  ;;  %v7135_v63 = vpop.f32.mrb[30].mxu1  ;;  %v6327_v51 = vld [vmem:[%s11678_s2] sm:$0x3] }
 0x746   :  { %v7114_v37 = vpop.f32.mrb[35].mxu0  ;;  %v7136_v7 = vpop.f32.mrb[31].mxu1  ;;  %v12461_v35 = vlaneseq  ;;  %vm6328_vm6 = vcmp.gt.s32.totalorder %v6327_v51, 0 }
 0x747   :  { %v5893_v44 = vadd.f32 %v7112_v14, %v6736_v33 }
 0x749   :  { %v5933_v26 = vadd.f32 %v7134_v31, %v5893_v44  ;;  %v6309_v31 = vand.u32 127, %v12461_v35 }
 0x763   :  { %v7154_v45 = vpop.f32.mrb[36].mxu0  ;;  %v7176_v49 = vpop.f32.mrb[32].mxu1 }
 0x764   :  { %v7155_v41 = vpop.f32.mrb[37].mxu0  ;;  %v7177_v19 = vpop.f32.mrb[33].mxu1 }
 0x765   :  { %v7156_v27 = vadd.f32 %v7155_v41, %v7154_v45  ;;  %v7157_v3 = vpop.f32.mrb[38].mxu0  ;;  %v7178_v57 = vadd.f32 %v7177_v19, %v7176_v49  ;;  %v7179_v22 = vpop.f32.mrb[34].mxu1 }
 0x766   :  { %v7158_v4 = vpop.f32.mrb[39].mxu0  ;;  %v7180_v46 = vpop.f32.mrb[35].mxu1 }
 0x767   :  { %v5973_v32 = vadd.f32 %v7156_v27, %v5933_v26 }
 0x769   :  { %v6013_v2 = vadd.f32 %v7178_v57, %v5973_v32 }
 0x783   :  { %v7198_v54 = vpop.f32.mrb[40].mxu0 }
 0x784   :  { %v7220_v11 = vpop.f32.mrb[36].mxu1  ;;  %v7199_v61 = vpop.f32.mrb[41].mxu0 }
 0x785   :  { %v7200_v10 = vadd.f32 %v7199_v61, %v7198_v54  ;;  %v7221_v62 = vpop.f32.mrb[37].mxu1  ;;  %v7201_v56 = vpop.f32.mrb[42].mxu0 }
 0x786   :  { %v7222_v28 = vadd.f32 %v7221_v62, %v7220_v11  ;;  %v7223_v16 = vpop.f32.mrb[38].mxu1  ;;  %v7202_v47 = vpop.f32.mrb[43].mxu0 }
 0x787   :  { %v6053_v58 = vadd.f32 %v7200_v10, %v6013_v2  ;;  %v7224_v5 = vpop.f32.mrb[39].mxu1 }
 0x789   :  { %v6093_v8 = vadd.f32 %v7222_v28, %v6053_v58 }
 0x7a3   :  { %v7242_v20 = vpop.f32.mrb[44].mxu0 }
 0x7a4   :  { %v7264_v39 = vpop.f32.mrb[40].mxu1  ;;  %v7243_v1 = vpop.f32.mrb[45].mxu0 }
 0x7a5   :  { %v7244_v15 = vadd.f32 %v7243_v1, %v7242_v20  ;;  %v7265_v42 = vpop.f32.mrb[41].mxu1  ;;  %v7245_v23 = vpop.f32.mrb[46].mxu0 }
 0x7a6   :  { %v7266_v25 = vadd.f32 %v7265_v42, %v7264_v39  ;;  %v7267_v59 = vpop.f32.mrb[42].mxu1  ;;  %v7246_v48 = vpop.f32.mrb[47].mxu0 }
 0x7a7   :  { %v6133_v0 = vadd.f32 %v7244_v15, %v6093_v8  ;;  %v7268_v36 = vpop.f32.mrb[43].mxu1 }
 0x7a9   :  { %v6173_v24 = vadd.f32 %v7266_v25, %v6133_v0 }
 0x7ab   :  { %v6178_v12 = vmax.f32 %v6173_v24, 0.0 }
 0x7ad   :  { %v6179_v18 = vpack.c.bf16 %v6178_v12, %v6178_v12 }
 0x7af   :  { %7736 = vmatmul.mubr.bf16.vlgmr.msra.gmra.mrb[48].mxu0 %v6179_v18 }
 0x882   :  { %v6285_v52 = vpop.f32.mrb[48].mxu0 }
 0x883   :  { %v6286_v30 = vadd.f32 %v6865_v9, %v6285_v52  ;;  %v7737_v43 = vpop.f32.mrb[49].mxu0 }
 0x884   :  { %v6288_v50 = vpop.f32.mrb[50].mxu0 }
 0x885   :  { %v7738_v21 = vpop.f32.mrb[51].mxu0  ;;  %v6292_v34 = vsel %vm6291_vm5, %v6286_v30, -inf }
 0x886   :  { %6293 = vmax.xlane.f32.xlu0 %v6292_v34 }
 0x913   :  { %v6294_v40 = vpop.xlane.xlu0 %6293 }
 0x914   :  { %v6295_v38 = vsub.f32 %v6286_v30, %v6294_v40 }
 0x916   :  { %v6296_v53 = vmul.f32 1.442695, %v6295_v38 }
 0x918   :  { %8206 = vpow2.f32 %v6296_v53 }
 0x922   :  { %v8207_v6 = vpop.eup %8206 }
 0x923   :  { %v6298_v13 = vsel %vm6291_vm5, %v8207_v6, 0.0 }
 0x924   :  { %6299 = vadd.xlane.f32.xlu1 %v6298_v13 }
 0x9b1   :  { %v6300_v29 = vpop.xlane.xlu1 %6299 }
 0x9b2   :  { %8208 = vlog2.f32 %v6300_v29 }
 0x9bc   :  { %v8209_v60 = vpop.eup %8208 }
 0x9bd   :  { %v6302_v55 = vmul.f32 0.6931472, %v8209_v60 }
 0x9bf   :  { %v6303_v33 = vadd.f32 %v6302_v55, %v6294_v40 }
 0x9c1   :  { %v6304_v17 = vsub.f32 %v6286_v30, %v6303_v33 }
 0x9c3   :  { %v6305_v14 = vsel %vm6291_vm5, %v6304_v17, -inf }
 0x9c4   :  { %6306 = vmax.xlane.f32.xlu0 %v6305_v14 }
 0xa51   :  { %v6307_v63 = vpop.xlane.xlu0 %6306 }
 0xa52   :  { %vm6310_vm8 = vcmp.ge.f32.partialorder %v6304_v17, %v6307_v63  ;;  %v6332_v37 = vsub.f32 0.0, %v6307_v63 }
 0xa53   :  { %v6311_v44 = vsel %vm6310_vm8, %v6309_v31, 16 }
 0xa54   :  { %v6312_v7 = vsel %vm6291_vm5, %v6311_v44, 2147483647  ;;  %v6333_v26 = vsel %vm6328_vm6, %v6332_v37, 3.33 }
 0xa55   :  { %6334 = vst.msk [vmem:[%s11692_s16] sm:$0x3] %vm6330_vm7, %v6333_v26  ;;  %v6314_v45 = vshra.s32 %v6312_v7, 16  ;;  %v6313_v41 = vand.u32 65535, %v6312_v7  ;;  %s12462_s16 = sld [smem:[#allocation129_spill]] }
 0xa57   :  { %v6316_v49 = vcvt.s32.f32 %v6314_v45  ;;  %v6315_v19 = vcvt.s32.f32 %v6313_v41 }
 0xa59   :  { %6317 = vmin.xlane.f32.xlu0 %v6316_v49 }
 0xae6   :  { %v6318_v27 = vpop.xlane.xlu0 %6317 }
 0xae7   :  { %vm6319_vm9 = vcmp.eq.f32.partialorder %v6316_v49, %v6318_v27  ;;  %v6324_v57 = vcvt.f32.s32 %v6318_v27 }
 0xae8   :  { %v6320_v3 = vsel %vm6319_vm9, %v6315_v19, inf }
 0xae9   :  { %6321 = vmin.xlane.f32.xlu1 %v6320_v3  ;;  %v6325_v4 = vshll.u32 %v6324_v57, 16 }
 0xb76   :  { %v6322_v22 = vpop.xlane.xlu1 %6321 }
 0xb77   :  { %v6323_v32 = vcvt.f32.s32 %v6322_v22 }
 0xb79   :  { %v6326_v46 = vadd.s32 %v6325_v4, %v6323_v32 }
 0xb7b   :  { %v6329_v2 = vsel %vm6328_vm6, %v6326_v46, 1 }
 0xb7c   :  { %6331 = vst.msk [vmem:[%s12462_s16] sm:$0x3] %vm6330_vm7, %v6329_v2 }
 0xb7d   :  { %6343 = vsyncpa [#allocation3], 1 }
 0xb7e   :  { %6344 = vsyncpa [#allocation5], 1 }

</bundles_post_ra>
